<compile_context>
chip_gen: v7x
topology: tpu7x:2x2x1
jax: 0.10.0
libtpu: 0.0.40
codegen_flags: <defaults>
</compile_context>

<pallas_src>
import functools

import jax
import jax.numpy as jnp
import numpy as np
from jax.experimental import pallas as pl
from jax.experimental.pallas import tpu as pltpu


# --------------------------------------------------------------------------- #
# In-kernel helpers
# --------------------------------------------------------------------------- #
def _pad_hw(v, pad):
    """Zero-pad a (1,H,W,C) value by `pad` on H and W via concatenation
    (every element written once, no full-buffer fill + interior overwrite)."""
    _, H, W, C = v.shape
    zr = jnp.zeros((1, pad, W, C), v.dtype)
    v = jnp.concatenate([zr, v, zr], axis=1)
    zc = jnp.zeros((1, H + 2 * pad, pad, C), v.dtype)
    return jnp.concatenate([zc, v, zc], axis=2)


def _conv_same(r, w_ref, kh, kw, pad):
    """KHxKW stride-1 'same' conv.  r: (1,H,W,C) bf16, w_ref: (KH, KW*C, Cout).
    Streaming im2col (patch built per kernel row, never persisted) and a
    register/value accumulator (no Ref read-modify-write per tap)."""
    _, H, W, C = r.shape
    R = H * W
    rp = _pad_hw(r, pad)
    acc = jnp.zeros((R, w_ref.shape[-1]), jnp.float32)
    for i in range(kh):
        patch = jnp.concatenate(
            [rp[:, i:i + H, j:j + W, :] for j in range(kw)], axis=-1
        ).reshape(R, kw * C)
        acc = acc + jnp.dot(patch, w_ref[i], preferred_element_type=jnp.float32)
    return acc


def _partial_stats(*ys):
    """Per-channel [sum; sum-of-squares] over rows, channel-concatenated -> (2, C)."""
    s = jnp.concatenate([jnp.sum(y, axis=0, keepdims=True) for y in ys], axis=-1)
    ss = jnp.concatenate([jnp.sum(y * y, axis=0, keepdims=True) for y in ys], axis=-1)
    return jnp.concatenate([s, ss], axis=0)


# --------------------------------------------------------------------------- #
# Pass 1: fused 1x1 convs (branch1 + reduce3 + reduce5) and maxpool->1x1
#         (branch4), all pre-BN, plus per-tile BN partial statistics.
# --------------------------------------------------------------------------- #
def _stage1_kernel(x_ref, wf_ref, w4_ref, s1a_ref, s1b_ref, st_ref, *, out1):
    _, H, W, Cin = x_ref.shape
    R = H * W
    xv = x_ref[...]                                            # (1,H,W,Cin) bf16
    x2d = xv.reshape(R, Cin)

    # branch1 / branch2-reduce / branch3-reduce: one fused 1x1 matmul.
    y1 = jnp.dot(x2d, wf_ref[...], preferred_element_type=jnp.float32)

    # branch4: 3x3/s1 'same' maxpool.  Edge replication == -inf padding for max,
    # so no padded scratch and no full-buffer -inf fill.
    left = jnp.concatenate([xv[:, :, :1, :], xv[:, :, :W - 1, :]], axis=2)
    right = jnp.concatenate([xv[:, :, 1:, :], xv[:, :, W - 1:, :]], axis=2)
    tw = jnp.maximum(jnp.maximum(left, xv), right)
    up = jnp.concatenate([tw[:, :1], tw[:, :H - 1]], axis=1)
    down = jnp.concatenate([tw[:, 1:], tw[:, H - 1:]], axis=1)
    pooled = jnp.maximum(jnp.maximum(up, tw), down)
    y4 = jnp.dot(pooled.reshape(R, Cin), w4_ref[...],
                 preferred_element_type=jnp.float32)

    # Pre-BN outputs: 1a = [branch1 | branch4] (finalize pass),
    #                 1b = [reduce3 | reduce5] (3x3/5x5 conv pass).
    s1a_ref[...] = jnp.concatenate([y1[:, :out1], y4], axis=-1).reshape(s1a_ref.shape)
    s1b_ref[...] = y1[:, out1:].reshape(s1b_ref.shape)

    # Per-tile BN partial stats, channel order [out1 | red3 | red5 | outp].
    st_ref[...] = _partial_stats(y1, y4).reshape(st_ref.shape)


# --------------------------------------------------------------------------- #
# Pass 2: BN+ReLU on the reduce layers (batch-global scale/shift from wrapper),
#         then the 3x3 and 5x5 'same' convs, pre-BN, plus their partial stats.
# --------------------------------------------------------------------------- #
def _stage2_kernel(s1b_ref, sc_ref, sh_ref, w2_ref, w3_ref, s2_ref, st_ref, *, red3):
    sc = sc_ref[...].reshape(1, 1, 1, -1)
    sh = sh_ref[...].reshape(1, 1, 1, -1)
    r = jnp.maximum(s1b_ref[...] * sc + sh, 0.0).astype(jnp.bfloat16)
    y2 = _conv_same(r[..., :red3], w2_ref, 3, 3, 1)            # branch2: 3x3, pad 1
    y3 = _conv_same(r[..., red3:], w3_ref, 5, 5, 2)            # branch3: 5x5, pad 2
    s2_ref[...] = jnp.concatenate([y2, y3], axis=-1).reshape(s2_ref.shape)
    st_ref[...] = _partial_stats(y2, y3).reshape(st_ref.shape)


# --------------------------------------------------------------------------- #
# Pass 3: BN+ReLU on every branch and a single concatenated (lane-dense) store.
# --------------------------------------------------------------------------- #
def _finalize_kernel(s1a_ref, s2_ref, sc_ref, sh_ref, o_ref, *, out1):
    s1a = s1a_ref[...]
    # Final channel order [out1 | out3 | out5 | outp].
    y = jnp.concatenate([s1a[..., :out1], s2_ref[...], s1a[..., out1:]], axis=-1)
    sc = sc_ref[...].reshape(1, 1, 1, -1)
    sh = sh_ref[...].reshape(1, 1, 1, -1)
    o_ref[...] = jnp.maximum(y * sc + sh, 0.0).astype(o_ref.dtype)


# --------------------------------------------------------------------------- #
# Wrapper
# --------------------------------------------------------------------------- #
def _bn_scale_shift(stats_sum, gamma, beta, count, eps):
    """stats_sum: (2, C) [sum, sumsq] over the whole batch -> folded scale/shift."""
    mean = stats_sum[0] / count
    var = jnp.maximum(stats_sum[1] / count - mean * mean, 0.0)   # clamp negatives
    scale = gamma * jax.lax.rsqrt(var + eps)
    return scale, beta - mean * scale


def inception_block(x_nchw, p, *, eps=1e-5):
    bf16 = jnp.bfloat16
    x = jnp.transpose(x_nchw, (0, 2, 3, 1)).astype(bf16)        # NCHW -> NHWC
    N, H, W, Cin = x.shape
    out1 = p["b1_w"].shape[-1]
    red3 = p["b2a_w"].shape[-1]
    out3 = p["b2b_w"].shape[-1]
    red5 = p["b3a_w"].shape[-1]
    out5 = p["b3b_w"].shape[-1]
    outp = p["b4_w"].shape[-1]
    ctot = out1 + out3 + out5 + outp
    c1 = out1 + red3 + red5 + outp
    count = float(N * H * W)

    # Fused 1x1 weights for the three convs reading x; KxK weights laid out so
    # (KW, Cin) is the MXU contracting dim.  bf16 operands, f32 accumulation.
    wf = jnp.concatenate([p["b1_w"].reshape(Cin, out1),
                          p["b2a_w"].reshape(Cin, red3),
                          p["b3a_w"].reshape(Cin, red5)], axis=-1).astype(bf16)
    w4 = p["b4_w"].reshape(Cin, outp).astype(bf16)
    w2 = p["b2b_w"].reshape(3, 3 * red3, out3).astype(bf16)
    w3 = p["b3b_w"].reshape(5, 5 * red5, out5).astype(bf16)

    par = pltpu.CompilerParams(dimension_semantics=("parallel",))

    # ---- pass 1 ----------------------------------------------------------- #
    s1a, s1b, st1 = pl.pallas_call(
        functools.partial(_stage1_kernel, out1=out1),
        grid=(N,),
        in_specs=[
            pl.BlockSpec((1, H, W, Cin), lambda n: (n, 0, 0, 0)),
            pl.BlockSpec((Cin, out1 + red3 + red5), lambda n: (0, 0)),
            pl.BlockSpec((Cin, outp), lambda n: (0, 0)),
        ],
        out_specs=(
            pl.BlockSpec((1, H, W, out1 + outp), lambda n: (n, 0, 0, 0)),
            pl.BlockSpec((1, H, W, red3 + red5), lambda n: (n, 0, 0, 0)),
            pl.BlockSpec((1, 2, c1), lambda n: (n, 0, 0)),
        ),
        out_shape=(
            jax.ShapeDtypeStruct((N, H, W, out1 + outp), jnp.float32),
            jax.ShapeDtypeStruct((N, H, W, red3 + red5), jnp.float32),
            jax.ShapeDtypeStruct((N, 2, c1), jnp.float32),
        ),
        compiler_params=par,
    )(x, wf, w4)

    # Batch-global BN scale/shift for the four 1x1 ConvBlocks (two-pass BN).
    g1 = jnp.concatenate([p["b1_g"], p["b2a_g"], p["b3a_g"], p["b4_g"]])
    bt1 = jnp.concatenate([p["b1_b"], p["b2a_b"], p["b3a_b"], p["b4_b"]])
    sc1, sh1 = _bn_scale_shift(jnp.sum(st1, axis=0), g1, bt1, count, eps)
    sc_r = sc1[out1:out1 + red3 + red5].reshape(1, -1)
    sh_r = sh1[out1:out1 + red3 + red5].reshape(1, -1)

    # ---- pass 2 ----------------------------------------------------------- #
    s2, st2 = pl.pallas_call(
        functools.partial(_stage2_kernel, red3=red3),
        grid=(N,),
        in_specs=[
            pl.BlockSpec((1, H, W, red3 + red5), lambda n: (n, 0, 0, 0)),
            pl.BlockSpec((1, red3 + red5), lambda n: (0, 0)),
            pl.BlockSpec((1, red3 + red5), lambda n: (0, 0)),
            pl.BlockSpec((3, 3 * red3, out3), lambda n: (0, 0, 0)),
            pl.BlockSpec((5, 5 * red5, out5), lambda n: (0, 0, 0)),
        ],
        out_specs=(
            pl.BlockSpec((1, H, W, out3 + out5), lambda n: (n, 0, 0, 0)),
            pl.BlockSpec((1, 2, out3 + out5), lambda n: (n, 0, 0)),
        ),
        out_shape=(
            jax.ShapeDtypeStruct((N, H, W, out3 + out5), jnp.float32),
            jax.ShapeDtypeStruct((N, 2, out3 + out5), jnp.float32),
        ),
        compiler_params=par,
    )(s1b, sc_r, sh_r, w2, w3)

    g2 = jnp.concatenate([p["b2b_g"], p["b3b_g"]])
    bt2 = jnp.concatenate([p["b2b_b"], p["b3b_b"]])
    sc2, sh2 = _bn_scale_shift(jnp.sum(st2, axis=0), g2, bt2, count, eps)

    # BN scale/shift in final channel order [out1 | out3 | out5 | outp].
    sc_out = jnp.concatenate([sc1[:out1], sc2, sc1[out1 + red3 + red5:]]).reshape(1, -1)
    sh_out = jnp.concatenate([sh1[:out1], sh2, sh1[out1 + red3 + red5:]]).reshape(1, -1)

    # ---- pass 3 ----------------------------------------------------------- #
    out_nhwc = pl.pallas_call(
        functools.partial(_finalize_kernel, out1=out1),
        grid=(N,),
        in_specs=[
            pl.BlockSpec((1, H, W, out1 + outp), lambda n: (n, 0, 0, 0)),
            pl.BlockSpec((1, H, W, out3 + out5), lambda n: (n, 0, 0, 0)),
            pl.BlockSpec((1, ctot), lambda n: (0, 0)),
            pl.BlockSpec((1, ctot), lambda n: (0, 0)),
        ],
        out_specs=pl.BlockSpec((1, H, W, ctot), lambda n: (n, 0, 0, 0)),
        out_shape=jax.ShapeDtypeStruct((N, H, W, ctot), jnp.float32),
        compiler_params=par,
    )(s1a, s2, sc_out, sh_out)

    return jnp.transpose(out_nhwc, (0, 3, 1, 2))                # NHWC -> NCHW


# --------------------------------------------------------------------------- #
# Parameter init (matches the PyTorch module's structure)
# --------------------------------------------------------------------------- #
def init_inception_params(key, in_channels, out_1x1, red_3x3, out_3x3,
                          red_5x5, out_5x5, out_1x1_pooling):
    def conv_w(k, kh, kw, cin, cout):
        bound = 1.0 / np.sqrt(cin * kh * kw)
        return jax.random.uniform(k, (kh, kw, cin, cout), jnp.float32, -bound, bound)

    def bn(cout):
        return jnp.ones((cout,), jnp.float32), jnp.zeros((cout,), jnp.float32)

    ks = jax.random.split(key, 6)
    p = {}
    p["b1_w"] = conv_w(ks[0], 1, 1, in_channels, out_1x1)
    p["b1_g"], p["b1_b"] = bn(out_1x1)
    p["b2a_w"] = conv_w(ks[1], 1, 1, in_channels, red_3x3)
    p["b2a_g"], p["b2a_b"] = bn(red_3x3)
    p["b2b_w"] = conv_w(ks[2], 3, 3, red_3x3, out_3x3)
    p["b2b_g"], p["b2b_b"] = bn(out_3x3)
    p["b3a_w"] = conv_w(ks[3], 1, 1, in_channels, red_5x5)
    p["b3a_g"], p["b3a_b"] = bn(red_5x5)
    p["b3b_w"] = conv_w(ks[4], 5, 5, red_5x5, out_5x5)
    p["b3b_g"], p["b3b_b"] = bn(out_5x5)
    p["b4_w"] = conv_w(ks[5], 1, 1, in_channels, out_1x1_pooling)
    p["b4_g"], p["b4_b"] = bn(out_1x1_pooling)
    return p


# --------------------------------------------------------------------------- #
# Pure-JAX reference (emulates the kernel's bf16-operand / f32-accumulate MXU)
# --------------------------------------------------------------------------- #
def _ref_conv_bn_relu(x, w, gamma, beta, pad, eps=1e-5):
    xb = x.astype(jnp.bfloat16).astype(jnp.float32)
    wb = w.astype(jnp.bfloat16).astype(jnp.float32)
    y = jax.lax.conv_general_dilated(
        xb, wb, (1, 1), [(pad, pad), (pad, pad)],
        dimension_numbers=("NHWC", "HWIO", "NHWC"),
        precision=jax.lax.Precision.HIGHEST)
    mean = jnp.mean(y, axis=(0, 1, 2), keepdims=True)
    var = jnp.mean((y - mean) ** 2, axis=(0, 1, 2), keepdims=True)
    y = (y - mean) * jax.lax.rsqrt(var + eps) * gamma + beta
    return jnp.maximum(y, 0.0)


def _ref_inception(x_nchw, p):
    x = jnp.transpose(x_nchw, (0, 2, 3, 1)).astype(jnp.float32)
    b1 = _ref_conv_bn_relu(x, p["b1_w"], p["b1_g"], p["b1_b"], 0)
    b2 = _ref_conv_bn_relu(x, p["b2a_w"], p["b2a_g"], p["b2a_b"], 0)
    b2 = _ref_conv_bn_relu(b2, p["b2b_w"], p["b2b_g"], p["b2b_b"], 1)
    b3 = _ref_conv_bn_relu(x, p["b3a_w"], p["b3a_g"], p["b3a_b"], 0)
    b3 = _ref_conv_bn_relu(b3, p["b3b_w"], p["b3b_g"], p["b3b_b"], 2)
    b4 = jax.lax.reduce_window(x, -jnp.inf, jax.lax.max,
                               (1, 3, 3, 1), (1, 1, 1, 1),
                               [(0, 0), (1, 1), (1, 1), (0, 0)])
    b4 = _ref_conv_bn_relu(b4, p["b4_w"], p["b4_g"], p["b4_b"], 0)
    out = jnp.concatenate([b1, b2, b3, b4], axis=-1)
    return jnp.transpose(out, (0, 3, 1, 2))


# --------------------------------------------------------------------------- #
if __name__ == "__main__":
    key = jax.random.PRNGKey(0)
    kx, kp = jax.random.split(key)

    # small shapes: batch=2, in_channels=4, spatial=16x16
    N, C, H, W = 2, 4, 16, 16
    out_1x1, red_3x3, out_3x3, red_5x5, out_5x5, out_pool = 8, 4, 8, 4, 8, 8

    x = jax.random.normal(kx, (N, C, H, W), jnp.float32)
    params = init_inception_params(kp, C, out_1x1, red_3x3, out_3x3,
                                   red_5x5, out_5x5, out_pool)

    out = jax.block_until_ready(jax.jit(inception_block)(x, params))
    assert out.shape == (N, out_1x1 + out_3x3 + out_5x5 + out_pool, H, W), out.shape

    ref = jax.block_until_ready(_ref_inception(x, params))
    np.testing.assert_allclose(np.asarray(out), np.asarray(ref), atol=5e-3, rtol=5e-3)

    print("KERNEL_OK")
</pallas_src>

<mosaic_0001>
module attributes {stable_mosaic.version = 11 : i64} {
  func.func @_stage1_kernel(%arg0: i32, %arg1: memref<1x16x16x4xbf16, #tpu.memory_space<vmem>>, %arg2: memref<4x16xbf16, #tpu.memory_space<vmem>>, %arg3: memref<4x8xbf16, #tpu.memory_space<vmem>>, %arg4: memref<1x16x16x16xf32, #tpu.memory_space<vmem>>, %arg5: memref<1x16x16x8xf32, #tpu.memory_space<vmem>>, %arg6: memref<1x2x24xf32, #tpu.memory_space<vmem>>) attributes {dimension_semantics = [#tpu.dimension_semantics<parallel>], iteration_bounds = array<i64: 2>, scalar_prefetch = 0 : i64, scratch_operands = 0 : i64, tpu.core_type = #tpu.core_type<tc>, window_params = [{transform_indices = @transform_0, window_bounds = array<i64: 1, 16, 16, 4>}, {pipeline_mode = #tpu.pipeline_mode<synchronous>, transform_indices = @transform_1, window_bounds = array<i64: 4, 16>}, {pipeline_mode = #tpu.pipeline_mode<synchronous>, transform_indices = @transform_2, window_bounds = array<i64: 4, 8>}, {transform_indices = @transform_3, window_bounds = array<i64: 1, 16, 16, 16>}, {transform_indices = @transform_4, window_bounds = array<i64: 1, 16, 16, 8>}, {transform_indices = @transform_5, window_bounds = array<i64: 1, 2, 24>}]} {
    %c0 = arith.constant 0 : index
    %c0_0 = arith.constant 0 : index
    %c0_1 = arith.constant 0 : index
    %c0_2 = arith.constant 0 : index
    %0 = vector.load %arg1[%c0, %c0_0, %c0_1, %c0_2] : memref<1x16x16x4xbf16, #tpu.memory_space<vmem>>, vector<1x16x16x4xbf16>
    %1 = vector.shape_cast %0 : vector<1x16x16x4xbf16> to vector<256x4xbf16>
    %c0_3 = arith.constant 0 : index
    %c0_4 = arith.constant 0 : index
    %2 = vector.load %arg2[%c0_3, %c0_4] : memref<4x16xbf16, #tpu.memory_space<vmem>>, vector<4x16xbf16>
    %cst = arith.constant dense<0.000000e+00> : vector<256x16xf32>
    %3 = tpu.matmul %1, %2, %cst {dimension_numbers = #tpu.dot_dimension_numbers<[1], [0], [0], [1], [0, 0, 1, 1], [], []>} : vector<256x4xbf16>, vector<4x16xbf16>, vector<256x16xf32> -> vector<256x16xf32>
    %4 = vector.extract_strided_slice %0 {offsets = [0, 0, 0, 0], sizes = [1, 16, 1, 4], strides = [1, 1, 1, 1]} : vector<1x16x16x4xbf16> to vector<1x16x1x4xbf16>
    %5 = vector.extract_strided_slice %0 {offsets = [0, 0, 0, 0], sizes = [1, 16, 15, 4], strides = [1, 1, 1, 1]} : vector<1x16x16x4xbf16> to vector<1x16x15x4xbf16>
    %6 = tpu.concatenate %4, %5 in 2 : vector<1x16x1x4xbf16>, vector<1x16x15x4xbf16> -> vector<1x16x16x4xbf16>
    %7 = vector.extract_strided_slice %0 {offsets = [0, 0, 1, 0], sizes = [1, 16, 15, 4], strides = [1, 1, 1, 1]} : vector<1x16x16x4xbf16> to vector<1x16x15x4xbf16>
    %8 = vector.extract_strided_slice %0 {offsets = [0, 0, 15, 0], sizes = [1, 16, 1, 4], strides = [1, 1, 1, 1]} : vector<1x16x16x4xbf16> to vector<1x16x1x4xbf16>
    %9 = tpu.concatenate %7, %8 in 2 : vector<1x16x15x4xbf16>, vector<1x16x1x4xbf16> -> vector<1x16x16x4xbf16>
    %10 = arith.maximumf %6, %0 : vector<1x16x16x4xbf16>
    %11 = arith.maximumf %10, %9 : vector<1x16x16x4xbf16>
    %12 = vector.extract_strided_slice %11 {offsets = [0, 0, 0, 0], sizes = [1, 1, 16, 4], strides = [1, 1, 1, 1]} : vector<1x16x16x4xbf16> to vector<1x1x16x4xbf16>
    %13 = vector.extract_strided_slice %11 {offsets = [0, 0, 0, 0], sizes = [1, 15, 16, 4], strides = [1, 1, 1, 1]} : vector<1x16x16x4xbf16> to vector<1x15x16x4xbf16>
    %14 = tpu.concatenate %12, %13 in 1 : vector<1x1x16x4xbf16>, vector<1x15x16x4xbf16> -> vector<1x16x16x4xbf16>
    %15 = vector.extract_strided_slice %11 {offsets = [0, 1, 0, 0], sizes = [1, 15, 16, 4], strides = [1, 1, 1, 1]} : vector<1x16x16x4xbf16> to vector<1x15x16x4xbf16>
    %16 = vector.extract_strided_slice %11 {offsets = [0, 15, 0, 0], sizes = [1, 1, 16, 4], strides = [1, 1, 1, 1]} : vector<1x16x16x4xbf16> to vector<1x1x16x4xbf16>
    %17 = tpu.concatenate %15, %16 in 1 : vector<1x15x16x4xbf16>, vector<1x1x16x4xbf16> -> vector<1x16x16x4xbf16>
    %18 = arith.maximumf %14, %11 : vector<1x16x16x4xbf16>
    %19 = arith.maximumf %18, %17 : vector<1x16x16x4xbf16>
    %20 = vector.shape_cast %19 : vector<1x16x16x4xbf16> to vector<256x4xbf16>
    %c0_5 = arith.constant 0 : index
    %c0_6 = arith.constant 0 : index
    %21 = vector.load %arg3[%c0_5, %c0_6] : memref<4x8xbf16, #tpu.memory_space<vmem>>, vector<4x8xbf16>
    %cst_7 = arith.constant dense<0.000000e+00> : vector<256x8xf32>
    %22 = tpu.matmul %20, %21, %cst_7 {dimension_numbers = #tpu.dot_dimension_numbers<[1], [0], [0], [1], [0, 0, 1, 1], [], []>} : vector<256x4xbf16>, vector<4x8xbf16>, vector<256x8xf32> -> vector<256x8xf32>
    %23 = vector.extract_strided_slice %3 {offsets = [0, 0], sizes = [256, 8], strides = [1, 1]} : vector<256x16xf32> to vector<256x8xf32>
    %24 = tpu.concatenate %23, %22 in 1 : vector<256x8xf32>, vector<256x8xf32> -> vector<256x16xf32>
    %25 = vector.shape_cast %24 : vector<256x16xf32> to vector<1x16x16x16xf32>
    %c0_8 = arith.constant 0 : index
    %c0_9 = arith.constant 0 : index
    %c0_10 = arith.constant 0 : index
    %c0_11 = arith.constant 0 : index
    %26 = vector.load %arg4[%c0_8, %c0_9, %c0_10, %c0_11] : memref<1x16x16x16xf32, #tpu.memory_space<vmem>>, vector<1x16x16x16xf32>
    tpu.vector_store %arg4[%c0_8, %c0_9, %c0_10, %c0_11], %25 {strides = array<i32>} : memref<1x16x16x16xf32, #tpu.memory_space<vmem>>, vector<1x16x16x16xf32>,
    %27 = vector.extract_strided_slice %3 {offsets = [0, 8], sizes = [256, 8], strides = [1, 1]} : vector<256x16xf32> to vector<256x8xf32>
    %28 = vector.shape_cast %27 : vector<256x8xf32> to vector<1x16x16x8xf32>
    %c0_12 = arith.constant 0 : index
    %c0_13 = arith.constant 0 : index
    %c0_14 = arith.constant 0 : index
    %c0_15 = arith.constant 0 : index
    %29 = vector.load %arg5[%c0_12, %c0_13, %c0_14, %c0_15] : memref<1x16x16x8xf32, #tpu.memory_space<vmem>>, vector<1x16x16x8xf32>
    tpu.vector_store %arg5[%c0_12, %c0_13, %c0_14, %c0_15], %28 {strides = array<i32>} : memref<1x16x16x8xf32, #tpu.memory_space<vmem>>, vector<1x16x16x8xf32>,
    %cst_16 = arith.constant dense<0.000000e+00> : vector<16xf32>
    %30 = vector.multi_reduction <add>, %3, %cst_16 [0] : vector<256x16xf32> to vector<16xf32>
    %31 = vector.shape_cast %30 : vector<16xf32> to vector<1x16xf32>
    %cst_17 = arith.constant dense<0.000000e+00> : vector<8xf32>
    %32 = vector.multi_reduction <add>, %22, %cst_17 [0] : vector<256x8xf32> to vector<8xf32>
    %33 = vector.shape_cast %32 : vector<8xf32> to vector<1x8xf32>
    %34 = tpu.concatenate %31, %33 in 1 : vector<1x16xf32>, vector<1x8xf32> -> vector<1x24xf32>
    %35 = arith.mulf %3, %3 : vector<256x16xf32>
    %cst_18 = arith.constant dense<0.000000e+00> : vector<16xf32>
    %36 = vector.multi_reduction <add>, %35, %cst_18 [0] : vector<256x16xf32> to vector<16xf32>
    %37 = vector.shape_cast %36 : vector<16xf32> to vector<1x16xf32>
    %38 = arith.mulf %22, %22 : vector<256x8xf32>
    %cst_19 = arith.constant dense<0.000000e+00> : vector<8xf32>
    %39 = vector.multi_reduction <add>, %38, %cst_19 [0] : vector<256x8xf32> to vector<8xf32>
    %40 = vector.shape_cast %39 : vector<8xf32> to vector<1x8xf32>
    %41 = tpu.concatenate %37, %40 in 1 : vector<1x16xf32>, vector<1x8xf32> -> vector<1x24xf32>
    %42 = tpu.concatenate %34, %41 in 0 : vector<1x24xf32>, vector<1x24xf32> -> vector<2x24xf32>
    %43 = vector.shape_cast %42 : vector<2x24xf32> to vector<1x2x24xf32>
    %c0_20 = arith.constant 0 : index
    %c0_21 = arith.constant 0 : index
    %c0_22 = arith.constant 0 : index
    %44 = vector.load %arg6[%c0_20, %c0_21, %c0_22] : memref<1x2x24xf32, #tpu.memory_space<vmem>>, vector<1x2x24xf32>
    tpu.vector_store %arg6[%c0_20, %c0_21, %c0_22], %43 {strides = array<i32>} : memref<1x2x24xf32, #tpu.memory_space<vmem>>, vector<1x2x24xf32>,
    return
  }
  func.func @transform_0(%arg0: i32) -> (i32, i32, i32, i32) {
    %c0_i32 = arith.constant 0 : i32
    %c0_i32_0 = arith.constant 0 : i32
    %c0_i32_1 = arith.constant 0 : i32
    %c0_i32_2 = arith.constant 0 : i32
    return %arg0, %c0_i32, %c0_i32_0, %c0_i32_1 : i32, i32, i32, i32
  }
  func.func @transform_1(%arg0: i32) -> (i32, i32) {
    %c0_i32 = arith.constant 0 : i32
    %c0_i32_0 = arith.constant 0 : i32
    %c0_i32_1 = arith.constant 0 : i32
    return %c0_i32, %c0_i32_0 : i32, i32
  }
  func.func @transform_2(%arg0: i32) -> (i32, i32) {
    %c0_i32 = arith.constant 0 : i32
    %c0_i32_0 = arith.constant 0 : i32
    %c0_i32_1 = arith.constant 0 : i32
    return %c0_i32, %c0_i32_0 : i32, i32
  }
  func.func @transform_3(%arg0: i32) -> (i32, i32, i32, i32) {
    %c0_i32 = arith.constant 0 : i32
    %c0_i32_0 = arith.constant 0 : i32
    %c0_i32_1 = arith.constant 0 : i32
    %c0_i32_2 = arith.constant 0 : i32
    return %arg0, %c0_i32, %c0_i32_0, %c0_i32_1 : i32, i32, i32, i32
  }
  func.func @transform_4(%arg0: i32) -> (i32, i32, i32, i32) {
    %c0_i32 = arith.constant 0 : i32
    %c0_i32_0 = arith.constant 0 : i32
    %c0_i32_1 = arith.constant 0 : i32
    %c0_i32_2 = arith.constant 0 : i32
    return %arg0, %c0_i32, %c0_i32_0, %c0_i32_1 : i32, i32, i32, i32
  }
  func.func @transform_5(%arg0: i32) -> (i32, i32, i32) {
    %c0_i32 = arith.constant 0 : i32
    %c0_i32_0 = arith.constant 0 : i32
    %c0_i32_1 = arith.constant 0 : i32
    return %arg0, %c0_i32, %c0_i32_0 : i32, i32, i32
  }
}

module attributes {stable_mosaic.version = 11 : i64} {
  func.func @_stage2_kernel(%arg0: i32, %arg1: memref<1x16x16x8xf32, #tpu.memory_space<vmem>>, %arg2: memref<1x8xf32, #tpu.memory_space<vmem>>, %arg3: memref<1x8xf32, #tpu.memory_space<vmem>>, %arg4: memref<3x12x8xbf16, #tpu.memory_space<vmem>>, %arg5: memref<5x20x8xbf16, #tpu.memory_space<vmem>>, %arg6: memref<1x16x16x16xf32, #tpu.memory_space<vmem>>, %arg7: memref<1x2x16xf32, #tpu.memory_space<vmem>>) attributes {dimension_semantics = [#tpu.dimension_semantics<parallel>], iteration_bounds = array<i64: 2>, scalar_prefetch = 0 : i64, scratch_operands = 0 : i64, tpu.core_type = #tpu.core_type<tc>, window_params = [{transform_indices = @transform_0, window_bounds = array<i64: 1, 16, 16, 8>}, {pipeline_mode = #tpu.pipeline_mode<synchronous>, transform_indices = @transform_1, window_bounds = array<i64: 1, 8>}, {pipeline_mode = #tpu.pipeline_mode<synchronous>, transform_indices = @transform_2, window_bounds = array<i64: 1, 8>}, {pipeline_mode = #tpu.pipeline_mode<synchronous>, transform_indices = @transform_3, window_bounds = array<i64: 3, 12, 8>}, {pipeline_mode = #tpu.pipeline_mode<synchronous>, transform_indices = @transform_4, window_bounds = array<i64: 5, 20, 8>}, {transform_indices = @transform_5, window_bounds = array<i64: 1, 16, 16, 16>}, {transform_indices = @transform_6, window_bounds = array<i64: 1, 2, 16>}]} {
    %c0 = arith.constant 0 : index
    %c0_0 = arith.constant 0 : index
    %0 = vector.load %arg2[%c0, %c0_0] : memref<1x8xf32, #tpu.memory_space<vmem>>, vector<1x8xf32>
    %1 = vector.shape_cast %0 : vector<1x8xf32> to vector<1x1x1x8xf32>
    %c0_1 = arith.constant 0 : index
    %c0_2 = arith.constant 0 : index
    %2 = vector.load %arg3[%c0_1, %c0_2] : memref<1x8xf32, #tpu.memory_space<vmem>>, vector<1x8xf32>
    %3 = vector.shape_cast %2 : vector<1x8xf32> to vector<1x1x1x8xf32>
    %c0_3 = arith.constant 0 : index
    %c0_4 = arith.constant 0 : index
    %c0_5 = arith.constant 0 : index
    %c0_6 = arith.constant 0 : index
    %4 = vector.load %arg1[%c0_3, %c0_4, %c0_5, %c0_6] : memref<1x16x16x8xf32, #tpu.memory_space<vmem>>, vector<1x16x16x8xf32>
    %5 = vector.broadcast %1 : vector<1x1x1x8xf32> to vector<1x16x16x8xf32>
    %6 = arith.mulf %4, %5 : vector<1x16x16x8xf32>
    %7 = vector.broadcast %3 : vector<1x1x1x8xf32> to vector<1x16x16x8xf32>
    %8 = arith.addf %6, %7 : vector<1x16x16x8xf32>
    %cst = arith.constant 0.000000e+00 : f32
    %9 = vector.broadcast %cst : f32 to vector<1x16x16x8xf32>
    %10 = arith.maximumf %8, %9 : vector<1x16x16x8xf32>
    %11 = arith.truncf %10 : vector<1x16x16x8xf32> to vector<1x16x16x8xbf16>
    %12 = vector.extract_strided_slice %11 {offsets = [0, 0, 0, 0], sizes = [1, 16, 16, 4], strides = [1, 1, 1, 1]} : vector<1x16x16x8xbf16> to vector<1x16x16x4xbf16>
    %cst_7 = arith.constant 0.000000e+00 : bf16
    %13 = vector.broadcast %cst_7 : bf16 to vector<1x1x16x4xbf16>
    %14 = tpu.concatenate %13, %12, %13 in 1 : vector<1x1x16x4xbf16>, vector<1x16x16x4xbf16>, vector<1x1x16x4xbf16> -> vector<1x18x16x4xbf16>
    %cst_8 = arith.constant 0.000000e+00 : bf16
    %15 = vector.broadcast %cst_8 : bf16 to vector<1x18x1x4xbf16>
    %16 = tpu.concatenate %15, %14, %15 in 2 : vector<1x18x1x4xbf16>, vector<1x18x16x4xbf16>, vector<1x18x1x4xbf16> -> vector<1x18x18x4xbf16>
    %cst_9 = arith.constant 0.000000e+00 : f32
    %17 = vector.broadcast %cst_9 : f32 to vector<256x8xf32>
    %18 = vector.extract_strided_slice %16 {offsets = [0, 0, 0, 0], sizes = [1, 16, 16, 4], strides = [1, 1, 1, 1]} : vector<1x18x18x4xbf16> to vector<1x16x16x4xbf16>
    %19 = vector.extract_strided_slice %16 {offsets = [0, 0, 1, 0], sizes = [1, 16, 16, 4], strides = [1, 1, 1, 1]} : vector<1x18x18x4xbf16> to vector<1x16x16x4xbf16>
    %20 = vector.extract_strided_slice %16 {offsets = [0, 0, 2, 0], sizes = [1, 16, 16, 4], strides = [1, 1, 1, 1]} : vector<1x18x18x4xbf16> to vector<1x16x16x4xbf16>
    %21 = tpu.concatenate %18, %19, %20 in 3 : vector<1x16x16x4xbf16>, vector<1x16x16x4xbf16>, vector<1x16x16x4xbf16> -> vector<1x16x16x12xbf16>
    %22 = vector.shape_cast %21 : vector<1x16x16x12xbf16> to vector<256x12xbf16>
    %c0_10 = arith.constant 0 : index
    %c0_11 = arith.constant 0 : index
    %c0_12 = arith.constant 0 : index
    %23 = vector.load %arg4[%c0_10, %c0_11, %c0_12] : memref<3x12x8xbf16, #tpu.memory_space<vmem>>, vector<1x12x8xbf16>
    %24 = vector.shape_cast %23 : vector<1x12x8xbf16> to vector<12x8xbf16>
    %cst_13 = arith.constant dense<0.000000e+00> : vector<256x8xf32>
    %25 = tpu.matmul %22, %24, %cst_13 {dimension_numbers = #tpu.dot_dimension_numbers<[1], [0], [0], [1], [0, 0, 1, 1], [], []>} : vector<256x12xbf16>, vector<12x8xbf16>, vector<256x8xf32> -> vector<256x8xf32>
    %26 = arith.addf %17, %25 : vector<256x8xf32>
    %27 = vector.extract_strided_slice %16 {offsets = [0, 1, 0, 0], sizes = [1, 16, 16, 4], strides = [1, 1, 1, 1]} : vector<1x18x18x4xbf16> to vector<1x16x16x4xbf16>
    %28 = vector.extract_strided_slice %16 {offsets = [0, 1, 1, 0], sizes = [1, 16, 16, 4], strides = [1, 1, 1, 1]} : vector<1x18x18x4xbf16> to vector<1x16x16x4xbf16>
    %29 = vector.extract_strided_slice %16 {offsets = [0, 1, 2, 0], sizes = [1, 16, 16, 4], strides = [1, 1, 1, 1]} : vector<1x18x18x4xbf16> to vector<1x16x16x4xbf16>
    %30 = tpu.concatenate %27, %28, %29 in 3 : vector<1x16x16x4xbf16>, vector<1x16x16x4xbf16>, vector<1x16x16x4xbf16> -> vector<1x16x16x12xbf16>
    %31 = vector.shape_cast %30 : vector<1x16x16x12xbf16> to vector<256x12xbf16>
    %c1 = arith.constant 1 : index
    %c0_14 = arith.constant 0 : index
    %c0_15 = arith.constant 0 : index
    %32 = vector.load %arg4[%c1, %c0_14, %c0_15] : memref<3x12x8xbf16, #tpu.memory_space<vmem>>, vector<1x12x8xbf16>
    %33 = vector.shape_cast %32 : vector<1x12x8xbf16> to vector<12x8xbf16>
    %cst_16 = arith.constant dense<0.000000e+00> : vector<256x8xf32>
    %34 = tpu.matmul %31, %33, %cst_16 {dimension_numbers = #tpu.dot_dimension_numbers<[1], [0], [0], [1], [0, 0, 1, 1], [], []>} : vector<256x12xbf16>, vector<12x8xbf16>, vector<256x8xf32> -> vector<256x8xf32>
    %35 = arith.addf %26, %34 : vector<256x8xf32>
    %36 = vector.extract_strided_slice %16 {offsets = [0, 2, 0, 0], sizes = [1, 16, 16, 4], strides = [1, 1, 1, 1]} : vector<1x18x18x4xbf16> to vector<1x16x16x4xbf16>
    %37 = vector.extract_strided_slice %16 {offsets = [0, 2, 1, 0], sizes = [1, 16, 16, 4], strides = [1, 1, 1, 1]} : vector<1x18x18x4xbf16> to vector<1x16x16x4xbf16>
    %38 = vector.extract_strided_slice %16 {offsets = [0, 2, 2, 0], sizes = [1, 16, 16, 4], strides = [1, 1, 1, 1]} : vector<1x18x18x4xbf16> to vector<1x16x16x4xbf16>
    %39 = tpu.concatenate %36, %37, %38 in 3 : vector<1x16x16x4xbf16>, vector<1x16x16x4xbf16>, vector<1x16x16x4xbf16> -> vector<1x16x16x12xbf16>
    %40 = vector.shape_cast %39 : vector<1x16x16x12xbf16> to vector<256x12xbf16>
    %c2 = arith.constant 2 : index
    %c0_17 = arith.constant 0 : index
    %c0_18 = arith.constant 0 : index
    %41 = vector.load %arg4[%c2, %c0_17, %c0_18] : memref<3x12x8xbf16, #tpu.memory_space<vmem>>, vector<1x12x8xbf16>
    %42 = vector.shape_cast %41 : vector<1x12x8xbf16> to vector<12x8xbf16>
    %cst_19 = arith.constant dense<0.000000e+00> : vector<256x8xf32>
    %43 = tpu.matmul %40, %42, %cst_19 {dimension_numbers = #tpu.dot_dimension_numbers<[1], [0], [0], [1], [0, 0, 1, 1], [], []>} : vector<256x12xbf16>, vector<12x8xbf16>, vector<256x8xf32> -> vector<256x8xf32>
    %44 = arith.addf %35, %43 : vector<256x8xf32>
    %45 = vector.extract_strided_slice %11 {offsets = [0, 0, 0, 4], sizes = [1, 16, 16, 4], strides = [1, 1, 1, 1]} : vector<1x16x16x8xbf16> to vector<1x16x16x4xbf16>
    %cst_20 = arith.constant 0.000000e+00 : bf16
    %46 = vector.broadcast %cst_20 : bf16 to vector<1x2x16x4xbf16>
    %47 = tpu.concatenate %46, %45, %46 in 1 : vector<1x2x16x4xbf16>, vector<1x16x16x4xbf16>, vector<1x2x16x4xbf16> -> vector<1x20x16x4xbf16>
    %cst_21 = arith.constant 0.000000e+00 : bf16
    %48 = vector.broadcast %cst_21 : bf16 to vector<1x20x2x4xbf16>
    %49 = tpu.concatenate %48, %47, %48 in 2 : vector<1x20x2x4xbf16>, vector<1x20x16x4xbf16>, vector<1x20x2x4xbf16> -> vector<1x20x20x4xbf16>
    %cst_22 = arith.constant 0.000000e+00 : f32
    %50 = vector.broadcast %cst_22 : f32 to vector<256x8xf32>
    %51 = vector.extract_strided_slice %49 {offsets = [0, 0, 0, 0], sizes = [1, 16, 16, 4], strides = [1, 1, 1, 1]} : vector<1x20x20x4xbf16> to vector<1x16x16x4xbf16>
    %52 = vector.extract_strided_slice %49 {offsets = [0, 0, 1, 0], sizes = [1, 16, 16, 4], strides = [1, 1, 1, 1]} : vector<1x20x20x4xbf16> to vector<1x16x16x4xbf16>
    %53 = vector.extract_strided_slice %49 {offsets = [0, 0, 2, 0], sizes = [1, 16, 16, 4], strides = [1, 1, 1, 1]} : vector<1x20x20x4xbf16> to vector<1x16x16x4xbf16>
    %54 = vector.extract_strided_slice %49 {offsets = [0, 0, 3, 0], sizes = [1, 16, 16, 4], strides = [1, 1, 1, 1]} : vector<1x20x20x4xbf16> to vector<1x16x16x4xbf16>
    %55 = vector.extract_strided_slice %49 {offsets = [0, 0, 4, 0], sizes = [1, 16, 16, 4], strides = [1, 1, 1, 1]} : vector<1x20x20x4xbf16> to vector<1x16x16x4xbf16>
    %56 = tpu.concatenate %51, %52, %53, %54, %55 in 3 : vector<1x16x16x4xbf16>, vector<1x16x16x4xbf16>, vector<1x16x16x4xbf16>, vector<1x16x16x4xbf16>, vector<1x16x16x4xbf16> -> vector<1x16x16x20xbf16>
    %57 = vector.shape_cast %56 : vector<1x16x16x20xbf16> to vector<256x20xbf16>
    %c0_23 = arith.constant 0 : index
    %c0_24 = arith.constant 0 : index
    %c0_25 = arith.constant 0 : index
    %58 = vector.load %arg5[%c0_23, %c0_24, %c0_25] : memref<5x20x8xbf16, #tpu.memory_space<vmem>>, vector<1x20x8xbf16>
    %59 = vector.shape_cast %58 : vector<1x20x8xbf16> to vector<20x8xbf16>
    %cst_26 = arith.constant dense<0.000000e+00> : vector<256x8xf32>
    %60 = tpu.matmul %57, %59, %cst_26 {dimension_numbers = #tpu.dot_dimension_numbers<[1], [0], [0], [1], [0, 0, 1, 1], [], []>} : vector<256x20xbf16>, vector<20x8xbf16>, vector<256x8xf32> -> vector<256x8xf32>
    %61 = arith.addf %50, %60 : vector<256x8xf32>
    %62 = vector.extract_strided_slice %49 {offsets = [0, 1, 0, 0], sizes = [1, 16, 16, 4], strides = [1, 1, 1, 1]} : vector<1x20x20x4xbf16> to vector<1x16x16x4xbf16>
    %63 = vector.extract_strided_slice %49 {offsets = [0, 1, 1, 0], sizes = [1, 16, 16, 4], strides = [1, 1, 1, 1]} : vector<1x20x20x4xbf16> to vector<1x16x16x4xbf16>
    %64 = vector.extract_strided_slice %49 {offsets = [0, 1, 2, 0], sizes = [1, 16, 16, 4], strides = [1, 1, 1, 1]} : vector<1x20x20x4xbf16> to vector<1x16x16x4xbf16>
    %65 = vector.extract_strided_slice %49 {offsets = [0, 1, 3, 0], sizes = [1, 16, 16, 4], strides = [1, 1, 1, 1]} : vector<1x20x20x4xbf16> to vector<1x16x16x4xbf16>
    %66 = vector.extract_strided_slice %49 {offsets = [0, 1, 4, 0], sizes = [1, 16, 16, 4], strides = [1, 1, 1, 1]} : vector<1x20x20x4xbf16> to vector<1x16x16x4xbf16>
    %67 = tpu.concatenate %62, %63, %64, %65, %66 in 3 : vector<1x16x16x4xbf16>, vector<1x16x16x4xbf16>, vector<1x16x16x4xbf16>, vector<1x16x16x4xbf16>, vector<1x16x16x4xbf16> -> vector<1x16x16x20xbf16>
    %68 = vector.shape_cast %67 : vector<1x16x16x20xbf16> to vector<256x20xbf16>
    %c1_27 = arith.constant 1 : index
    %c0_28 = arith.constant 0 : index
    %c0_29 = arith.constant 0 : index
    %69 = vector.load %arg5[%c1_27, %c0_28, %c0_29] : memref<5x20x8xbf16, #tpu.memory_space<vmem>>, vector<1x20x8xbf16>
    %70 = vector.shape_cast %69 : vector<1x20x8xbf16> to vector<20x8xbf16>
    %cst_30 = arith.constant dense<0.000000e+00> : vector<256x8xf32>
    %71 = tpu.matmul %68, %70, %cst_30 {dimension_numbers = #tpu.dot_dimension_numbers<[1], [0], [0], [1], [0, 0, 1, 1], [], []>} : vector<256x20xbf16>, vector<20x8xbf16>, vector<256x8xf32> -> vector<256x8xf32>
    %72 = arith.addf %61, %71 : vector<256x8xf32>
    %73 = vector.extract_strided_slice %49 {offsets = [0, 2, 0, 0], sizes = [1, 16, 16, 4], strides = [1, 1, 1, 1]} : vector<1x20x20x4xbf16> to vector<1x16x16x4xbf16>
    %74 = vector.extract_strided_slice %49 {offsets = [0, 2, 1, 0], sizes = [1, 16, 16, 4], strides = [1, 1, 1, 1]} : vector<1x20x20x4xbf16> to vector<1x16x16x4xbf16>
    %75 = vector.extract_strided_slice %49 {offsets = [0, 2, 2, 0], sizes = [1, 16, 16, 4], strides = [1, 1, 1, 1]} : vector<1x20x20x4xbf16> to vector<1x16x16x4xbf16>
    %76 = vector.extract_strided_slice %49 {offsets = [0, 2, 3, 0], sizes = [1, 16, 16, 4], strides = [1, 1, 1, 1]} : vector<1x20x20x4xbf16> to vector<1x16x16x4xbf16>
    %77 = vector.extract_strided_slice %49 {offsets = [0, 2, 4, 0], sizes = [1, 16, 16, 4], strides = [1, 1, 1, 1]} : vector<1x20x20x4xbf16> to vector<1x16x16x4xbf16>
    %78 = tpu.concatenate %73, %74, %75, %76, %77 in 3 : vector<1x16x16x4xbf16>, vector<1x16x16x4xbf16>, vector<1x16x16x4xbf16>, vector<1x16x16x4xbf16>, vector<1x16x16x4xbf16> -> vector<1x16x16x20xbf16>
    %79 = vector.shape_cast %78 : vector<1x16x16x20xbf16> to vector<256x20xbf16>
    %c2_31 = arith.constant 2 : index
    %c0_32 = arith.constant 0 : index
    %c0_33 = arith.constant 0 : index
    %80 = vector.load %arg5[%c2_31, %c0_32, %c0_33] : memref<5x20x8xbf16, #tpu.memory_space<vmem>>, vector<1x20x8xbf16>
    %81 = vector.shape_cast %80 : vector<1x20x8xbf16> to vector<20x8xbf16>
    %cst_34 = arith.constant dense<0.000000e+00> : vector<256x8xf32>
    %82 = tpu.matmul %79, %81, %cst_34 {dimension_numbers = #tpu.dot_dimension_numbers<[1], [0], [0], [1], [0, 0, 1, 1], [], []>} : vector<256x20xbf16>, vector<20x8xbf16>, vector<256x8xf32> -> vector<256x8xf32>
    %83 = arith.addf %72, %82 : vector<256x8xf32>
    %84 = vector.extract_strided_slice %49 {offsets = [0, 3, 0, 0], sizes = [1, 16, 16, 4], strides = [1, 1, 1, 1]} : vector<1x20x20x4xbf16> to vector<1x16x16x4xbf16>
    %85 = vector.extract_strided_slice %49 {offsets = [0, 3, 1, 0], sizes = [1, 16, 16, 4], strides = [1, 1, 1, 1]} : vector<1x20x20x4xbf16> to vector<1x16x16x4xbf16>
    %86 = vector.extract_strided_slice %49 {offsets = [0, 3, 2, 0], sizes = [1, 16, 16, 4], strides = [1, 1, 1, 1]} : vector<1x20x20x4xbf16> to vector<1x16x16x4xbf16>
    %87 = vector.extract_strided_slice %49 {offsets = [0, 3, 3, 0], sizes = [1, 16, 16, 4], strides = [1, 1, 1, 1]} : vector<1x20x20x4xbf16> to vector<1x16x16x4xbf16>
    %88 = vector.extract_strided_slice %49 {offsets = [0, 3, 4, 0], sizes = [1, 16, 16, 4], strides = [1, 1, 1, 1]} : vector<1x20x20x4xbf16> to vector<1x16x16x4xbf16>
    %89 = tpu.concatenate %84, %85, %86, %87, %88 in 3 : vector<1x16x16x4xbf16>, vector<1x16x16x4xbf16>, vector<1x16x16x4xbf16>, vector<1x16x16x4xbf16>, vector<1x16x16x4xbf16> -> vector<1x16x16x20xbf16>
    %90 = vector.shape_cast %89 : vector<1x16x16x20xbf16> to vector<256x20xbf16>
    %c3 = arith.constant 3 : index
    %c0_35 = arith.constant 0 : index
    %c0_36 = arith.constant 0 : index
    %91 = vector.load %arg5[%c3, %c0_35, %c0_36] : memref<5x20x8xbf16, #tpu.memory_space<vmem>>, vector<1x20x8xbf16>
    %92 = vector.shape_cast %91 : vector<1x20x8xbf16> to vector<20x8xbf16>
    %cst_37 = arith.constant dense<0.000000e+00> : vector<256x8xf32>
    %93 = tpu.matmul %90, %92, %cst_37 {dimension_numbers = #tpu.dot_dimension_numbers<[1], [0], [0], [1], [0, 0, 1, 1], [], []>} : vector<256x20xbf16>, vector<20x8xbf16>, vector<256x8xf32> -> vector<256x8xf32>
    %94 = arith.addf %83, %93 : vector<256x8xf32>
    %95 = vector.extract_strided_slice %49 {offsets = [0, 4, 0, 0], sizes = [1, 16, 16, 4], strides = [1, 1, 1, 1]} : vector<1x20x20x4xbf16> to vector<1x16x16x4xbf16>
    %96 = vector.extract_strided_slice %49 {offsets = [0, 4, 1, 0], sizes = [1, 16, 16, 4], strides = [1, 1, 1, 1]} : vector<1x20x20x4xbf16> to vector<1x16x16x4xbf16>
    %97 = vector.extract_strided_slice %49 {offsets = [0, 4, 2, 0], sizes = [1, 16, 16, 4], strides = [1, 1, 1, 1]} : vector<1x20x20x4xbf16> to vector<1x16x16x4xbf16>
    %98 = vector.extract_strided_slice %49 {offsets = [0, 4, 3, 0], sizes = [1, 16, 16, 4], strides = [1, 1, 1, 1]} : vector<1x20x20x4xbf16> to vector<1x16x16x4xbf16>
    %99 = vector.extract_strided_slice %49 {offsets = [0, 4, 4, 0], sizes = [1, 16, 16, 4], strides = [1, 1, 1, 1]} : vector<1x20x20x4xbf16> to vector<1x16x16x4xbf16>
    %100 = tpu.concatenate %95, %96, %97, %98, %99 in 3 : vector<1x16x16x4xbf16>, vector<1x16x16x4xbf16>, vector<1x16x16x4xbf16>, vector<1x16x16x4xbf16>, vector<1x16x16x4xbf16> -> vector<1x16x16x20xbf16>
    %101 = vector.shape_cast %100 : vector<1x16x16x20xbf16> to vector<256x20xbf16>
    %c4 = arith.constant 4 : index
    %c0_38 = arith.constant 0 : index
    %c0_39 = arith.constant 0 : index
    %102 = vector.load %arg5[%c4, %c0_38, %c0_39] : memref<5x20x8xbf16, #tpu.memory_space<vmem>>, vector<1x20x8xbf16>
    %103 = vector.shape_cast %102 : vector<1x20x8xbf16> to vector<20x8xbf16>
    %cst_40 = arith.constant dense<0.000000e+00> : vector<256x8xf32>
    %104 = tpu.matmul %101, %103, %cst_40 {dimension_numbers = #tpu.dot_dimension_numbers<[1], [0], [0], [1], [0, 0, 1, 1], [], []>} : vector<256x20xbf16>, vector<20x8xbf16>, vector<256x8xf32> -> vector<256x8xf32>
    %105 = arith.addf %94, %104 : vector<256x8xf32>
    %106 = tpu.concatenate %44, %105 in 1 : vector<256x8xf32>, vector<256x8xf32> -> vector<256x16xf32>
    %107 = vector.shape_cast %106 : vector<256x16xf32> to vector<1x16x16x16xf32>
    %c0_41 = arith.constant 0 : index
    %c0_42 = arith.constant 0 : index
    %c0_43 = arith.constant 0 : index
    %c0_44 = arith.constant 0 : index
    %108 = vector.load %arg6[%c0_41, %c0_42, %c0_43, %c0_44] : memref<1x16x16x16xf32, #tpu.memory_space<vmem>>, vector<1x16x16x16xf32>
    tpu.vector_store %arg6[%c0_41, %c0_42, %c0_43, %c0_44], %107 {strides = array<i32>} : memref<1x16x16x16xf32, #tpu.memory_space<vmem>>, vector<1x16x16x16xf32>,
    %cst_45 = arith.constant dense<0.000000e+00> : vector<8xf32>
    %109 = vector.multi_reduction <add>, %44, %cst_45 [0] : vector<256x8xf32> to vector<8xf32>
    %110 = vector.shape_cast %109 : vector<8xf32> to vector<1x8xf32>
    %cst_46 = arith.constant dense<0.000000e+00> : vector<8xf32>
    %111 = vector.multi_reduction <add>, %105, %cst_46 [0] : vector<256x8xf32> to vector<8xf32>
    %112 = vector.shape_cast %111 : vector<8xf32> to vector<1x8xf32>
    %113 = tpu.concatenate %110, %112 in 1 : vector<1x8xf32>, vector<1x8xf32> -> vector<1x16xf32>
    %114 = arith.mulf %44, %44 : vector<256x8xf32>
    %cst_47 = arith.constant dense<0.000000e+00> : vector<8xf32>
    %115 = vector.multi_reduction <add>, %114, %cst_47 [0] : vector<256x8xf32> to vector<8xf32>
    %116 = vector.shape_cast %115 : vector<8xf32> to vector<1x8xf32>
    %117 = arith.mulf %105, %105 : vector<256x8xf32>
    %cst_48 = arith.constant dense<0.000000e+00> : vector<8xf32>
    %118 = vector.multi_reduction <add>, %117, %cst_48 [0] : vector<256x8xf32> to vector<8xf32>
    %119 = vector.shape_cast %118 : vector<8xf32> to vector<1x8xf32>
    %120 = tpu.concatenate %116, %119 in 1 : vector<1x8xf32>, vector<1x8xf32> -> vector<1x16xf32>
    %121 = tpu.concatenate %113, %120 in 0 : vector<1x16xf32>, vector<1x16xf32> -> vector<2x16xf32>
    %122 = vector.shape_cast %121 : vector<2x16xf32> to vector<1x2x16xf32>
    %c0_49 = arith.constant 0 : index
    %c0_50 = arith.constant 0 : index
    %c0_51 = arith.constant 0 : index
    %123 = vector.load %arg7[%c0_49, %c0_50, %c0_51] : memref<1x2x16xf32, #tpu.memory_space<vmem>>, vector<1x2x16xf32>
    tpu.vector_store %arg7[%c0_49, %c0_50, %c0_51], %122 {strides = array<i32>} : memref<1x2x16xf32, #tpu.memory_space<vmem>>, vector<1x2x16xf32>,
    return
  }
  func.func @transform_0(%arg0: i32) -> (i32, i32, i32, i32) {
    %c0_i32 = arith.constant 0 : i32
    %c0_i32_0 = arith.constant 0 : i32
    %c0_i32_1 = arith.constant 0 : i32
    %c0_i32_2 = arith.constant 0 : i32
    return %arg0, %c0_i32, %c0_i32_0, %c0_i32_1 : i32, i32, i32, i32
  }
  func.func @transform_1(%arg0: i32) -> (i32, i32) {
    %c0_i32 = arith.constant 0 : i32
    %c0_i32_0 = arith.constant 0 : i32
    %c0_i32_1 = arith.constant 0 : i32
    return %c0_i32, %c0_i32_0 : i32, i32
  }
  func.func @transform_2(%arg0: i32) -> (i32, i32) {
    %c0_i32 = arith.constant 0 : i32
    %c0_i32_0 = arith.constant 0 : i32
    %c0_i32_1 = arith.constant 0 : i32
    return %c0_i32, %c0_i32_0 : i32, i32
  }
  func.func @transform_3(%arg0: i32) -> (i32, i32, i32) {
    %c0_i32 = arith.constant 0 : i32
    %c0_i32_0 = arith.constant 0 : i32
    %c0_i32_1 = arith.constant 0 : i32
    %c0_i32_2 = arith.constant 0 : i32
    return %c0_i32, %c0_i32_0, %c0_i32_1 : i32, i32, i32
  }
  func.func @transform_4(%arg0: i32) -> (i32, i32, i32) {
    %c0_i32 = arith.constant 0 : i32
    %c0_i32_0 = arith.constant 0 : i32
    %c0_i32_1 = arith.constant 0 : i32
    %c0_i32_2 = arith.constant 0 : i32
    return %c0_i32, %c0_i32_0, %c0_i32_1 : i32, i32, i32
  }
  func.func @transform_5(%arg0: i32) -> (i32, i32, i32, i32) {
    %c0_i32 = arith.constant 0 : i32
    %c0_i32_0 = arith.constant 0 : i32
    %c0_i32_1 = arith.constant 0 : i32
    %c0_i32_2 = arith.constant 0 : i32
    return %arg0, %c0_i32, %c0_i32_0, %c0_i32_1 : i32, i32, i32, i32
  }
  func.func @transform_6(%arg0: i32) -> (i32, i32, i32) {
    %c0_i32 = arith.constant 0 : i32
    %c0_i32_0 = arith.constant 0 : i32
    %c0_i32_1 = arith.constant 0 : i32
    return %arg0, %c0_i32, %c0_i32_0 : i32, i32, i32
  }
}

module attributes {stable_mosaic.version = 11 : i64} {
  func.func @_finalize_kernel(%arg0: i32, %arg1: memref<1x16x16x16xf32, #tpu.memory_space<vmem>>, %arg2: memref<1x16x16x16xf32, #tpu.memory_space<vmem>>, %arg3: memref<1x32xf32, #tpu.memory_space<vmem>>, %arg4: memref<1x32xf32, #tpu.memory_space<vmem>>, %arg5: memref<1x16x16x32xf32, #tpu.memory_space<vmem>>) attributes {dimension_semantics = [#tpu.dimension_semantics<parallel>], iteration_bounds = array<i64: 2>, scalar_prefetch = 0 : i64, scratch_operands = 0 : i64, tpu.core_type = #tpu.core_type<tc>, window_params = [{transform_indices = @transform_0, window_bounds = array<i64: 1, 16, 16, 16>}, {transform_indices = @transform_1, window_bounds = array<i64: 1, 16, 16, 16>}, {pipeline_mode = #tpu.pipeline_mode<synchronous>, transform_indices = @transform_2, window_bounds = array<i64: 1, 32>}, {pipeline_mode = #tpu.pipeline_mode<synchronous>, transform_indices = @transform_3, window_bounds = array<i64: 1, 32>}, {transform_indices = @transform_4, window_bounds = array<i64: 1, 16, 16, 32>}]} {
    %c0 = arith.constant 0 : index
    %c0_0 = arith.constant 0 : index
    %c0_1 = arith.constant 0 : index
    %c0_2 = arith.constant 0 : index
    %0 = vector.load %arg1[%c0, %c0_0, %c0_1, %c0_2] : memref<1x16x16x16xf32, #tpu.memory_space<vmem>>, vector<1x16x16x16xf32>
    %1 = vector.extract_strided_slice %0 {offsets = [0, 0, 0, 0], sizes = [1, 16, 16, 8], strides = [1, 1, 1, 1]} : vector<1x16x16x16xf32> to vector<1x16x16x8xf32>
    %c0_3 = arith.constant 0 : index
    %c0_4 = arith.constant 0 : index
    %c0_5 = arith.constant 0 : index
    %c0_6 = arith.constant 0 : index
    %2 = vector.load %arg2[%c0_3, %c0_4, %c0_5, %c0_6] : memref<1x16x16x16xf32, #tpu.memory_space<vmem>>, vector<1x16x16x16xf32>
    %3 = vector.extract_strided_slice %0 {offsets = [0, 0, 0, 8], sizes = [1, 16, 16, 8], strides = [1, 1, 1, 1]} : vector<1x16x16x16xf32> to vector<1x16x16x8xf32>
    %4 = tpu.concatenate %1, %2, %3 in 3 : vector<1x16x16x8xf32>, vector<1x16x16x16xf32>, vector<1x16x16x8xf32> -> vector<1x16x16x32xf32>
    %c0_7 = arith.constant 0 : index
    %c0_8 = arith.constant 0 : index
    %5 = vector.load %arg3[%c0_7, %c0_8] : memref<1x32xf32, #tpu.memory_space<vmem>>, vector<1x32xf32>
    %6 = vector.shape_cast %5 : vector<1x32xf32> to vector<1x1x1x32xf32>
    %c0_9 = arith.constant 0 : index
    %c0_10 = arith.constant 0 : index
    %7 = vector.load %arg4[%c0_9, %c0_10] : memref<1x32xf32, #tpu.memory_space<vmem>>, vector<1x32xf32>
    %8 = vector.shape_cast %7 : vector<1x32xf32> to vector<1x1x1x32xf32>
    %9 = vector.broadcast %6 : vector<1x1x1x32xf32> to vector<1x16x16x32xf32>
    %10 = arith.mulf %4, %9 : vector<1x16x16x32xf32>
    %11 = vector.broadcast %8 : vector<1x1x1x32xf32> to vector<1x16x16x32xf32>
    %12 = arith.addf %10, %11 : vector<1x16x16x32xf32>
    %cst = arith.constant 0.000000e+00 : f32
    %13 = vector.broadcast %cst : f32 to vector<1x16x16x32xf32>
    %14 = arith.maximumf %12, %13 : vector<1x16x16x32xf32>
    %c0_11 = arith.constant 0 : index
    %c0_12 = arith.constant 0 : index
    %c0_13 = arith.constant 0 : index
    %c0_14 = arith.constant 0 : index
    %15 = vector.load %arg5[%c0_11, %c0_12, %c0_13, %c0_14] : memref<1x16x16x32xf32, #tpu.memory_space<vmem>>, vector<1x16x16x32xf32>
    tpu.vector_store %arg5[%c0_11, %c0_12, %c0_13, %c0_14], %14 {strides = array<i32>} : memref<1x16x16x32xf32, #tpu.memory_space<vmem>>, vector<1x16x16x32xf32>,
    return
  }
  func.func @transform_0(%arg0: i32) -> (i32, i32, i32, i32) {
    %c0_i32 = arith.constant 0 : i32
    %c0_i32_0 = arith.constant 0 : i32
    %c0_i32_1 = arith.constant 0 : i32
    %c0_i32_2 = arith.constant 0 : i32
    return %arg0, %c0_i32, %c0_i32_0, %c0_i32_1 : i32, i32, i32, i32
  }
  func.func @transform_1(%arg0: i32) -> (i32, i32, i32, i32) {
    %c0_i32 = arith.constant 0 : i32
    %c0_i32_0 = arith.constant 0 : i32
    %c0_i32_1 = arith.constant 0 : i32
    %c0_i32_2 = arith.constant 0 : i32
    return %arg0, %c0_i32, %c0_i32_0, %c0_i32_1 : i32, i32, i32, i32
  }
  func.func @transform_2(%arg0: i32) -> (i32, i32) {
    %c0_i32 = arith.constant 0 : i32
    %c0_i32_0 = arith.constant 0 : i32
    %c0_i32_1 = arith.constant 0 : i32
    return %c0_i32, %c0_i32_0 : i32, i32
  }
  func.func @transform_3(%arg0: i32) -> (i32, i32) {
    %c0_i32 = arith.constant 0 : i32
    %c0_i32_0 = arith.constant 0 : i32
    %c0_i32_1 = arith.constant 0 : i32
    return %c0_i32, %c0_i32_0 : i32, i32
  }
  func.func @transform_4(%arg0: i32) -> (i32, i32, i32, i32) {
    %c0_i32 = arith.constant 0 : i32
    %c0_i32_0 = arith.constant 0 : i32
    %c0_i32_1 = arith.constant 0 : i32
    %c0_i32_2 = arith.constant 0 : i32
    return %arg0, %c0_i32, %c0_i32_0, %c0_i32_1 : i32, i32, i32, i32
  }
}

</mosaic_0001>

<bundles_post_ra>
// kernel: inception_block.5
= control target key start
LH: loop header
LB: loop body
LE: loop exit
PB: predicated region body
PF: predicated region fallthrough
CT: control target
= control target key end

     0   :  { %9 = vsyncpa [#allocation3], 0  ;;  %s1644_s0 = inlined_call_operand.vmem [shape: f32[2,16,16,16], index: 0, kind: input, shape index: {}]   ;;  %s1645_s1 = inlined_call_operand.vmem [shape: f32[2,16,16,16], index: 1, kind: input, shape index: {}]   ;;  %s1646_s2 = inlined_call_operand.vmem [shape: f32[1,32], index: 2, kind: input, shape index: {}]   ;;  %s1647_s3 = inlined_call_operand.vmem [shape: f32[1,32], index: 3, kind: input, shape index: {}]   ;;  %s1648_s4 = inlined_call_operand.hbm [shape: f32[2,16,16,32], index: 4, kind: output, shape index: {}]  }
   0x1   :  { %11 = vsyncpa [#allocation3 + $0x1], 0  ;;  %s987_s15 = smov 0   ;;  %s989_s16 = smov 0  }
   0x2   :  { %s991_s17 = smov 0   ;;  %s993_s18 = smov 0  }
   0x3 LB: > { %s1008_s19 = sadd.s32 4294967295, %s956_s18   ;;  %s833_s20 = sadd.s32 4294967294, %s956_s18   ;;  %s956_s18 = sphi %s993_s18, %s1679_s18   ;;  %s952_s17 = sphi %s991_s17, %s1678_s17   ;;  %s948_s16 = sphi %s989_s16, %s1677_s16   ;;  %s944_s15 = sphi %s987_s15, %s1676_s15  }
   0x4   : > { %s1012_s21 = sadd.s32 1, %s956_s18   ;;  %s118_s22 = sadd.s32 1, %s952_s17 }
   0x5   : > { %s115_s23 = ssub.s32 %s956_s18, %s1012_s21  ;;  %p128_p0 = scmp.ne.s32.totalorder %s952_s17, %s948_s16 }
   0x6   : > { %p116_p1 = scmp.eq.s32.totalorder %s115_s23, 0  ;;  %p129_p2 = scmp.eq.s32.totalorder %s1008_s19, 1 }
   0x7   : > { %p134_p3 = scmp.ne.s32.totalorder %s948_s16, %s944_s15  ;;  %p135_p4 = scmp.eq.s32.totalorder %s833_s20, 1 }
   0x8   : > { %s1023_s24 = scalar_select %p116_p1, %s952_s17, %s118_s22  }
   0x9   : > { %p1025_p5 = por %p129_p2, %p128_p0  ;;  %p1029_p6 = por %p135_p4, %p134_p3 }
   0xa   : > { %p836_p7 = scmp.ge.s32.totalorder %s956_s18, 1  ;;  %p175_p8 = scmp.lt.s32.totalorder %s956_s18, 3 }
   0xc   : > { %p176_p9 = pnand %p836_p7, %p175_p8 }
   0xe   : > { %179 = sbr.rel (%p176_p9) target bundleno = 289 (0x121), region = 36 }
  0x15   : > { %p206_p10 = scmp.lt.s32.totalorder %s1008_s19, 1  ;;  %s958_s6 = smov 8   ;;  %vm536_vm0 = vcmask 64512   ;;  %vm569_vm1 = vcmask 195584   ;;  %vm712_vm2 = vcmask 261120  }
  0x16   : > { %s959_s10 = smov 16   ;;  %s203_s13 = sand.u32 1, %s948_s16  }
  0x17   : > { %s1037_s27 = scalar_select %p206_p10, %s1008_s19, 1 }
  0x18   : > { %s837_s22 = sshll.u32 %s203_s13, 8  ;;  %s960_s8 = smov [#allocation2]  }
  0x19   : > { %s849_s28 = sshll.u32 %s1037_s27, 8  ;;  %s1361_s23 = scalar_lea.vmem [#allocation2], %s837_s22 }
  0x1a   : > { %s1045_s5 = scalar_lea.vmem %s1645_s1, %s849_s28  ;;  %s1114_s9 = scalar_lea.vmem %s1644_s0, %s849_s28 }
  0x1b   : > { %v250_v0 = vld [vmem:[%s1045_s5 + $0x10] sm:$0xff]  ;;  %v248_v1 = vld [vmem:[%s1045_s5] sm:$0xff]  ;;  %v251_v2 = vld [vmem:[%s1045_s5 + $0x18] sm:$0xff]  ;;  %s851_s27 = sshll.u32 %s1008_s19, 12  ;;  %s759_s28 = sshll.u32 %s1361_s23, 4  ;;  %s1594_s28 = int_to_ptr.vmem [resolvable:$true] %s759_s28 }
  0x1c   : > { %316 = vrot.lane.b32.xlu1 %v250_v0, %s958_s6  ;;  %312 = vrot.lane.b32.xlu0 %v248_v1, %s958_s6  ;;  %v249_v3 = vld [vmem:[%s1045_s5 + $0x8] sm:$0xff]  ;;  %v252_v5 = vld [vmem:[%s1045_s5 + $0x20] sm:$0xff]  ;;  %s1602_s19 = scalar_lea.sflag [#allocation3], %s203_s13  ;;  %s894_s7 = scalar_lea.vmem %s1594_s28, 4096 }
  0x1d   : > { %v253_v4 = vld [vmem:[%s1045_s5 + $0x28] sm:$0xff]  ;;  %v255_v6 = vld [vmem:[%s1045_s5 + $0x38] sm:$0xff]  ;;  %v254_v7 = vld [vmem:[%s1045_s5 + $0x30] sm:$0xff]  ;;  %p895_p11 = scmp.ne.s32.totalorder %s1594_s28, %s894_s7 }
  0x1e   : > { %v257_v8 = vld [vmem:[%s1045_s5 + $0x48] sm:$0xff]  ;;  %v256_v9 = vld [vmem:[%s1045_s5 + $0x40] sm:$0xff]  ;;  %v259_v10 = vld [vmem:[%s1045_s5 + $0x58] sm:$0xff] }
  0x1f   : > { %v258_v11 = vld [vmem:[%s1045_s5 + $0x50] sm:$0xff]  ;;  %v261_v12 = vld [vmem:[%s1045_s5 + $0x68] sm:$0xff]  ;;  %v260_v13 = vld [vmem:[%s1045_s5 + $0x60] sm:$0xff]  ;;  %p896_p12 = pnand %p895_p11, %p1025_p5 }
  0x20   : > { %318 = vrot.lane.b32.xlu1 %v251_v2, %s958_s6  ;;  %314 = vrot.lane.b32.xlu0 %v249_v3, %s958_s6  ;;  %v263_v14 = vld [vmem:[%s1045_s5 + $0x78] sm:$0xff]  ;;  %v262_v15 = vld [vmem:[%s1045_s5 + $0x70] sm:$0xff] }
  0x21   : > { %v265_v16 = vld [vmem:[%s1045_s5 + $0x88] sm:$0xff]  ;;  %v264_v17 = vld [vmem:[%s1045_s5 + $0x80] sm:$0xff]  ;;  %v267_v18 = vld [vmem:[%s1045_s5 + $0x98] sm:$0xff]  ;;  %p897_p13 = pneg %p896_p12 }
  0x22   : > { %v266_v19 = vld [vmem:[%s1045_s5 + $0x90] sm:$0xff]  ;;  %v269_v20 = vld [vmem:[%s1045_s5 + $0xa8] sm:$0xff]  ;;  %v268_v21 = vld [vmem:[%s1045_s5 + $0xa0] sm:$0xff] }
  0x23   : > { %v271_v22 = vld [vmem:[%s1045_s5 + $0xb8] sm:$0xff]  ;;  %v270_v23 = vld [vmem:[%s1045_s5 + $0xb0] sm:$0xff]  ;;  %v273_v24 = vld [vmem:[%s1045_s5 + $0xc8] sm:$0xff] }
  0x24   : > { %322 = vrot.lane.b32.xlu1 %v253_v4, %s958_s6  ;;  %320 = vrot.lane.b32.xlu0 %v252_v5, %s958_s6  ;;  %v272_v25 = vld [vmem:[%s1045_s5 + $0xc0] sm:$0xff]  ;;  %v275_v26 = vld [vmem:[%s1045_s5 + $0xd8] sm:$0xff] }
  0x25   : > { %v274_v27 = vld [vmem:[%s1045_s5 + $0xd0] sm:$0xff]  ;;  %v277_v28 = vld [vmem:[%s1045_s5 + $0xe8] sm:$0xff]  ;;  %v276_v29 = vld [vmem:[%s1045_s5 + $0xe0] sm:$0xff] }
  0x26   : > { %v279_v30 = vld [vmem:[%s1045_s5 + $0xf8] sm:$0xff]  ;;  %v278_v31 = vld [vmem:[%s1045_s5 + $0xf0] sm:$0xff]  ;;  %v1119_v32 = vld [vmem:[%s1114_s9 + $0x8] sm:$0xff]  ;;  %s1592_s5 = scalar_lea.hbm %s1648_s4, %s851_s27 }
  0x27   : > { %v1122_v33 = vld [vmem:[%s1114_s9] sm:$0xff]  ;;  %v1129_v34 = vld [vmem:[%s1114_s9 + $0x18] sm:$0xff]  ;;  %v218_v35 = vld [vmem:[%s1114_s9 + $0x10] sm:$0xff] }
  0x28   : > { %326 = vrot.lane.b32.xlu1 %v255_v6, %s958_s6  ;;  %324 = vrot.lane.b32.xlu0 %v254_v7, %s958_s6  ;;  %v1136_v36 = vld [vmem:[%s1114_s9 + $0x28] sm:$0xff]  ;;  %v1139_v37 = vld [vmem:[%s1114_s9 + $0x20] sm:$0xff] }
  0x29   : > { %v1146_v38 = vld [vmem:[%s1114_s9 + $0x38] sm:$0xff]  ;;  %v1149_v39 = vld [vmem:[%s1114_s9 + $0x30] sm:$0xff]  ;;  %v1156_v40 = vld [vmem:[%s1114_s9 + $0x48] sm:$0xff] }
  0x2a   : > { %v1159_v41 = vld [vmem:[%s1114_s9 + $0x40] sm:$0xff]  ;;  %v1166_v42 = vld [vmem:[%s1114_s9 + $0x58] sm:$0xff]  ;;  %v1169_v43 = vld [vmem:[%s1114_s9 + $0x50] sm:$0xff] }
  0x2b   : > { %v1176_v44 = vld [vmem:[%s1114_s9 + $0x68] sm:$0xff]  ;;  %v1179_v45 = vld [vmem:[%s1114_s9 + $0x60] sm:$0xff]  ;;  %v1186_v46 = vld [vmem:[%s1114_s9 + $0x78] sm:$0xff] }
  0x2c   : > { %330 = vrot.lane.b32.xlu1 %v257_v8, %s958_s6  ;;  %328 = vrot.lane.b32.xlu0 %v256_v9, %s958_s6  ;;  %v1189_v47 = vld [vmem:[%s1114_s9 + $0x70] sm:$0xff]  ;;  %v1196_v48 = vld [vmem:[%s1114_s9 + $0x88] sm:$0xff] }
  0x2d   : > { %v1199_v49 = vld [vmem:[%s1114_s9 + $0x80] sm:$0xff]  ;;  %v1206_v50 = vld [vmem:[%s1114_s9 + $0x98] sm:$0xff]  ;;  %v1209_v51 = vld [vmem:[%s1114_s9 + $0x90] sm:$0xff] }
  0x2e   : > { %v1216_v52 = vld [vmem:[%s1114_s9 + $0xa8] sm:$0xff]  ;;  %v1219_v53 = vld [vmem:[%s1114_s9 + $0xa0] sm:$0xff]  ;;  %v1226_v54 = vld [vmem:[%s1114_s9 + $0xb8] sm:$0xff] }
  0x2f   : > { %v1229_v55 = vld [vmem:[%s1114_s9 + $0xb0] sm:$0xff]  ;;  %v1236_v56 = vld [vmem:[%s1114_s9 + $0xc8] sm:$0xff]  ;;  %v1239_v57 = vld [vmem:[%s1114_s9 + $0xc0] sm:$0xff] }
  0x30   : > { %334 = vrot.lane.b32.xlu1 %v259_v10, %s958_s6  ;;  %332 = vrot.lane.b32.xlu0 %v258_v11, %s958_s6  ;;  %v1246_v58 = vld [vmem:[%s1114_s9 + $0xd8] sm:$0xff]  ;;  %v1249_v59 = vld [vmem:[%s1114_s9 + $0xd0] sm:$0xff] }
  0x31   : > { %1656 = vst [vmem:[#allocation5_spill] sm:$0xff] %v1249_v59  ;;  %v1257_v63 = vld [vmem:[%s1114_s9 + $0xe8] sm:$0xff]  ;;  %v1260_v0 = vld [vmem:[%s1114_s9 + $0xe0] sm:$0xff]  ;;  %v1267_v3 = vld [vmem:[%s1114_s9 + $0xf8] sm:$0xff] }
  0x32   : > { %1657 = vst [vmem:[#allocation6_spill] sm:$0xff] %v1257_v63  ;;  %1658 = vst [vmem:[#allocation7_spill] sm:$0xff] %v1260_v0  ;;  %v1270_v4 = vld [vmem:[%s1114_s9 + $0xf0] sm:$0xff]  ;;  %s898_s9 = sshll.u32 %s960_s8, 4  ;;  %s899_s9 = int_to_ptr.vmem [resolvable:$false] %s898_s9 }
  0x33   : > { %1659 = vst [vmem:[#allocation8_spill] sm:$0xff] %v1267_v3  ;;  %1660 = vst [vmem:[#allocation9_spill] sm:$0xff] %v1270_v4  ;;  %p901_p0 = scmp.lt.s32.totalorder %s1594_s28, %s899_s9 }
  0x34   : > { %338 = vrot.lane.b32.xlu1 %v261_v12, %s958_s6  ;;  %336 = vrot.lane.b32.xlu0 %v260_v13, %s958_s6 }
  0x38   : > { %342 = vrot.lane.b32.xlu1 %v263_v14, %s958_s6  ;;  %340 = vrot.lane.b32.xlu0 %v262_v15, %s958_s6 }
  0x3c   : > { %346 = vrot.lane.b32.xlu1 %v265_v16, %s958_s6  ;;  %344 = vrot.lane.b32.xlu0 %v264_v17, %s958_s6 }
  0x40   : > { %350 = vrot.lane.b32.xlu1 %v267_v18, %s958_s6  ;;  %348 = vrot.lane.b32.xlu0 %v266_v19, %s958_s6 }
  0x44   : > { %354 = vrot.lane.b32.xlu1 %v269_v20, %s958_s6  ;;  %352 = vrot.lane.b32.xlu0 %v268_v21, %s958_s6 }
  0x48   : > { %358 = vrot.lane.b32.xlu1 %v271_v22, %s958_s6  ;;  %356 = vrot.lane.b32.xlu0 %v270_v23, %s958_s6 }
  0x4c   : > { %362 = vrot.lane.b32.xlu1 %v273_v24, %s958_s6  ;;  %360 = vrot.lane.b32.xlu0 %v272_v25, %s958_s6 }
  0x50   : > { %366 = vrot.lane.b32.xlu1 %v275_v26, %s958_s6  ;;  %364 = vrot.lane.b32.xlu0 %v274_v27, %s958_s6 }
  0x54   : > { %370 = vrot.lane.b32.xlu1 %v277_v28, %s958_s6  ;;  %368 = vrot.lane.b32.xlu0 %v276_v29, %s958_s6 }
  0x58   : > { %374 = vrot.lane.b32.xlu1 %v279_v30, %s958_s6  ;;  %372 = vrot.lane.b32.xlu0 %v278_v31, %s958_s6 }
  0x5c   : > { %442 = vrot.lane.b32.xlu1 %v1119_v32, %s959_s10  ;;  %440 = vrot.lane.b32.xlu0 %v1122_v33, %s959_s10 }
  0x60   : > { %446 = vrot.lane.b32.xlu1 %v1129_v34, %s959_s10  ;;  %444 = vrot.lane.b32.xlu0 %v218_v35, %s959_s10 }
  0x64   : > { %450 = vrot.lane.b32.xlu1 %v1136_v36, %s959_s10  ;;  %448 = vrot.lane.b32.xlu0 %v1139_v37, %s959_s10 }
  0x68   : > { %454 = vrot.lane.b32.xlu1 %v1146_v38, %s959_s10  ;;  %452 = vrot.lane.b32.xlu0 %v1149_v39, %s959_s10 }
  0x6c   : > { %458 = vrot.lane.b32.xlu1 %v1156_v40, %s959_s10  ;;  %456 = vrot.lane.b32.xlu0 %v1159_v41, %s959_s10 }
  0x70   : > { %462 = vrot.lane.b32.xlu1 %v1166_v42, %s959_s10  ;;  %460 = vrot.lane.b32.xlu0 %v1169_v43, %s959_s10 }
  0x74   : > { %466 = vrot.lane.b32.xlu1 %v1176_v44, %s959_s10  ;;  %464 = vrot.lane.b32.xlu0 %v1179_v45, %s959_s10 }
  0x78   : > { %470 = vrot.lane.b32.xlu1 %v1186_v46, %s959_s10  ;;  %468 = vrot.lane.b32.xlu0 %v1189_v47, %s959_s10 }
  0x7c   : > { %474 = vrot.lane.b32.xlu1 %v1196_v48, %s959_s10  ;;  %472 = vrot.lane.b32.xlu0 %v1199_v49, %s959_s10 }
  0x80   : > { %478 = vrot.lane.b32.xlu1 %v1206_v50, %s959_s10  ;;  %476 = vrot.lane.b32.xlu0 %v1209_v51, %s959_s10 }
  0x84   : > { %482 = vrot.lane.b32.xlu1 %v1216_v52, %s959_s10  ;;  %480 = vrot.lane.b32.xlu0 %v1219_v53, %s959_s10 }
  0x88   : > { %486 = vrot.lane.b32.xlu1 %v1226_v54, %s959_s10  ;;  %484 = vrot.lane.b32.xlu0 %v1229_v55, %s959_s10 }
  0x8c   : > { %490 = vrot.lane.b32.xlu1 %v1236_v56, %s959_s10  ;;  %488 = vrot.lane.b32.xlu0 %v1239_v57, %s959_s10 }
  0x8e   : > { %v317_v60 = vpop.permute.xlu1 %316  ;;  %v313_v61 = vpop.permute.xlu0 %312 }
  0x8f   : > { %v539_v62 = vsel %vm536_vm0, %v218_v35, %v317_v60  ;;  %v1331_v60 = vld [vmem:[%s1646_s2] ss:$0 sm:$0xff] }
  0x90   : > { %494 = vrot.lane.b32.xlu1 %v1246_v58, %s959_s10  ;;  %492 = vrot.lane.b32.xlu0 %v1249_v59, %s959_s10 }
  0x92   : > { %v319_v1 = vpop.permute.xlu1 %318  ;;  %v315_v2 = vpop.permute.xlu0 %314 }
  0x94   : > { %498 = vrot.lane.b32.xlu1 %v1257_v63, %s959_s10  ;;  %496 = vrot.lane.b32.xlu0 %v1260_v0, %s959_s10 }
  0x96   : > { %v323_v5 = vpop.permute.xlu1 %322  ;;  %v321_v6 = vpop.permute.xlu0 %320 }
  0x98   : > { %502 = vrot.lane.b32.xlu1 %v1267_v3, %s959_s10  ;;  %500 = vrot.lane.b32.xlu0 %v1270_v4, %s959_s10  ;;  %v537_v4 = vsel %vm536_vm0, %v1122_v33, %v313_v61  ;;  %v538_v3 = vsel %vm536_vm0, %v1119_v32, %v315_v2  ;;  %v540_v32 = vsel %vm536_vm0, %v1129_v34, %v319_v1  ;;  %s900_s10 = scalar_lea.vmem %s899_s9, 8192 }
  0x99   : > { %v542_v34 = vsel %vm536_vm0, %v1136_v36, %v323_v5  ;;  %v541_v1 = vsel %vm536_vm0, %v1139_v37, %v321_v6  ;;  %p902_p1 = scmp.lt.s32.totalorder %s900_s10, %s894_s7 }
  0x9a   : > { %v1276_v7 = vpop.permute.xlu1 %326  ;;  %v1278_v8 = vpop.permute.xlu0 %324 }
  0x9b   : > { %p903_p2 = por %p902_p1, %p901_p0 }
  0x9d   : > { %p904_p3 = pnand %p903_p2, %p897_p13 }
  0x9e   : > { %v1280_v9 = vpop.permute.xlu1 %330  ;;  %v1282_v10 = vpop.permute.xlu0 %328 }
  0xa2   : > { %v1284_v11 = vpop.permute.xlu1 %334  ;;  %v1286_v12 = vpop.permute.xlu0 %332 }
  0xa6   : > { %v1288_v13 = vpop.permute.xlu1 %338  ;;  %v1290_v14 = vpop.permute.xlu0 %336 }
  0xaa   : > { %v1292_v15 = vpop.permute.xlu1 %342  ;;  %v1294_v16 = vpop.permute.xlu0 %340 }
  0xae   : > { %v1296_v17 = vpop.permute.xlu1 %346  ;;  %v1298_v18 = vpop.permute.xlu0 %344 }
  0xb2   : > { %v1300_v19 = vpop.permute.xlu1 %350  ;;  %v1302_v20 = vpop.permute.xlu0 %348 }
  0xb6   : > { %v1304_v21 = vpop.permute.xlu1 %354  ;;  %v1306_v22 = vpop.permute.xlu0 %352 }
  0xba   : > { %v1308_v23 = vpop.permute.xlu1 %358  ;;  %v1310_v24 = vpop.permute.xlu0 %356 }
  0xbe   : > { %v1312_v25 = vpop.permute.xlu1 %362  ;;  %v1314_v26 = vpop.permute.xlu0 %360 }
  0xc2   : > { %v1316_v27 = vpop.permute.xlu1 %366  ;;  %v1318_v28 = vpop.permute.xlu0 %364 }
  0xc3   : > { %1661 = vst [vmem:[#allocation10_spill] sm:$0xff] %v1318_v28 }
  0xc6   : > { %v1320_v29 = vpop.permute.xlu1 %370  ;;  %v1322_v30 = vpop.permute.xlu0 %368 }
  0xc7   : > { %1662 = vst [vmem:[#allocation11_spill] sm:$0xff] %v1320_v29  ;;  %1663 = vst [vmem:[#allocation12_spill] sm:$0xff] %v1322_v30 }
  0xca   : > { %v1324_v31 = vpop.permute.xlu1 %374  ;;  %v1326_v35 = vpop.permute.xlu0 %372 }
  0xcb   : > { %1664 = vst [vmem:[#allocation13_spill] sm:$0xff] %v1324_v31  ;;  %1665 = vst [vmem:[#allocation14_spill] sm:$0xff] %v1326_v35  ;;  %v1341_v31 = vld [vmem:[%s1647_s3] ss:$0 sm:$0xff] }
  0xce   : > { %v443_v0 = vpop.permute.xlu1 %442  ;;  %v441_v63 = vpop.permute.xlu0 %440 }
  0xcf   : > { %v571_v35 = vsel %vm569_vm1, %v538_v3, %v443_v0  ;;  %v570_v30 = vsel %vm569_vm1, %v537_v4, %v441_v63 }
  0xd0   : > { %v611_v29 = vmul.f32 %v1331_v60, %v571_v35  ;;  %v610_v33 = vmul.f32 %v1331_v60, %v570_v30 }
  0xd2   : > { %v649_v61 = vadd.f32 %v1341_v31, %v611_v29  ;;  %v648_v2 = vadd.f32 %v1341_v31, %v610_v33  ;;  %v447_v59 = vpop.permute.xlu1 %446  ;;  %v445_v28 = vpop.permute.xlu0 %444 }
  0xd3   : > { %v573_v0 = vsel %vm569_vm1, %v540_v32, %v447_v59  ;;  %v572_v63 = vsel %vm569_vm1, %v539_v62, %v445_v28 }
  0xd4   : > { %v681_v3 = vmax.f32 %v649_v61, 0.0  ;;  %v680_v4 = vmax.f32 %v648_v2, 0.0  ;;  %v613_v35 = vmul.f32 %v1331_v60, %v573_v0  ;;  %v612_v30 = vmul.f32 %v1331_v60, %v572_v63 }
  0xd5   : > { %v544_v61 = vsel %vm536_vm0, %v1146_v38, %v1276_v7  ;;  %v543_v2 = vsel %vm536_vm0, %v1149_v39, %v1278_v8  ;;  %v546_v8 = vsel %vm536_vm0, %v1156_v40, %v1280_v9 }
  0xd6   : > { %714 = vst.msk [vmem:[%s1361_s23 + $0x8] sm:$0xff] %vm712_vm2, %v681_v3  ;;  %713 = vst.msk [vmem:[%s1361_s23] sm:$0xff] %vm712_vm2, %v680_v4  ;;  %v651_v59 = vadd.f32 %v1341_v31, %v613_v35  ;;  %v650_v62 = vadd.f32 %v1341_v31, %v612_v30  ;;  %v451_v28 = vpop.permute.xlu1 %450  ;;  %v449_v29 = vpop.permute.xlu0 %448 }
  0xd7   : > { %v575_v36 = vsel %vm569_vm1, %v542_v34, %v451_v28  ;;  %v574_v37 = vsel %vm569_vm1, %v541_v1, %v449_v29  ;;  %v545_v1 = vsel %vm536_vm0, %v1159_v41, %v1282_v10  ;;  %v548_v10 = vsel %vm536_vm0, %v1166_v42, %v1284_v11 }
  0xd8   : > { %v683_v5 = vmax.f32 %v651_v59, 0.0  ;;  %v682_v6 = vmax.f32 %v650_v62, 0.0  ;;  %v615_v33 = vmul.f32 %v1331_v60, %v575_v36  ;;  %v614_v32 = vmul.f32 %v1331_v60, %v574_v37 }
  0xda   : > { %716 = vst.msk [vmem:[%s1361_s23 + $0x18] sm:$0xff] %vm712_vm2, %v683_v5  ;;  %715 = vst.msk [vmem:[%s1361_s23 + $0x10] sm:$0xff] %vm712_vm2, %v682_v6  ;;  %v653_v0 = vadd.f32 %v1341_v31, %v615_v33  ;;  %v652_v63 = vadd.f32 %v1341_v31, %v614_v32  ;;  %v455_v3 = vpop.permute.xlu1 %454  ;;  %v453_v4 = vpop.permute.xlu0 %452  ;;  %v547_v6 = vsel %vm536_vm0, %v1169_v43, %v1286_v12 }
  0xdb   : > { %v577_v35 = vsel %vm569_vm1, %v544_v61, %v455_v3  ;;  %v576_v38 = vsel %vm569_vm1, %v543_v2, %v453_v4  ;;  %v550_v12 = vsel %vm536_vm0, %v1176_v44, %v1288_v13  ;;  %v549_v4 = vsel %vm536_vm0, %v1179_v45, %v1290_v14 }
  0xdc   : > { %v685_v7 = vmax.f32 %v653_v0, 0.0  ;;  %v684_v30 = vmax.f32 %v652_v63, 0.0  ;;  %v617_v34 = vmul.f32 %v1331_v60, %v577_v35  ;;  %v616_v39 = vmul.f32 %v1331_v60, %v576_v38 }
  0xdd   : > { %v552_v14 = vsel %vm536_vm0, %v1186_v46, %v1292_v15 }
  0xde   : > { %718 = vst.msk [vmem:[%s1361_s23 + $0x28] sm:$0xff] %vm712_vm2, %v685_v7  ;;  %717 = vst.msk [vmem:[%s1361_s23 + $0x20] sm:$0xff] %vm712_vm2, %v684_v30  ;;  %v655_v59 = vadd.f32 %v1341_v31, %v617_v34  ;;  %v654_v62 = vadd.f32 %v1341_v31, %v616_v39  ;;  %v459_v28 = vpop.permute.xlu1 %458  ;;  %v457_v29 = vpop.permute.xlu0 %456 }
  0xdf   : > { %v579_v36 = vsel %vm569_vm1, %v546_v8, %v459_v28  ;;  %v578_v40 = vsel %vm569_vm1, %v545_v1, %v457_v29  ;;  %v551_v1 = vsel %vm536_vm0, %v1189_v47, %v1294_v16  ;;  %v554_v16 = vsel %vm536_vm0, %v1196_v48, %v1296_v17 }
  0xe0   : > { %v687_v9 = vmax.f32 %v655_v59, 0.0  ;;  %v686_v37 = vmax.f32 %v654_v62, 0.0  ;;  %v619_v5 = vmul.f32 %v1331_v60, %v579_v36  ;;  %v618_v41 = vmul.f32 %v1331_v60, %v578_v40 }
  0xe2   : > { %720 = vst.msk [vmem:[%s1361_s23 + $0x38] sm:$0xff] %vm712_vm2, %v687_v9  ;;  %719 = vst.msk [vmem:[%s1361_s23 + $0x30] sm:$0xff] %vm712_vm2, %v686_v37  ;;  %v657_v33 = vadd.f32 %v1341_v31, %v619_v5  ;;  %v656_v32 = vadd.f32 %v1341_v31, %v618_v41  ;;  %v463_v61 = vpop.permute.xlu1 %462  ;;  %v461_v2 = vpop.permute.xlu0 %460  ;;  %v553_v37 = vsel %vm536_vm0, %v1199_v49, %v1298_v18 }
  0xe3   : > { %v581_v0 = vsel %vm569_vm1, %v548_v10, %v463_v61  ;;  %v580_v42 = vsel %vm569_vm1, %v547_v6, %v461_v2  ;;  %v556_v18 = vsel %vm536_vm0, %v1206_v50, %v1300_v19  ;;  %v555_v2 = vsel %vm536_vm0, %v1209_v51, %v1302_v20 }
  0xe4   : > { %v689_v11 = vmax.f32 %v657_v33, 0.0  ;;  %v688_v63 = vmax.f32 %v656_v32, 0.0  ;;  %v621_v3 = vmul.f32 %v1331_v60, %v581_v0  ;;  %v620_v43 = vmul.f32 %v1331_v60, %v580_v42 }
  0xe5   : > { %v558_v20 = vsel %vm536_vm0, %v1216_v52, %v1304_v21 }
  0xe6   : > { %722 = vst.msk [vmem:[%s1361_s23 + $0x48] sm:$0xff] %vm712_vm2, %v689_v11  ;;  %721 = vst.msk [vmem:[%s1361_s23 + $0x40] sm:$0xff] %vm712_vm2, %v688_v63  ;;  %v659_v35 = vadd.f32 %v1341_v31, %v621_v3  ;;  %v658_v38 = vadd.f32 %v1341_v31, %v620_v43  ;;  %v467_v7 = vpop.permute.xlu1 %466  ;;  %v465_v30 = vpop.permute.xlu0 %464 }
  0xe7   : > { %v583_v34 = vsel %vm569_vm1, %v550_v12, %v467_v7  ;;  %v582_v44 = vsel %vm569_vm1, %v549_v4, %v465_v30  ;;  %v557_v4 = vsel %vm536_vm0, %v1219_v53, %v1306_v22  ;;  %v560_v22 = vsel %vm536_vm0, %v1226_v54, %v1308_v23 }
  0xe8   : > { %v691_v13 = vmax.f32 %v659_v35, 0.0  ;;  %v690_v39 = vmax.f32 %v658_v38, 0.0  ;;  %v623_v8 = vmul.f32 %v1331_v60, %v583_v34  ;;  %v622_v45 = vmul.f32 %v1331_v60, %v582_v44 }
  0xea   : > { %724 = vst.msk [vmem:[%s1361_s23 + $0x58] sm:$0xff] %vm712_vm2, %v691_v13  ;;  %723 = vst.msk [vmem:[%s1361_s23 + $0x50] sm:$0xff] %vm712_vm2, %v690_v39  ;;  %v661_v59 = vadd.f32 %v1341_v31, %v623_v8  ;;  %v660_v62 = vadd.f32 %v1341_v31, %v622_v45  ;;  %v471_v28 = vpop.permute.xlu1 %470  ;;  %v469_v29 = vpop.permute.xlu0 %468  ;;  %v559_v39 = vsel %vm536_vm0, %v1229_v55, %v1310_v24 }
  0xeb   : > { %v585_v36 = vsel %vm569_vm1, %v552_v14, %v471_v28  ;;  %v584_v46 = vsel %vm569_vm1, %v551_v1, %v469_v29  ;;  %v562_v24 = vsel %vm536_vm0, %v1236_v56, %v1312_v25  ;;  %v561_v29 = vsel %vm536_vm0, %v1239_v57, %v1314_v26 }
  0xec   : > { %v693_v15 = vmax.f32 %v661_v59, 0.0  ;;  %v692_v40 = vmax.f32 %v660_v62, 0.0  ;;  %v625_v9 = vmul.f32 %v1331_v60, %v585_v36  ;;  %v624_v47 = vmul.f32 %v1331_v60, %v584_v46 }
  0xed   : > { %v564_v26 = vsel %vm536_vm0, %v1246_v58, %v1316_v27 }
  0xee   : > { %726 = vst.msk [vmem:[%s1361_s23 + $0x68] sm:$0xff] %vm712_vm2, %v693_v15  ;;  %725 = vst.msk [vmem:[%s1361_s23 + $0x60] sm:$0xff] %vm712_vm2, %v692_v40  ;;  %v663_v5 = vadd.f32 %v1341_v31, %v625_v9  ;;  %v662_v41 = vadd.f32 %v1341_v31, %v624_v47  ;;  %v475_v10 = vpop.permute.xlu1 %474  ;;  %v473_v6 = vpop.permute.xlu0 %472 }
  0xef   : > { %v587_v33 = vsel %vm569_vm1, %v554_v16, %v475_v10  ;;  %v586_v48 = vsel %vm569_vm1, %v553_v37, %v473_v6  ;;  %v1666_v37 = vld [vmem:[#allocation10_spill] sm:$0xff] }
  0xf0   : > { %v695_v17 = vmax.f32 %v663_v5, 0.0  ;;  %v694_v32 = vmax.f32 %v662_v41, 0.0  ;;  %v627_v61 = vmul.f32 %v1331_v60, %v587_v33  ;;  %v626_v49 = vmul.f32 %v1331_v60, %v586_v48  ;;  %v1667_v5 = vld [vmem:[#allocation5_spill] sm:$0xff] }
  0xf1   : > { %v563_v41 = vsel %vm536_vm0, %v1667_v5, %v1666_v37 }
  0xf2   : > { %728 = vst.msk [vmem:[%s1361_s23 + $0x78] sm:$0xff] %vm712_vm2, %v695_v17  ;;  %727 = vst.msk [vmem:[%s1361_s23 + $0x70] sm:$0xff] %vm712_vm2, %v694_v32  ;;  %v665_v0 = vadd.f32 %v1341_v31, %v627_v61  ;;  %v664_v42 = vadd.f32 %v1341_v31, %v626_v49  ;;  %v479_v11 = vpop.permute.xlu1 %478  ;;  %v477_v63 = vpop.permute.xlu0 %476 }
  0xf3   : > { %v589_v3 = vsel %vm569_vm1, %v556_v18, %v479_v11  ;;  %v588_v50 = vsel %vm569_vm1, %v555_v2, %v477_v63  ;;  %v1668_v18 = vld [vmem:[#allocation11_spill] sm:$0xff]  ;;  %v1669_v2 = vld [vmem:[#allocation6_spill] sm:$0xff] }
  0xf4   : > { %v697_v19 = vmax.f32 %v665_v0, 0.0  ;;  %v696_v43 = vmax.f32 %v664_v42, 0.0  ;;  %v629_v12 = vmul.f32 %v1331_v60, %v589_v3  ;;  %v628_v51 = vmul.f32 %v1331_v60, %v588_v50  ;;  %v1670_v42 = vld [vmem:[#allocation12_spill] sm:$0xff]  ;;  %v1671_v11 = vld [vmem:[#allocation7_spill] sm:$0xff] }
  0xf5   : > { %v566_v0 = vsel %vm536_vm0, %v1669_v2, %v1668_v18  ;;  %v565_v63 = vsel %vm536_vm0, %v1671_v11, %v1670_v42 }
  0xf6   : > { %730 = vst.msk [vmem:[%s1361_s23 + $0x88] sm:$0xff] %vm712_vm2, %v697_v19  ;;  %729 = vst.msk [vmem:[%s1361_s23 + $0x80] sm:$0xff] %vm712_vm2, %v696_v43  ;;  %v667_v35 = vadd.f32 %v1341_v31, %v629_v12  ;;  %v666_v38 = vadd.f32 %v1341_v31, %v628_v51  ;;  %v483_v7 = vpop.permute.xlu1 %482  ;;  %v481_v30 = vpop.permute.xlu0 %480 }
  0xf7   : > { %v591_v34 = vsel %vm569_vm1, %v558_v20, %v483_v7  ;;  %v590_v52 = vsel %vm569_vm1, %v557_v4, %v481_v30  ;;  %v1672_v7 = vld [vmem:[#allocation13_spill] sm:$0xff]  ;;  %v1673_v30 = vld [vmem:[#allocation8_spill] sm:$0xff] }
  0xf8   : > { %v699_v21 = vmax.f32 %v667_v35, 0.0  ;;  %v698_v44 = vmax.f32 %v666_v38, 0.0  ;;  %v631_v13 = vmul.f32 %v1331_v60, %v591_v34  ;;  %v630_v53 = vmul.f32 %v1331_v60, %v590_v52  ;;  %v1674_v52 = vld [vmem:[#allocation14_spill] sm:$0xff] }
  0xf9   : > { %v568_v34 = vsel %vm536_vm0, %v1673_v30, %v1672_v7 }
  0xfa   : > { %732 = vst.msk [vmem:[%s1361_s23 + $0x98] sm:$0xff] %vm712_vm2, %v699_v21  ;;  %731 = vst.msk [vmem:[%s1361_s23 + $0x90] sm:$0xff] %vm712_vm2, %v698_v44  ;;  %v669_v8 = vadd.f32 %v1341_v31, %v631_v13  ;;  %v668_v45 = vadd.f32 %v1341_v31, %v630_v53  ;;  %v487_v14 = vpop.permute.xlu1 %486  ;;  %v485_v1 = vpop.permute.xlu0 %484  ;;  %v1675_v21 = vld [vmem:[#allocation9_spill] sm:$0xff] }
  0xfb   : > { %v593_v59 = vsel %vm569_vm1, %v560_v22, %v487_v14  ;;  %v592_v54 = vsel %vm569_vm1, %v559_v39, %v485_v1  ;;  %v567_v44 = vsel %vm536_vm0, %v1675_v21, %v1674_v52 }
  0xfc   : > { %v701_v23 = vmax.f32 %v669_v8, 0.0  ;;  %v700_v62 = vmax.f32 %v668_v45, 0.0  ;;  %v633_v28 = vmul.f32 %v1331_v60, %v593_v59  ;;  %v632_v55 = vmul.f32 %v1331_v60, %v592_v54 }
  0xfe   : > { %734 = vst.msk [vmem:[%s1361_s23 + $0xa8] sm:$0xff] %vm712_vm2, %v701_v23  ;;  %733 = vst.msk [vmem:[%s1361_s23 + $0xa0] sm:$0xff] %vm712_vm2, %v700_v62  ;;  %v671_v36 = vadd.f32 %v1341_v31, %v633_v28  ;;  %v670_v46 = vadd.f32 %v1341_v31, %v632_v55  ;;  %v491_v15 = vpop.permute.xlu1 %490  ;;  %v489_v40 = vpop.permute.xlu0 %488 }
  0xff   : > { %v595_v9 = vsel %vm569_vm1, %v562_v24, %v491_v15  ;;  %v594_v56 = vsel %vm569_vm1, %v561_v29, %v489_v40 }
 0x100   : > { %v703_v25 = vmax.f32 %v671_v36, 0.0  ;;  %v702_v47 = vmax.f32 %v670_v46, 0.0  ;;  %v635_v16 = vmul.f32 %v1331_v60, %v595_v9  ;;  %v634_v57 = vmul.f32 %v1331_v60, %v594_v56 }
 0x102   : > { %736 = vst.msk [vmem:[%s1361_s23 + $0xb8] sm:$0xff] %vm712_vm2, %v703_v25  ;;  %735 = vst.msk [vmem:[%s1361_s23 + $0xb0] sm:$0xff] %vm712_vm2, %v702_v47  ;;  %v673_v10 = vadd.f32 %v1341_v31, %v635_v16  ;;  %v672_v6 = vadd.f32 %v1341_v31, %v634_v57  ;;  %v495_v33 = vpop.permute.xlu1 %494  ;;  %v493_v48 = vpop.permute.xlu0 %492 }
 0x103   : > { %v597_v17 = vsel %vm569_vm1, %v564_v26, %v495_v33  ;;  %v596_v58 = vsel %vm569_vm1, %v563_v41, %v493_v48 }
 0x104   : > { %v705_v27 = vmax.f32 %v673_v10, 0.0  ;;  %v704_v32 = vmax.f32 %v672_v6, 0.0  ;;  %v637_v61 = vmul.f32 %v1331_v60, %v597_v17  ;;  %v636_v49 = vmul.f32 %v1331_v60, %v596_v58 }
 0x106   : > { %738 = vst.msk [vmem:[%s1361_s23 + $0xc8] sm:$0xff] %vm712_vm2, %v705_v27  ;;  %737 = vst.msk [vmem:[%s1361_s23 + $0xc0] sm:$0xff] %vm712_vm2, %v704_v32  ;;  %v675_v3 = vadd.f32 %v1341_v31, %v637_v61  ;;  %v674_v50 = vadd.f32 %v1341_v31, %v636_v49  ;;  %v499_v19 = vpop.permute.xlu1 %498  ;;  %v497_v43 = vpop.permute.xlu0 %496 }
 0x107   : > { %v599_v12 = vsel %vm569_vm1, %v566_v0, %v499_v19  ;;  %v598_v51 = vsel %vm569_vm1, %v565_v63, %v497_v43 }
 0x108   : > { %v707_v20 = vmax.f32 %v675_v3, 0.0  ;;  %v706_v4 = vmax.f32 %v674_v50, 0.0  ;;  %v639_v35 = vmul.f32 %v1331_v60, %v599_v12  ;;  %v638_v38 = vmul.f32 %v1331_v60, %v598_v51 }
 0x10a   : > { %740 = vst.msk [vmem:[%s1361_s23 + $0xd8] sm:$0xff] %vm712_vm2, %v707_v20  ;;  %739 = vst.msk [vmem:[%s1361_s23 + $0xd0] sm:$0xff] %vm712_vm2, %v706_v4  ;;  %v677_v13 = vadd.f32 %v1341_v31, %v639_v35  ;;  %v676_v53 = vadd.f32 %v1341_v31, %v638_v38  ;;  %v503_v22 = vpop.permute.xlu1 %502  ;;  %v501_v39 = vpop.permute.xlu0 %500 }
 0x10b   : > { %v601_v8 = vsel %vm569_vm1, %v568_v34, %v503_v22  ;;  %v600_v45 = vsel %vm569_vm1, %v567_v44, %v501_v39 }
 0x10c   : > { %v709_v14 = vmax.f32 %v677_v13, 0.0  ;;  %v708_v1 = vmax.f32 %v676_v53, 0.0  ;;  %v641_v59 = vmul.f32 %v1331_v60, %v601_v8  ;;  %v640_v54 = vmul.f32 %v1331_v60, %v600_v45 }
 0x10e   : > { %742 = vst.msk [vmem:[%s1361_s23 + $0xe8] sm:$0xff] %vm712_vm2, %v709_v14  ;;  %741 = vst.msk [vmem:[%s1361_s23 + $0xe0] sm:$0xff] %vm712_vm2, %v708_v1  ;;  %v679_v23 = vadd.f32 %v1341_v31, %v641_v59  ;;  %v678_v62 = vadd.f32 %v1341_v31, %v640_v54 }
 0x110   : > { %v711_v28 = vmax.f32 %v679_v23, 0.0  ;;  %v710_v55 = vmax.f32 %v678_v62, 0.0 }
 0x112   : > { %744 = vst.msk [vmem:[%s1361_s23 + $0xf8] sm:$0xff] %vm712_vm2, %v711_v28  ;;  %743 = vst.msk [vmem:[%s1361_s23 + $0xf0] sm:$0xff] %vm712_vm2, %v710_v55 }
 0x113   : > { %907 = shalt.err (!%p904_p3)
}
 0x114   : > { %s908_s11 = scalar_lea.hbm %s1592_s5, 4096  ;;  %s912_s14 = scalar_lea.hbm %s1648_s4, 8192 }
 0x115   : > { %p909_p4 = scmp.ne.s32.totalorder %s1592_s5, %s908_s11  ;;  %p913_p9 = scmp.lt.u32.totalorder %s1592_s5, %s1648_s4 }
 0x116   : > { %p914_p10 = scmp.lt.u32.totalorder %s912_s14, %s908_s11  ;;  %p916_p12 = scmp.lt.u32.totalorder %s908_s11, %s1592_s5 }
 0x117   : > { %p910_p7 = pnand %p909_p4, %p1025_p5 }
 0x118   : > { %p915_p11 = por %p914_p10, %p913_p9 }
 0x119   : > { %p911_p8 = pneg %p910_p7 }
 0x11a   : > { %p917_p13 = por %p916_p12, %p915_p11 }
 0x11c   : > { %p918_p0 = pnand %p917_p13, %p911_p8 }
 0x11e   : > { %921 = shalt.err (!%p918_p0)
}
 0x11f   : > { %s961_s23 = smov 128  }
 0x120   : > { %852 = dma.vmem_to_hbm [thread:$0]  (%p1025_p5), %s1594_s28, 4096, %s1592_s5, %s1602_s19, %s961_s23, %s961_s23, %s958_s6  }
 0x121 PF: > { %p858_p1 = scmp.ge.s32.totalorder %s956_s18, 2  ;;  %s774_s27 = sand.u32 1, %s944_s15  }
 0x122   : > { %s775_s29 = scalar_lea.sflag [#allocation3], %s774_s27 }
 0x123   : > { %p855_p2 = pnand %p858_p1, %p1029_p6 }
 0x125   : > { %939 = dma.done.wait (!%p855_p2), %s775_s29, 4096  }
 0x126   : > { %941 = vsyncadd (!%p855_p2), %s775_s29, 4294963200  ;;  %p14_p3 = scmp.ge.s32.totalorder %s1012_s21, 4   ;;  %s1676_s15 = smov %s948_s16 }
 0x127   : > { %s1677_s16 = smov %s952_s17  ;;  %s1678_s17 = smov %s1023_s24 }
 0x128   : > { %s1679_s18 = smov %s1012_s21  ;;  %16 = sbr.rel (!%p14_p3) target bundleno = 3 (0x3), region = 74 }
 0x12f   :  { %780 = vsyncpa [#allocation3], 1 }
 0x130   :  { %782 = vsyncpa [#allocation3 + $0x1], 1 }

// kernel: inception_block.3
= control target key start
LH: loop header
LB: loop body
LE: loop exit
PB: predicated region body
PF: predicated region fallthrough
CT: control target
= control target key end

     0   :  { %s2196_s18 = smov 0   ;;  %s3184_s0 = inlined_call_operand.vmem [shape: bf16[2,16,16,4], index: 0, kind: input, shape index: {}]   ;;  %s3185_s1 = inlined_call_operand.vmem [shape: bf16[4,16], index: 1, kind: input, shape index: {}]   ;;  %s3186_s2 = inlined_call_operand.vmem [shape: bf16[4,8], index: 2, kind: input, shape index: {}]   ;;  %s3187_s3 = inlined_call_operand.vmem [shape: f32[2,16,16,16], index: 3, kind: output, shape index: {0}]   ;;  %s3188_s4 = inlined_call_operand.vmem [shape: f32[2,16,16,8], index: 4, kind: output, shape index: {1}]   ;;  %s3189_s5 = inlined_call_operand.vmem [shape: f32[2,2,24], index: 5, kind: output, shape index: {2}]  }
   0x1 LB: > { %s1927_s19 = sadd.s32 4294967295, %s2161_s18   ;;  %p1931_p0 = scmp.ge.s32.totalorder %s2161_s18, 1  ;;  %s2161_s18 = sphi %s2196_s18, %s16_s18  }
   0x2   : > { %p192_p1 = scmp.lt.s32.totalorder %s2161_s18, 3 }
   0x4   : > { %p193_p2 = pnand %p1931_p0, %p192_p1 }
   0x6   : > { %196 = sbr.rel (%p193_p2) target bundleno = 481 (0x1e1), region = 32 }
   0xd   : > { %v281_v0 = vld [vmem:[%s3185_s1] sm:$0x3]  ;;  %vm411_vm0 = vcmask 1041408   ;;  %p229_p3 = scmp.lt.s32.totalorder %s1927_s19, 1  ;;  %vm362_vm1 = vcmask 31744   ;;  %vm688_vm2 = vcmask 1040384  }
   0xe   : > { %2110 = vmatprep.subr.msk.bf16.mxu0 %vm411_vm0, %v281_v0  ;;  %v413_v1 = vsel %vm411_vm0, %v281_v0, 0  ;;  %v884_v2 = vld [vmem:[%s3186_s2] sm:$0x3]  ;;  %vm689_vm3 = vsmask.f32 256  ;;  %vm787_vm4 = vcmask 1047552  }
   0xf   : > { %2043 = vmatpush3.bf16.msra.mxu0 %v413_v1  ;;  %s3219_s19 = smov (!%p229_p3, %s1927_s19), 1  ;;  %2111 = vmatprep.subr.msk.bf16.mxu1 %vm411_vm0, %v884_v2  ;;  %v934_v3 = vsel %vm411_vm0, %v884_v2, 0  ;;  %vm788_vm5 = vsmask.f32 7424  ;;  %vm2234_vm6 = vmand %vm688_vm2, %vm689_vm3  ;;  %vm1258_vm8 = vcmask 130048   ;;  %s2163_s28 = smov 120  }
  0x10   : > { %2077 = vmatpush3.bf16.msra.mxu1 %v934_v3  ;;  %s2005_s24 = sshll.u32 %s3219_s19, 7  ;;  %vm2243_vm7 = vmand %vm787_vm4, %vm788_vm5  ;;  %vm1225_vm9 = vcmask 64512   ;;  %s2164_s29 = smov 8   ;;  %vm1806_vm10 = vcmask 189440  }
  0x11   : > { %s2216_s27 = scalar_lea.vmem %s3184_s0, %s2005_s24  ;;  %s2006_s30 = sshll.u32 %s3219_s19, 8 }
  0x12   : > { %v249_v4 = vld [vmem:[%s2216_s27] sm:$0xf]  ;;  %v250_v5 = vld [vmem:[%s2216_s27 + $0x4] sm:$0xf]  ;;  %v251_v6 = vld [vmem:[%s2216_s27 + $0x8] sm:$0xf]  ;;  %s2955_s8 = scalar_lea.vmem %s3188_s4, %s2006_s30  ;;  %s2990_s12 = scalar_lea.vmem %s3187_s3, %s2006_s30 }
  0x13   : > { %v1939_v7 = vcombine.low %v249_v4, %v250_v5  ;;  %v252_v8 = vld [vmem:[%s2216_s27 + $0xc] sm:$0xf]  ;;  %v253_v9 = vld [vmem:[%s2216_s27 + $0x10] sm:$0xf]  ;;  %v254_v10 = vld [vmem:[%s2216_s27 + $0x14] sm:$0xf]  ;;  %v1971_v16 = vcombine.low %v250_v5, %v250_v5 }
  0x14   : > { %v1940_v11 = vcombine.low %v251_v6, %v252_v8  ;;  %v1941_v12 = vcombine.low %v253_v9, %v254_v10  ;;  %v1973_v13 = vcombine.low %v254_v10, %v254_v10  ;;  %v255_v14 = vld [vmem:[%s2216_s27 + $0x18] sm:$0xf]  ;;  %v2226_v15 = vld [vmem:[%s2216_s27 + $0x1c] sm:$0xf]  ;;  %v1972_v20 = vcombine.low %v252_v8, %v252_v8  ;;  %v2239_v30 = vld [vmem:[%s2216_s27 + $0x20] sm:$0xf] }
  0x15   : > { %2044 = vmatprep.mubr.msk.bf16.mxu0 %vm362_vm1, %v1939_v7  ;;  %v1942_v17 = vcombine.low %v255_v14, %v2226_v15  ;;  %v576_v18 = vshrl.u32 %v1939_v7, 16  ;;  %v579_v19 = vshll.u32 %v1939_v7, 16  ;;  %v258_v36 = vld [vmem:[%s2216_s27 + $0x24] sm:$0xf]  ;;  %v259_v53 = vld [vmem:[%s2216_s27 + $0x28] sm:$0xf]  ;;  %v1974_v59 = vcombine.low %v2226_v15, %v2226_v15 }
  0x16   : > { %2045 = vmatmul.mubr.msk.bf16.vlgmr.msra.gmra.mrb[0].mxu0 %vm362_vm1, %v1940_v11  ;;  %v588_v21 = vshrl.u32 %v1941_v12, 16  ;;  %v591_v22 = vshll.u32 %v1941_v12, 16  ;;  %v582_v23 = vshrl.u32 %v1940_v11, 16  ;;  %v585_v24 = vshll.u32 %v1940_v11, 16  ;;  %v2263_v54 = vld [vmem:[%s2216_s27 + $0x2c] sm:$0xf] }
  0x17   : > { %2048 = vmatprep.mubr.msk.bf16.mxu0 %vm362_vm1, %v1941_v12  ;;  %v594_v26 = vshrl.u32 %v1942_v17, 16  ;;  %v597_v27 = vshll.u32 %v1942_v17, 16  ;;  %v578_v28 = vrot.slane %v576_v18, 7  ;;  %v707_v29 = vrot.slane %v579_v19, 1  ;;  %v261_v3 = vld [vmem:[%s2216_s27 + $0x30] sm:$0xf] }
  0x18   : > { %v590_v31 = vrot.slane %v588_v21, 7  ;;  %v584_v32 = vrot.slane %v582_v23, 7  ;;  %v709_v33 = vrot.slane %v585_v24, 1  ;;  %v711_v34 = vrot.slane %v591_v22, 1  ;;  %s2165_s9 = smov 16   ;;  %s1938_s13 = sshll.u32 %s3219_s19, 1 }
  0x19   : > { %v596_v37 = vrot.slane %v594_v26, 7  ;;  %v713_v38 = vrot.slane %v597_v27, 1  ;;  %v581_v39 = vor.u32 %v579_v19, %v578_v28  ;;  %v708_v40 = vor.u32 %v707_v29, %v576_v18  ;;  %s247_s16 = scalar_lea.vmem %s3189_s5, %s1938_s13 }
  0x1a   : > { %v593_v41 = vor.u32 %v591_v22, %v590_v31  ;;  %v587_v42 = vor.u32 %v585_v24, %v584_v32  ;;  %v710_v43 = vor.u32 %v709_v33, %v582_v23  ;;  %v712_v44 = vor.u32 %v711_v34, %v588_v21  ;;  %v263_v21 = vld [vmem:[%s2216_s27 + $0x38] sm:$0xf]  ;;  %v2279_v22 = vld [vmem:[%s2216_s27 + $0x3c] sm:$0xf] }
  0x1b   : > { %v599_v45 = vor.u32 %v597_v27, %v596_v37  ;;  %v691_v46 = vsel %vm2234_vm6, %v249_v4, %v581_v39  ;;  %v790_v47 = vsel %vm2243_vm7, %v708_v40, %v1971_v16  ;;  %v1943_v48 = vcombine.low %v2239_v30, %v258_v36  ;;  %v262_v4 = vld [vmem:[%s2216_s27 + $0x34] sm:$0xf]  ;;  %v265_v40 = vld [vmem:[%s2216_s27 + $0x40] sm:$0xf] }
  0x1c   : > { %v693_v49 = vsel %vm2234_vm6, %v253_v9, %v593_v41  ;;  %v692_v50 = vsel %vm2234_vm6, %v251_v6, %v587_v42  ;;  %v791_v51 = vsel %vm2243_vm7, %v710_v43, %v1972_v20  ;;  %v792_v52 = vsel %vm2243_vm7, %v712_v44, %v1973_v13  ;;  %v266_v41 = vld [vmem:[%s2216_s27 + $0x44] sm:$0xf] }
  0x1d   : > { %v694_v55 = vsel %vm2234_vm6, %v255_v14, %v599_v45  ;;  %v822_v56 = vmax.bf16 %v1939_v7, %v691_v46  ;;  %v823_v57 = vmax.bf16 %v1940_v11, %v692_v50  ;;  %v824_v58 = vmax.bf16 %v1941_v12, %v693_v49 }
  0x1e   : > { %2049 = vmatmul.mubr.msk.bf16.gmra.mrb[4].mxu0 %vm362_vm1, %v1942_v17  ;;  %v825_v60 = vmax.bf16 %v1942_v17, %v694_v55  ;;  %v600_v61 = vshrl.u32 %v1943_v48, 16  ;;  %v603_v62 = vshll.u32 %v1943_v48, 16  ;;  %v1944_v2 = vcombine.low %v259_v53, %v2263_v54  ;;  %v2301_v55 = vld [vmem:[%s2216_s27 + $0x4c] sm:$0xf] }
  0x1f   : > { %v838_v63 = vmax.bf16 %v822_v56, %v790_v47  ;;  %v839_v0 = vmax.bf16 %v823_v57, %v791_v51  ;;  %v840_v1 = vmax.bf16 %v824_v58, %v792_v52  ;;  %2052 = vmatprep.mubr.msk.bf16.mxu0 %vm362_vm1, %v1943_v48  ;;  %v1975_v7 = vcombine.low %v258_v36, %v258_v36 }
  0x20   : > { %v602_v5 = vrot.slane %v600_v61, 7  ;;  %v715_v6 = vrot.slane %v603_v62, 1  ;;  %v714_v8 = vor.u32 %v713_v38, %v594_v26  ;;  %v606_v11 = vshrl.u32 %v1944_v2, 16 }
  0x21   : > { %v854_v9 = vmax.bf16 %v839_v0, %v838_v63  ;;  %v855_v10 = vmax.bf16 %v840_v1, %v839_v0  ;;  %v609_v12 = vshll.u32 %v1944_v2, 16  ;;  %v1945_v16 = vcombine.low %v261_v3, %v262_v4 }
  0x22   : > { %v605_v13 = vor.u32 %v603_v62, %v602_v5  ;;  %v793_v14 = vsel %vm2243_vm7, %v714_v8, %v1974_v59  ;;  %v716_v15 = vor.u32 %v715_v6, %v600_v61  ;;  %v608_v18 = vrot.slane %v606_v11, 7 }
  0x23   : > { %v869_v17 = vmax.bf16 %v854_v9, %v840_v1  ;;  %2078 = vmatprep.mubr.msk.bf16.mxu1 %vm362_vm1, %v854_v9  ;;  %v717_v19 = vrot.slane %v609_v12, 1  ;;  %v841_v20 = vmax.bf16 %v825_v60, %v793_v14  ;;  %v612_v26 = vshrl.u32 %v1945_v16, 16  ;;  %v270_v9 = vld [vmem:[%s2216_s27 + $0x54] sm:$0xf] }
  0x24   : > { %v695_v23 = vsel %vm2234_vm6, %v2239_v30, %v605_v13  ;;  %v794_v24 = vsel %vm2243_vm7, %v716_v15, %v1975_v7  ;;  %v615_v27 = vshll.u32 %v1945_v16, 16  ;;  %v611_v29 = vor.u32 %v609_v12, %v608_v18  ;;  %v2323_v15 = vld [vmem:[%s2216_s27 + $0x5c] sm:$0xf] }
  0x25   : > { %2079 = vmatmul.mubr.msk.bf16.vlgmr.msra.gmra.mrb[0].mxu1 %vm362_vm1, %v869_v17  ;;  %v826_v28 = vmax.bf16 %v1943_v48, %v695_v23  ;;  %v870_v31 = vmax.bf16 %v855_v10, %v841_v20  ;;  %v856_v32 = vmax.bf16 %v841_v20, %v840_v1  ;;  %v1976_v33 = vcombine.low %v2263_v54, %v2263_v54  ;;  %v267_v54 = vld [vmem:[%s2216_s27 + $0x48] sm:$0xf]  ;;  %v271_v10 = vld [vmem:[%s2216_s27 + $0x58] sm:$0xf] }
  0x26   : > { %2053 = vmatmul.mubr.msk.bf16.gmra.mrb[8].mxu0 %vm362_vm1, %v1944_v2  ;;  %v614_v34 = vrot.slane %v612_v26, 7  ;;  %v719_v30 = vrot.slane %v615_v27, 1  ;;  %v1946_v36 = vcombine.low %v263_v21, %v2279_v22  ;;  %v696_v37 = vsel %vm2234_vm6, %v259_v53, %v611_v29 }
  0x27   : > { %2082 = vmatprep.mubr.msk.bf16.mxu1 %vm362_vm1, %v870_v31  ;;  %v842_v38 = vmax.bf16 %v826_v28, %v794_v24  ;;  %2056 = vmatprep.mubr.msk.bf16.mxu0 %vm362_vm1, %v1945_v16  ;;  %v1977_v39 = vcombine.low %v262_v4, %v262_v4  ;;  %v827_v42 = vmax.bf16 %v1944_v2, %v696_v37  ;;  %v2314_v4 = vld [vmem:[%s2216_s27 + $0x50] sm:$0xf] }
  0x28   : > { %v617_v43 = vor.u32 %v615_v27, %v614_v34  ;;  %v618_v44 = vshrl.u32 %v1946_v36, 16  ;;  %v621_v45 = vshll.u32 %v1946_v36, 16  ;;  %v718_v47 = vor.u32 %v717_v19, %v606_v11 }
  0x29   : > { %v871_v46 = vmax.bf16 %v856_v32, %v842_v38  ;;  %v857_v48 = vmax.bf16 %v842_v38, %v841_v20  ;;  %v720_v49 = vor.u32 %v719_v30, %v612_v26  ;;  %v1947_v53 = vcombine.low %v265_v40, %v266_v41 }
  0x2a   : > { %v697_v50 = vsel %vm2234_vm6, %v261_v3, %v617_v43  ;;  %v620_v51 = vrot.slane %v618_v44, 7  ;;  %v721_v52 = vrot.slane %v621_v45, 1  ;;  %v1978_v57 = vcombine.low %v2279_v22, %v2279_v22  ;;  %v2346_v43 = vld [vmem:[%s2216_s27 + $0x64] sm:$0xf] }
  0x2b   : > { %v828_v56 = vmax.bf16 %v1945_v16, %v697_v50  ;;  %v795_v58 = vsel %vm2243_vm7, %v718_v47, %v1976_v33  ;;  %v796_v59 = vsel %vm2243_vm7, %v720_v49, %v1977_v39  ;;  %v624_v62 = vshrl.u32 %v1947_v53, 16  ;;  %v2354_v49 = vld [vmem:[%s2216_s27 + $0x6c] sm:$0xf] }
  0x2c   : > { %v623_v60 = vor.u32 %v621_v45, %v620_v51  ;;  %v843_v61 = vmax.bf16 %v827_v42, %v795_v58  ;;  %v627_v63 = vshll.u32 %v1947_v53, 16  ;;  %v1979_v1 = vcombine.low %v266_v41, %v266_v41 }
  0x2d   : > { %2083 = vmatmul.mubr.msk.bf16.gmra.mrb[4].mxu1 %vm362_vm1, %v871_v46  ;;  %v2310_v0 = vmax.bf16 %v828_v56, %v796_v59  ;;  %v1948_v2 = vcombine.low %v267_v54, %v2301_v55  ;;  %v722_v3 = vor.u32 %v721_v52, %v618_v44  ;;  %v626_v8 = vrot.slane %v624_v62, 7  ;;  %v2349_v44 = vld [vmem:[%s2216_s27 + $0x68] sm:$0xf] }
  0x2e   : > { %2057 = vmatmul.mubr.msk.bf16.gmra.mrb[12].mxu0 %vm362_vm1, %v1946_v36  ;;  %v698_v5 = vsel %vm2234_vm6, %v263_v21, %v623_v60  ;;  %v872_v6 = vmax.bf16 %v857_v48, %v843_v61  ;;  %v858_v7 = vmax.bf16 %v843_v61, %v842_v38  ;;  %v723_v12 = vrot.slane %v627_v63, 1  ;;  %v2339_v38 = vld [vmem:[%s2216_s27 + $0x60] sm:$0xf] }
  0x2f   : > { %v829_v11 = vmax.bf16 %v1946_v36, %v698_v5  ;;  %2060 = vmatprep.mubr.msk.bf16.mxu0 %vm362_vm1, %v1947_v53  ;;  %v630_v13 = vshrl.u32 %v1948_v2, 16  ;;  %v633_v14 = vshll.u32 %v1948_v2, 16  ;;  %v629_v16 = vor.u32 %v627_v63, %v626_v8 }
  0x30   : > { %2086 = vmatprep.mubr.msk.bf16.mxu1 %vm362_vm1, %v872_v6  ;;  %v1980_v17 = vcombine.low %v2301_v55, %v2301_v55  ;;  %v797_v18 = vsel %vm2243_vm7, %v722_v3, %v1978_v57  ;;  %v859_v19 = vmax.bf16 %v2310_v0, %v843_v61  ;;  %v873_v20 = vmax.bf16 %v858_v7, %v2310_v0  ;;  %v277_v6 = vld [vmem:[%s2216_s27 + $0x70] sm:$0xf]  ;;  %v2374_v7 = vld [vmem:[%s2216_s27 + $0x74] sm:$0xf] }
  0x31   : > { %v632_v21 = vrot.slane %v630_v13, 7  ;;  %v845_v22 = vmax.bf16 %v829_v11, %v797_v18  ;;  %v724_v23 = vor.u32 %v723_v12, %v624_v62  ;;  %v699_v24 = vsel %vm2234_vm6, %v265_v40, %v629_v16 }
  0x32   : > { %v725_v26 = vrot.slane %v633_v14, 1  ;;  %v1949_v27 = vcombine.low %v2314_v4, %v270_v9  ;;  %v1950_v28 = vcombine.low %v271_v10, %v2323_v15  ;;  %v830_v29 = vmax.bf16 %v1947_v53, %v699_v24 }
  0x33   : > { %v635_v31 = vor.u32 %v633_v14, %v632_v21  ;;  %v874_v32 = vmax.bf16 %v859_v19, %v845_v22  ;;  %v798_v33 = vsel %vm2243_vm7, %v724_v23, %v1979_v1  ;;  %v1981_v36 = vcombine.low %v270_v9, %v270_v9  ;;  %v279_v19 = vld [vmem:[%s2216_s27 + $0x78] sm:$0xf] }
  0x34   : > { %v636_v34 = vshrl.u32 %v1949_v27, 16  ;;  %v639_v30 = vshll.u32 %v1949_v27, 16  ;;  %v642_v37 = vshrl.u32 %v1950_v28, 16  ;;  %v846_v40 = vmax.bf16 %v830_v29, %v798_v33 }
  0x35   : > { %2087 = vmatmul.mubr.msk.bf16.gmra.mrb[8].mxu1 %vm362_vm1, %v873_v20  ;;  %v700_v39 = vsel %vm2234_vm6, %v267_v54, %v635_v31  ;;  %v860_v41 = vmax.bf16 %v845_v22, %v2310_v0  ;;  %v645_v42 = vshll.u32 %v1950_v28, 16  ;;  %v1982_v50 = vcombine.low %v2323_v15, %v2323_v15  ;;  %v280_v20 = vld [vmem:[%s2216_s27 + $0x7c] sm:$0xf] }
  0x36   : > { %2061 = vmatmul.mubr.msk.bf16.gmra.mrb[16].mxu0 %vm362_vm1, %v1948_v2  ;;  %v831_v45 = vmax.bf16 %v1948_v2, %v700_v39  ;;  %2090 = vmatprep.mubr.msk.bf16.mxu1 %vm362_vm1, %v874_v32  ;;  %v638_v46 = vrot.slane %v636_v34, 7  ;;  %v727_v47 = vrot.slane %v639_v30, 1  ;;  %v644_v48 = vrot.slane %v642_v37, 7 }
  0x37   : > { %2064 = vmatprep.mubr.msk.bf16.mxu0 %vm362_vm1, %v1949_v27  ;;  %v726_v51 = vor.u32 %v725_v26, %v630_v13  ;;  %v861_v52 = vmax.bf16 %v846_v40, %v845_v22  ;;  %v1951_v56 = vcombine.low %v2339_v38, %v2346_v43  ;;  %v875_v57 = vmax.bf16 %v860_v41, %v846_v40 }
  0x38   : > { %v641_v53 = vor.u32 %v639_v30, %v638_v46  ;;  %v647_v54 = vor.u32 %v645_v42, %v644_v48  ;;  %v728_v55 = vor.u32 %v727_v47, %v636_v34  ;;  %v729_v58 = vrot.slane %v645_v42, 1 }
  0x39   : > { %v799_v59 = vsel %vm2243_vm7, %v726_v51, %v1980_v17  ;;  %v1952_v60 = vcombine.low %v2349_v44, %v2354_v49  ;;  %v648_v3 = vshrl.u32 %v1951_v56, 16  ;;  %v651_v5 = vshll.u32 %v1951_v56, 16 }
  0x3a   : > { %v701_v61 = vsel %vm2234_vm6, %v2314_v4, %v641_v53  ;;  %v702_v62 = vsel %vm2234_vm6, %v271_v10, %v647_v54  ;;  %v847_v63 = vmax.bf16 %v831_v45, %v799_v59  ;;  %v800_v0 = vsel %vm2243_vm7, %v728_v55, %v1981_v36 }
  0x3b   : > { %v832_v1 = vmax.bf16 %v1949_v27, %v701_v61  ;;  %v833_v2 = vmax.bf16 %v1950_v28, %v702_v62  ;;  %v654_v11 = vshrl.u32 %v1952_v60, 16  ;;  %v657_v4 = vshll.u32 %v1952_v60, 16 }
  0x3c   : > { %v876_v8 = vmax.bf16 %v861_v52, %v847_v63  ;;  %v862_v9 = vmax.bf16 %v847_v63, %v846_v40  ;;  %v650_v12 = vrot.slane %v648_v3, 7  ;;  %v731_v13 = vrot.slane %v651_v5, 1 }
  0x3d   : > { %2091 = vmatmul.mubr.msk.bf16.gmra.mrb[12].mxu1 %vm362_vm1, %v875_v57  ;;  %v848_v10 = vmax.bf16 %v832_v1, %v800_v0  ;;  %v730_v14 = vor.u32 %v729_v58, %v642_v37  ;;  %v1983_v15 = vcombine.low %v2346_v43, %v2346_v43  ;;  %v656_v16 = vrot.slane %v654_v11, 7 }
  0x3e   : > { %2065 = vmatmul.mubr.msk.bf16.gmra.mrb[20].mxu0 %vm362_vm1, %v1950_v28  ;;  %2094 = vmatprep.mubr.msk.bf16.mxu1 %vm362_vm1, %v876_v8  ;;  %v1984_v17 = vcombine.low %v2354_v49, %v2354_v49  ;;  %v1953_v18 = vcombine.low %v277_v6, %v2374_v7  ;;  %v653_v21 = vor.u32 %v651_v5, %v650_v12  ;;  %v733_v22 = vrot.slane %v657_v4, 1 }
  0x3f   : > { %2068 = vmatprep.mubr.msk.bf16.mxu0 %vm362_vm1, %v1951_v56  ;;  %v801_v23 = vsel %vm2243_vm7, %v730_v14, %v1982_v50  ;;  %v863_v24 = vmax.bf16 %v848_v10, %v847_v63  ;;  %v659_v26 = vor.u32 %v657_v4, %v656_v16  ;;  %v732_v28 = vor.u32 %v731_v13, %v648_v3 }
  0x40   : > { %v849_v27 = vmax.bf16 %v833_v2, %v801_v23  ;;  %v660_v29 = vshrl.u32 %v1953_v18, 16  ;;  %v877_v31 = vmax.bf16 %v862_v9, %v848_v10  ;;  %v703_v32 = vsel %vm2234_vm6, %v2339_v38, %v653_v21 }
  0x41   : > { %v663_v33 = vshll.u32 %v1953_v18, 16  ;;  %v1954_v34 = vcombine.low %v279_v19, %v280_v20  ;;  %v834_v30 = vmax.bf16 %v1951_v56, %v703_v32  ;;  %v704_v36 = vsel %vm2234_vm6, %v2349_v44, %v659_v26 }
  0x42   : > { %v878_v37 = vmax.bf16 %v863_v24, %v849_v27  ;;  %v802_v39 = vsel %vm2243_vm7, %v732_v28, %v1983_v15  ;;  %v835_v40 = vmax.bf16 %v1952_v60, %v704_v36  ;;  %v662_v41 = vrot.slane %v660_v29, 7 }
  0x43   : > { %v735_v42 = vrot.slane %v663_v33, 1  ;;  %v1985_v43 = vcombine.low %v2374_v7, %v2374_v7  ;;  %v666_v45 = vshrl.u32 %v1954_v34, 16  ;;  %v669_v46 = vshll.u32 %v1954_v34, 16 }
  0x44   : > { %v734_v38 = vor.u32 %v733_v22, %v654_v11  ;;  %v850_v47 = vmax.bf16 %v834_v30, %v802_v39  ;;  %v864_v48 = vmax.bf16 %v849_v27, %v848_v10  ;;  %v665_v49 = vor.u32 %v663_v33, %v662_v41 }
  0x45   : > { %2095 = vmatmul.mubr.msk.bf16.gmra.mrb[16].mxu1 %vm362_vm1, %v877_v31  ;;  %v736_v50 = vor.u32 %v735_v42, %v660_v29  ;;  %v668_v44 = vrot.slane %v666_v45, 7  ;;  %v737_v51 = vrot.slane %v669_v46, 1  ;;  %v1986_v54 = vcombine.low %v280_v20, %v280_v20 }
  0x46   : > { %2069 = vmatmul.mubr.msk.bf16.gmra.mrb[24].mxu0 %vm362_vm1, %v1952_v60  ;;  %2098 = vmatprep.mubr.msk.bf16.mxu1 %vm362_vm1, %v878_v37  ;;  %v803_v52 = vsel %vm2243_vm7, %v734_v38, %v1984_v17  ;;  %v705_v53 = vsel %vm2234_vm6, %v277_v6, %v665_v49  ;;  %v865_v56 = vmax.bf16 %v850_v47, %v849_v27 }
  0x47   : > { %2072 = vmatprep.mubr.msk.bf16.mxu0 %vm362_vm1, %v1953_v18  ;;  %v851_v55 = vmax.bf16 %v835_v40, %v803_v52  ;;  %v836_v57 = vmax.bf16 %v1953_v18, %v705_v53  ;;  %v671_v58 = vor.u32 %v669_v46, %v668_v44  ;;  %v738_v59 = vor.u32 %v737_v51, %v666_v45 }
  0x48   : > { %v879_v61 = vmax.bf16 %v864_v48, %v850_v47  ;;  %v804_v60 = vsel %vm2243_vm7, %v736_v50, %v1985_v43 }
  0x49   : > { %v706_v62 = vsel %vm2234_vm6, %v279_v19, %v671_v58  ;;  %v880_v63 = vmax.bf16 %v865_v56, %v851_v55  ;;  %v805_v1 = vsel %vm2243_vm7, %v738_v59, %v1986_v54  ;;  %v852_v2 = vmax.bf16 %v836_v57, %v804_v60 }
  0x4a   : > { %v837_v0 = vmax.bf16 %v1954_v34, %v706_v62  ;;  %v866_v3 = vmax.bf16 %v851_v55, %v850_v47 }
  0x4b   : > { %v867_v6 = vmax.bf16 %v852_v2, %v851_v55 }
  0x4c   : > { %v853_v5 = vmax.bf16 %v837_v0, %v805_v1  ;;  %v881_v7 = vmax.bf16 %v866_v3, %v852_v2 }
  0x4d   : > { %2099 = vmatmul.mubr.msk.bf16.gmra.mrb[20].mxu1 %vm362_vm1, %v879_v61 }
  0x4e   : > { %2073 = vmatmul.mubr.msk.bf16.gmra.mrb[28].mxu0 %vm362_vm1, %v1954_v34  ;;  %2102 = vmatprep.mubr.msk.bf16.mxu1 %vm362_vm1, %v880_v63  ;;  %v882_v8 = vmax.bf16 %v867_v6, %v853_v5  ;;  %v868_v25 = vmax.bf16 %v853_v5, %v852_v2 }
  0x50   : > { %v883_v9 = vmax.bf16 %v868_v25, %v853_v5 }
  0x55   : > { %2103 = vmatmul.mubr.msk.bf16.gmra.mrb[24].mxu1 %vm362_vm1, %v881_v7 }
  0x56   : > { %2106 = vmatprep.mubr.msk.bf16.mxu1 %vm362_vm1, %v882_v8 }
  0x5d   : > { %2107 = vmatmul.mubr.msk.bf16.gmra.mrb[28].mxu1 %vm362_vm1, %v883_v9 }
  0xe9   : > { %v2419_v35 = vpop.f32.mrb[0].mxu0 }
  0xea   : > { %1327 = vrot.lane.b32.xlu0 %v2419_v35, %s2163_s28  ;;  %v2423_v11 = vpop.f32.mrb[1].mxu0  ;;  %v1596_v13 = vmul.f32 %v2419_v35, %v2419_v35  ;;  %v1454_v18 = vsel %vm1258_vm8, %v2419_v35, 0.0 }
  0xeb   : > { %v1594_v4 = vmul.f32 %v2423_v11, %v2423_v11  ;;  %v2427_v10 = vpop.f32.mrb[2].mxu0  ;;  %v1451_v14 = vsel %vm1258_vm8, %v2423_v11, 0.0 }
  0xec   : > { %1329 = vrot.lane.b32.xlu1 %v2427_v10, %s2163_s28  ;;  %v2431_v12 = vpop.f32.mrb[3].mxu0  ;;  %v1597_v20 = vmul.f32 %v2427_v10, %v2427_v10  ;;  %v1629_v24 = vsel %vm1258_vm8, %v1596_v13, 0.0  ;;  %v1456_v26 = vsel %vm1258_vm8, %v2427_v10, 0.0 }
  0xed   : > { %v1452_v15 = vsel %vm1258_vm8, %v2431_v12, 0.0  ;;  %v1595_v16 = vmul.f32 %v2431_v12, %v2431_v12  ;;  %v1626_v19 = vsel %vm1258_vm8, %v1594_v4, 0.0 }
  0xee   : > { %v1453_v17 = vadd.f32 %v1452_v15, %v1451_v14  ;;  %1323 = vrot.lane.b32.xlu0 %v2423_v11, %s2163_s28  ;;  %v1631_v32 = vsel %vm1258_vm8, %v1597_v20, 0.0 }
  0xef   : > { %v1627_v21 = vsel %vm1258_vm8, %v1595_v16, 0.0 }
  0xf0   : > { %v1455_v22 = vadd.f32 %v1454_v18, %v1453_v17  ;;  %v1628_v23 = vadd.f32 %v1627_v21, %v1626_v19  ;;  %1325 = vrot.lane.b32.xlu1 %v2431_v12, %s2163_s28 }
  0xf1   : > { %v2454_v27 = vpop.f32.mrb[4].mxu0 }
  0xf2   : > { %v1630_v28 = vadd.f32 %v1629_v24, %v1628_v23  ;;  %1335 = vrot.lane.b32.xlu0 %v2454_v27, %s2163_s28  ;;  %v2458_v29 = vpop.f32.mrb[5].mxu0  ;;  %v1457_v31 = vadd.f32 %v1456_v26, %v1455_v22  ;;  %v1600_v40 = vmul.f32 %v2454_v27, %v2454_v27  ;;  %v1462_v38 = vsel %vm1258_vm8, %v2454_v27, 0.0 }
  0xf3   : > { %v1458_v33 = vsel %vm1258_vm8, %v2458_v29, 0.0  ;;  %v1598_v34 = vmul.f32 %v2458_v29, %v2458_v29  ;;  %v2465_v30 = vpop.f32.mrb[6].mxu0 }
  0xf4   : > { %v1459_v36 = vadd.f32 %v1458_v33, %v1457_v31  ;;  %v1632_v37 = vadd.f32 %v1631_v32, %v1630_v28  ;;  %1337 = vrot.lane.b32.xlu1 %v2465_v30, %s2163_s28  ;;  %v2469_v39 = vpop.f32.mrb[7].mxu0  ;;  %v1601_v47 = vmul.f32 %v2465_v30, %v2465_v30  ;;  %v1637_v51 = vsel %vm1258_vm8, %v1600_v40, 0.0 }
  0xf5   : > { %v1633_v41 = vsel %vm1258_vm8, %v1598_v34, 0.0  ;;  %v1460_v42 = vsel %vm1258_vm8, %v2469_v39, 0.0  ;;  %v1599_v43 = vmul.f32 %v2469_v39, %v2469_v39  ;;  %v1464_v55 = vsel %vm1258_vm8, %v2465_v30, 0.0 }
  0xf6   : > { %v1634_v45 = vadd.f32 %v1633_v41, %v1632_v37  ;;  %v1461_v46 = vadd.f32 %v1460_v42, %v1459_v36  ;;  %1331 = vrot.lane.b32.xlu0 %v2458_v29, %s2163_s28  ;;  %v1639_v60 = vsel %vm1258_vm8, %v1601_v47, 0.0 }
  0xf7   : > { %v1635_v48 = vsel %vm1258_vm8, %v1599_v43, 0.0 }
  0xf8   : > { %v1463_v49 = vadd.f32 %v1462_v38, %v1461_v46  ;;  %v1636_v50 = vadd.f32 %v1635_v48, %v1634_v45  ;;  %v2080_v44 = vpop.f32.mrb[0].mxu1  ;;  %1333 = vrot.lane.b32.xlu1 %v2469_v39, %s2163_s28 }
  0xf9   : > { %v1697_v52 = vmul.f32 %v2080_v44, %v2080_v44  ;;  %v970_v53 = vpop.f32.mrb[1].mxu1  ;;  %v2488_v54 = vpop.f32.mrb[8].mxu0  ;;  %v1523_v62 = vsel %vm1225_vm9, %v2080_v44, 0.0 }
  0xfa   : > { %v1638_v56 = vadd.f32 %v1637_v51, %v1636_v50  ;;  %v1520_v57 = vsel %vm1225_vm9, %v970_v53, 0.0  ;;  %v1695_v58 = vmul.f32 %v970_v53, %v970_v53  ;;  %v2081_v59 = vpop.f32.mrb[2].mxu1  ;;  %1129 = vrot.lane.b32.xlu0 %v970_v53, %s2164_s29  ;;  %v2494_v61 = vpop.f32.mrb[9].mxu0  ;;  %v1470_v63 = vsel %vm1258_vm8, %v2488_v54, 0.0 }
  0xfb   : > { %v1604_v0 = vmul.f32 %v2488_v54, %v2488_v54  ;;  %v973_v1 = vpop.f32.mrb[3].mxu1  ;;  %v2502_v2 = vpop.f32.mrb[10].mxu0  ;;  %v1465_v7 = vadd.f32 %v1464_v55, %v1463_v49  ;;  %v1730_v25 = vsel %vm1225_vm9, %v1697_v52, 0.0  ;;  %v1698_v9 = vmul.f32 %v2081_v59, %v2081_v59 }
  0xfc   : > { %v1727_v3 = vsel %vm1225_vm9, %v1695_v58, 0.0  ;;  %v1521_v5 = vsel %vm1225_vm9, %v973_v1, 0.0  ;;  %v1696_v6 = vmul.f32 %v973_v1, %v973_v1  ;;  %1133 = vrot.lane.b32.xlu1 %v2080_v44, %s2164_s29  ;;  %v2507_v8 = vpop.f32.mrb[11].mxu0  ;;  %v1466_v13 = vsel %vm1258_vm8, %v2494_v61, 0.0 }
  0xfd   : > { %v1522_v4 = vadd.f32 %v1521_v5, %v1520_v57  ;;  %v1467_v15 = vadd.f32 %v1466_v13, %v1465_v7  ;;  %v1602_v16 = vmul.f32 %v2494_v61, %v2494_v61  ;;  %v1640_v17 = vadd.f32 %v1639_v60, %v1638_v56 }
  0xfe   : > { %v1728_v14 = vsel %vm1225_vm9, %v1696_v6, 0.0  ;;  %1343 = vrot.lane.b32.xlu0 %v2488_v54, %s2163_s28  ;;  %v1645_v18 = vsel %vm1258_vm8, %v1604_v0, 0.0  ;;  %v1525_v19 = vsel %vm1225_vm9, %v2081_v59, 0.0  ;;  %v1605_v23 = vmul.f32 %v2502_v2, %v2502_v2 }
  0xff   : > { %v1524_v20 = vadd.f32 %v1523_v62, %v1522_v4  ;;  %v1729_v21 = vadd.f32 %v1728_v14, %v1727_v3  ;;  %v1641_v22 = vsel %vm1258_vm8, %v1602_v16, 0.0  ;;  %v1468_v24 = vsel %vm1258_vm8, %v2507_v8, 0.0 }
 0x100   : > { %v1603_v26 = vmul.f32 %v2507_v8, %v2507_v8  ;;  %v2084_v28 = vpop.f32.mrb[4].mxu1  ;;  %1135 = vrot.lane.b32.xlu1 %v2081_v59, %s2164_s29  ;;  %v1732_v31 = vsel %vm1225_vm9, %v1698_v9, 0.0  ;;  %v1642_v33 = vadd.f32 %v1641_v22, %v1640_v17  ;;  %v1469_v34 = vadd.f32 %v1468_v24, %v1467_v15 }
 0x101   : > { %v1731_v32 = vadd.f32 %v1730_v25, %v1729_v21  ;;  %v2528_v36 = vpop.f32.mrb[5].mxu1  ;;  %v2530_v37 = vpop.f32.mrb[12].mxu0  ;;  %v1472_v40 = vsel %vm1258_vm8, %v2502_v2, 0.0  ;;  %v1701_v42 = vmul.f32 %v2084_v28, %v2084_v28  ;;  %v1526_v43 = vadd.f32 %v1525_v19, %v1524_v20 }
 0x102   : > { %3202 = vst [vmem:[#allocation2_spill] sm:$0xff] %v2530_v37  ;;  %v1643_v41 = vsel %vm1258_vm8, %v1603_v26, 0.0  ;;  %v2085_v45 = vpop.f32.mrb[6].mxu1  ;;  %1131 = vrot.lane.b32.xlu0 %v973_v1, %s2164_s29  ;;  %v2536_v46 = vpop.f32.mrb[13].mxu0  ;;  %v1471_v38 = vadd.f32 %v1470_v63, %v1469_v34  ;;  %v1527_v48 = vsel %vm1225_vm9, %v2528_v36, 0.0  ;;  %v1699_v49 = vmul.f32 %v2528_v36, %v2528_v36 }
 0x103   : > { %3203 = vst [vmem:[#allocation3_spill] sm:$0xff] %v2536_v46  ;;  %v1644_v47 = vadd.f32 %v1643_v41, %v1642_v33  ;;  %v2542_v50 = vpop.f32.mrb[7].mxu1  ;;  %v2544_v44 = vpop.f32.mrb[14].mxu0  ;;  %v1647_v51 = vsel %vm1258_vm8, %v1605_v23, 0.0  ;;  %v1531_v52 = vsel %vm1225_vm9, %v2084_v28, 0.0  ;;  %v1528_v53 = vadd.f32 %v1527_v48, %v1526_v43 }
 0x104   : > { %3204 = vst [vmem:[#allocation4_spill] sm:$0xff] %v2544_v44  ;;  %v1733_v55 = vadd.f32 %v1732_v31, %v1731_v32  ;;  %1345 = vrot.lane.b32.xlu1 %v2502_v2, %s2163_s28  ;;  %v2550_v56 = vpop.f32.mrb[15].mxu0  ;;  %v1738_v58 = vsel %vm1225_vm9, %v1701_v42, 0.0  ;;  %v1734_v59 = vsel %vm1225_vm9, %v1699_v49, 0.0  ;;  %v1608_v60 = vmul.f32 %v2530_v37, %v2530_v37 }
 0x105   : > { %3205 = vst [vmem:[#allocation5_spill] sm:$0xff] %v2550_v56  ;;  %v1646_v57 = vadd.f32 %v1645_v18, %v1644_v47  ;;  %v1478_v63 = vsel %vm1258_vm8, %v2530_v37, 0.0  ;;  %v1529_v0 = vsel %vm1225_vm9, %v2542_v50, 0.0  ;;  %v1700_v1 = vmul.f32 %v2542_v50, %v2542_v50 }
 0x106   : > { %v1735_v62 = vadd.f32 %v1734_v59, %v1733_v55  ;;  %1339 = vrot.lane.b32.xlu0 %v2494_v61, %s2163_s28  ;;  %v1702_v3 = vmul.f32 %v2085_v45, %v2085_v45  ;;  %v1530_v5 = vadd.f32 %v1529_v0, %v1528_v53  ;;  %v1473_v6 = vadd.f32 %v1472_v40, %v1471_v38 }
 0x107   : > { %v1474_v7 = vsel %vm1258_vm8, %v2536_v46, 0.0  ;;  %v1533_v25 = vsel %vm1225_vm9, %v2085_v45, 0.0  ;;  %v1736_v9 = vsel %vm1225_vm9, %v1700_v1, 0.0  ;;  %v1606_v4 = vmul.f32 %v2536_v46, %v2536_v46 }
 0x108   : > { %v1648_v13 = vadd.f32 %v1647_v51, %v1646_v57  ;;  %v2570_v14 = vpop.f32.mrb[8].mxu1  ;;  %1341 = vrot.lane.b32.xlu1 %v2507_v8, %s2163_s28  ;;  %v1653_v15 = vsel %vm1258_vm8, %v1608_v60, 0.0  ;;  %v1532_v16 = vadd.f32 %v1531_v52, %v1530_v5  ;;  %v1737_v17 = vadd.f32 %v1736_v9, %v1735_v62 }
 0x109   : > { %v1475_v18 = vadd.f32 %v1474_v7, %v1473_v6  ;;  %v2575_v19 = vpop.f32.mrb[9].mxu1  ;;  %v2577_v20 = vpop.f32.mrb[16].mxu0  ;;  %v1649_v21 = vsel %vm1258_vm8, %v1606_v4, 0.0  ;;  %v1609_v22 = vmul.f32 %v2544_v44, %v2544_v44  ;;  %v1476_v23 = vsel %vm1258_vm8, %v2550_v56, 0.0 }
 0x10a   : > { %3206 = vst [vmem:[#allocation6_spill] sm:$0xff] %v2577_v20  ;;  %v1607_v24 = vmul.f32 %v2550_v56, %v2550_v56  ;;  %v2586_v26 = vpop.f32.mrb[10].mxu1  ;;  %1141 = vrot.lane.b32.xlu0 %v2084_v28, %s2164_s29  ;;  %v2589_v31 = vpop.f32.mrb[17].mxu0  ;;  %v1740_v32 = vsel %vm1225_vm9, %v1702_v3, 0.0  ;;  %v1739_v33 = vadd.f32 %v1738_v58, %v1737_v17  ;;  %v1650_v34 = vadd.f32 %v1649_v21, %v1648_v13 }
 0x10b   : > { %3207 = vst [vmem:[#allocation7_spill] sm:$0xff] %v2589_v31  ;;  %v1477_v40 = vadd.f32 %v1476_v23, %v1475_v18  ;;  %v2592_v41 = vpop.f32.mrb[11].mxu1  ;;  %v2594_v42 = vpop.f32.mrb[18].mxu0  ;;  %v1480_v43 = vsel %vm1258_vm8, %v2544_v44, 0.0  ;;  %v1705_v47 = vmul.f32 %v2570_v14, %v2570_v14  ;;  %v1534_v28 = vadd.f32 %v1533_v25, %v1532_v16 }
 0x10c   : > { %3208 = vst [vmem:[#allocation8_spill] sm:$0xff] %v2594_v42  ;;  %v1651_v38 = vsel %vm1258_vm8, %v1607_v24, 0.0  ;;  %1143 = vrot.lane.b32.xlu1 %v2085_v45, %s2164_s29  ;;  %v2602_v48 = vpop.f32.mrb[19].mxu0  ;;  %v1535_v52 = vsel %vm1225_vm9, %v2575_v19, 0.0  ;;  %v1703_v53 = vmul.f32 %v2575_v19, %v2575_v19  ;;  %v1655_v55 = vsel %vm1258_vm8, %v1609_v22, 0.0 }
 0x10d   : > { %3209 = vst [vmem:[#allocation9_spill] sm:$0xff] %v2602_v48  ;;  %v1479_v49 = vadd.f32 %v1478_v63, %v1477_v40  ;;  %v1652_v51 = vadd.f32 %v1651_v38, %v1650_v34  ;;  %v1539_v57 = vsel %vm1225_vm9, %v2570_v14, 0.0  ;;  %v1536_v58 = vadd.f32 %v1535_v52, %v1534_v28 }
 0x10e   : > { %v1741_v59 = vadd.f32 %v1740_v32, %v1739_v33  ;;  %1137 = vrot.lane.b32.xlu0 %v2528_v36, %s2164_s29  ;;  %v1746_v60 = vsel %vm1225_vm9, %v1705_v47, 0.0  ;;  %v1742_v62 = vsel %vm1225_vm9, %v1703_v53, 0.0  ;;  %v1612_v63 = vmul.f32 %v2577_v20, %v2577_v20 }
 0x10f   : > { %v1654_v45 = vadd.f32 %v1653_v15, %v1652_v51  ;;  %v1486_v1 = vsel %vm1258_vm8, %v2577_v20, 0.0  ;;  %v1537_v3 = vsel %vm1225_vm9, %v2592_v41, 0.0  ;;  %v1704_v5 = vmul.f32 %v2592_v41, %v2592_v41 }
 0x110   : > { %v1743_v0 = vadd.f32 %v1742_v62, %v1741_v59  ;;  %v2623_v6 = vpop.f32.mrb[12].mxu1  ;;  %1139 = vrot.lane.b32.xlu1 %v2542_v50, %s2164_s29  ;;  %v1706_v36 = vmul.f32 %v2586_v26, %v2586_v26  ;;  %v1538_v7 = vadd.f32 %v1537_v3, %v1536_v58  ;;  %v1481_v25 = vadd.f32 %v1480_v43, %v1479_v49 }
 0x111   : > { %v1482_v9 = vsel %vm1258_vm8, %v2589_v31, 0.0  ;;  %v2631_v4 = vpop.f32.mrb[13].mxu1  ;;  %v2633_v13 = vpop.f32.mrb[20].mxu0  ;;  %v1541_v15 = vsel %vm1225_vm9, %v2586_v26, 0.0  ;;  %v1744_v16 = vsel %vm1225_vm9, %v1704_v5, 0.0  ;;  %v1610_v50 = vmul.f32 %v2589_v31, %v2589_v31 }
 0x112   : > { %v1656_v17 = vadd.f32 %v1655_v55, %v1654_v45  ;;  %v2640_v18 = vpop.f32.mrb[14].mxu1  ;;  %1351 = vrot.lane.b32.xlu0 %v2530_v37, %s2163_s28  ;;  %v2644_v21 = vpop.f32.mrb[21].mxu0  ;;  %v1661_v22 = vsel %vm1258_vm8, %v1612_v63, 0.0  ;;  %v1540_v23 = vadd.f32 %v1539_v57, %v1538_v7  ;;  %v1745_v24 = vadd.f32 %v1744_v16, %v1743_v0 }
 0x113   : > { %v1483_v32 = vadd.f32 %v1482_v9, %v1481_v25  ;;  %v2647_v33 = vpop.f32.mrb[15].mxu1  ;;  %v2649_v34 = vpop.f32.mrb[22].mxu0  ;;  %v1657_v40 = vsel %vm1258_vm8, %v1610_v50, 0.0  ;;  %v1613_v43 = vmul.f32 %v2594_v42, %v2594_v42  ;;  %v1484_v38 = vsel %vm1258_vm8, %v2602_v48, 0.0 }
 0x114   : > { %v1611_v47 = vmul.f32 %v2602_v48, %v2602_v48  ;;  %1353 = vrot.lane.b32.xlu1 %v2544_v44, %s2163_s28  ;;  %v2660_v28 = vpop.f32.mrb[23].mxu0  ;;  %v1748_v49 = vsel %vm1225_vm9, %v1706_v36, 0.0  ;;  %v1747_v51 = vadd.f32 %v1746_v60, %v1745_v24  ;;  %v1658_v52 = vadd.f32 %v1657_v40, %v1656_v17 }
 0x115   : > { %v1485_v53 = vadd.f32 %v1484_v38, %v1483_v32  ;;  %v1488_v55 = vsel %vm1258_vm8, %v2594_v42, 0.0  ;;  %v1709_v58 = vmul.f32 %v2623_v6, %v2623_v6  ;;  %v1542_v59 = vadd.f32 %v1541_v15, %v1540_v23 }
 0x116   : > { %v1659_v57 = vsel %vm1258_vm8, %v1611_v47, 0.0  ;;  %1347 = vrot.lane.b32.xlu0 %v2536_v46, %s2163_s28  ;;  %v1543_v63 = vsel %vm1225_vm9, %v2631_v4, 0.0  ;;  %v1707_v60 = vmul.f32 %v2631_v4, %v2631_v4  ;;  %v1663_v0 = vsel %vm1258_vm8, %v1613_v43, 0.0 }
 0x117   : > { %v1487_v45 = vadd.f32 %v1486_v1, %v1485_v53  ;;  %v1660_v62 = vadd.f32 %v1659_v57, %v1658_v52  ;;  %v1547_v3 = vsel %vm1225_vm9, %v2623_v6, 0.0  ;;  %v1544_v5 = vadd.f32 %v1543_v63, %v1542_v59 }
 0x118   : > { %v1749_v36 = vadd.f32 %v1748_v49, %v1747_v51  ;;  %v2677_v7 = vpop.f32.mrb[16].mxu1  ;;  %1349 = vrot.lane.b32.xlu1 %v2550_v56, %s2163_s28  ;;  %v1754_v25 = vsel %vm1225_vm9, %v1709_v58, 0.0  ;;  %v1750_v9 = vsel %vm1225_vm9, %v1707_v60, 0.0  ;;  %v1616_v15 = vmul.f32 %v2633_v13, %v2633_v13 }
 0x119   : > { %v1662_v1 = vadd.f32 %v1661_v22, %v1660_v62  ;;  %v2685_v16 = vpop.f32.mrb[17].mxu1  ;;  %v2687_v50 = vpop.f32.mrb[24].mxu0  ;;  %v1494_v23 = vsel %vm1258_vm8, %v2633_v13, 0.0  ;;  %v1545_v24 = vsel %vm1225_vm9, %v2647_v33, 0.0  ;;  %v1708_v22 = vmul.f32 %v2647_v33, %v2647_v33 }
 0x11a   : > { %v1751_v17 = vadd.f32 %v1750_v9, %v1749_v36  ;;  %v2695_v32 = vpop.f32.mrb[18].mxu1  ;;  %1149 = vrot.lane.b32.xlu0 %v2570_v14, %s2164_s29  ;;  %v2699_v40 = vpop.f32.mrb[25].mxu0  ;;  %v1710_v43 = vmul.f32 %v2640_v18, %v2640_v18  ;;  %v1546_v38 = vadd.f32 %v1545_v24, %v1544_v5  ;;  %v1489_v47 = vadd.f32 %v1488_v55, %v1487_v45 }
 0x11b   : > { %v1490_v49 = vsel %vm1258_vm8, %v2644_v21, 0.0  ;;  %v2705_v51 = vpop.f32.mrb[19].mxu1  ;;  %v2707_v52 = vpop.f32.mrb[26].mxu0  ;;  %v1549_v53 = vsel %vm1225_vm9, %v2640_v18, 0.0  ;;  %v1752_v57 = vsel %vm1225_vm9, %v1708_v22, 0.0  ;;  %v1614_v14 = vmul.f32 %v2644_v21, %v2644_v21 }
 0x11c   : > { %v1664_v58 = vadd.f32 %v1663_v0, %v1662_v1  ;;  %1151 = vrot.lane.b32.xlu1 %v2586_v26, %s2164_s29  ;;  %v2716_v55 = vpop.f32.mrb[27].mxu0  ;;  %v1669_v59 = vsel %vm1258_vm8, %v1616_v15, 0.0  ;;  %v1548_v45 = vadd.f32 %v1547_v3, %v1546_v38  ;;  %v1753_v62 = vadd.f32 %v1752_v57, %v1751_v17 }
 0x11d   : > { %v1491_v63 = vadd.f32 %v1490_v49, %v1489_v47  ;;  %v1665_v60 = vsel %vm1258_vm8, %v1614_v14, 0.0  ;;  %v1617_v5 = vmul.f32 %v2649_v34, %v2649_v34  ;;  %v1492_v36 = vsel %vm1258_vm8, %v2660_v28, 0.0 }
 0x11e   : > { %v1615_v0 = vmul.f32 %v2660_v28, %v2660_v28  ;;  %1145 = vrot.lane.b32.xlu0 %v2575_v19, %s2164_s29  ;;  %v1756_v26 = vsel %vm1225_vm9, %v1710_v43, 0.0  ;;  %v1755_v1 = vadd.f32 %v1754_v25, %v1753_v62  ;;  %v1666_v3 = vadd.f32 %v1665_v60, %v1664_v58 }
 0x11f   : > { %v1493_v9 = vadd.f32 %v1492_v36, %v1491_v63  ;;  %v1496_v15 = vsel %vm1258_vm8, %v2649_v34, 0.0  ;;  %v1713_v24 = vmul.f32 %v2677_v7, %v2677_v7  ;;  %v1550_v22 = vadd.f32 %v1549_v53, %v1548_v45 }
 0x120   : > { %v1667_v17 = vsel %vm1258_vm8, %v1615_v0, 0.0  ;;  %v2734_v38 = vpop.f32.mrb[20].mxu1  ;;  %1147 = vrot.lane.b32.xlu1 %v2592_v41, %s2164_s29  ;;  %v1551_v25 = vsel %vm1225_vm9, %v2685_v16, 0.0  ;;  %v1711_v43 = vmul.f32 %v2685_v16, %v2685_v16  ;;  %v1671_v14 = vsel %vm1258_vm8, %v1617_v5, 0.0 }
 0x121   : > { %v1495_v19 = vadd.f32 %v1494_v23, %v1493_v9  ;;  %v1668_v47 = vadd.f32 %v1667_v17, %v1666_v3  ;;  %v2742_v49 = vpop.f32.mrb[21].mxu1  ;;  %v2744_v57 = vpop.f32.mrb[28].mxu0  ;;  %v1555_v53 = vsel %vm1225_vm9, %v2677_v7, 0.0  ;;  %v1552_v58 = vadd.f32 %v1551_v25, %v1550_v22 }
 0x122   : > { %v1757_v45 = vadd.f32 %v1756_v26, %v1755_v1  ;;  %v2749_v41 = vpop.f32.mrb[22].mxu1  ;;  %1359 = vrot.lane.b32.xlu0 %v2577_v20, %s2163_s28  ;;  %v2753_v23 = vpop.f32.mrb[29].mxu0  ;;  %v1762_v63 = vsel %vm1225_vm9, %v1713_v24, 0.0  ;;  %v1758_v60 = vsel %vm1225_vm9, %v1711_v43, 0.0  ;;  %v1620_v5 = vmul.f32 %v2687_v50, %v2687_v50 }
 0x123   : > { %v1670_v62 = vadd.f32 %v1669_v59, %v1668_v47  ;;  %v2759_v36 = vpop.f32.mrb[23].mxu1  ;;  %v2761_v0 = vpop.f32.mrb[30].mxu0  ;;  %v1502_v1 = vsel %vm1258_vm8, %v2687_v50, 0.0  ;;  %v1553_v3 = vsel %vm1225_vm9, %v2705_v51, 0.0  ;;  %v1712_v59 = vmul.f32 %v2705_v51, %v2705_v51 }
 0x124   : > { %v1759_v26 = vadd.f32 %v1758_v60, %v1757_v45  ;;  %1361 = vrot.lane.b32.xlu1 %v2594_v42, %s2163_s28  ;;  %v2771_v9 = vpop.f32.mrb[31].mxu0  ;;  %v1714_v17 = vmul.f32 %v2695_v32, %v2695_v32  ;;  %v1554_v24 = vadd.f32 %v1553_v3, %v1552_v58  ;;  %v1497_v22 = vadd.f32 %v1496_v15, %v1495_v19 }
 0x125   : > { %v1498_v47 = vsel %vm1258_vm8, %v2699_v40, 0.0  ;;  %v1557_v25 = vsel %vm1225_vm9, %v2695_v32, 0.0  ;;  %v1760_v43 = vsel %vm1225_vm9, %v1712_v59, 0.0  ;;  %v1618_v45 = vmul.f32 %v2699_v40, %v2699_v40 }
 0x126   : > { %v1672_v60 = vadd.f32 %v1671_v14, %v1670_v62  ;;  %1355 = vrot.lane.b32.xlu0 %v2589_v31, %s2163_s28  ;;  %v1677_v42 = vsel %vm1258_vm8, %v1620_v5, 0.0  ;;  %v1556_v20 = vadd.f32 %v1555_v53, %v1554_v24  ;;  %v1761_v58 = vadd.f32 %v1760_v43, %v1759_v26 }
 0x127   : > { %v1499_v15 = vadd.f32 %v1498_v47, %v1497_v22  ;;  %v1673_v19 = vsel %vm1258_vm8, %v1618_v45, 0.0  ;;  %v1621_v3 = vmul.f32 %v2707_v52, %v2707_v52  ;;  %v1500_v59 = vsel %vm1258_vm8, %v2716_v55, 0.0 }
 0x128   : > { %v1619_v56 = vmul.f32 %v2716_v55, %v2716_v55  ;;  %v2792_v14 = vpop.f32.mrb[24].mxu1  ;;  %1357 = vrot.lane.b32.xlu1 %v2602_v48, %s2163_s28  ;;  %v1764_v53 = vsel %vm1225_vm9, %v1714_v17, 0.0  ;;  %v1763_v62 = vadd.f32 %v1762_v63, %v1761_v58  ;;  %v1674_v5 = vadd.f32 %v1673_v19, %v1672_v60 }
 0x129   : > { %v1501_v26 = vadd.f32 %v1500_v59, %v1499_v15  ;;  %v2797_v24 = vpop.f32.mrb[25].mxu1  ;;  %v1504_v22 = vsel %vm1258_vm8, %v2707_v52, 0.0  ;;  %v1717_v43 = vmul.f32 %v2734_v38, %v2734_v38  ;;  %v1558_v45 = vadd.f32 %v1557_v25, %v1556_v20 }
 0x12a   : > { %v1675_v47 = vsel %vm1258_vm8, %v1619_v56, 0.0  ;;  %v2804_v31 = vpop.f32.mrb[26].mxu1  ;;  %1157 = vrot.lane.b32.xlu0 %v2623_v6, %s2164_s29  ;;  %v1559_v60 = vsel %vm1225_vm9, %v2742_v49, 0.0  ;;  %v1715_v58 = vmul.f32 %v2742_v49, %v2742_v49  ;;  %v1679_v56 = vsel %vm1258_vm8, %v1621_v3, 0.0 }
 0x12b   : > { %v1503_v17 = vadd.f32 %v1502_v1, %v1501_v26  ;;  %v1676_v63 = vadd.f32 %v1675_v47, %v1674_v5  ;;  %v2812_v15 = vpop.f32.mrb[27].mxu1  ;;  %v1563_v20 = vsel %vm1225_vm9, %v2734_v38, 0.0  ;;  %v1560_v25 = vadd.f32 %v1559_v60, %v1558_v45 }
 0x12c   : > { %v1765_v19 = vadd.f32 %v1764_v53, %v1763_v62  ;;  %1159 = vrot.lane.b32.xlu1 %v2640_v18, %s2164_s29  ;;  %v1770_v1 = vsel %vm1225_vm9, %v1717_v43, 0.0  ;;  %v1766_v59 = vsel %vm1225_vm9, %v1715_v58, 0.0  ;;  %v1624_v5 = vmul.f32 %v2744_v57, %v2744_v57 }
 0x12d   : > { %v1678_v6 = vadd.f32 %v1677_v42, %v1676_v63  ;;  %v1718_v3 = vmul.f32 %v2749_v41, %v2749_v41  ;;  %v1561_v47 = vsel %vm1225_vm9, %v2759_v36, 0.0  ;;  %v1716_v53 = vmul.f32 %v2759_v36, %v2759_v36 }
 0x12e   : > { %v1767_v26 = vadd.f32 %v1766_v59, %v1765_v19  ;;  %1153 = vrot.lane.b32.xlu0 %v2631_v4, %s2164_s29  ;;  %v1510_v42 = vsel %vm1258_vm8, %v2744_v57, 0.0  ;;  %v1565_v18 = vsel %vm1225_vm9, %v2749_v41, 0.0  ;;  %v1562_v62 = vadd.f32 %v1561_v47, %v1560_v25 }
 0x12f   : > { %v1622_v43 = vmul.f32 %v2753_v23, %v2753_v23  ;;  %v1685_v45 = vsel %vm1258_vm8, %v1624_v5, 0.0  ;;  %v1768_v63 = vsel %vm1225_vm9, %v1716_v53, 0.0  ;;  %v1506_v60 = vsel %vm1258_vm8, %v2753_v23, 0.0 }
 0x130   : > { %v1625_v4 = vmul.f32 %v2761_v0, %v2761_v0  ;;  %v2843_v58 = vpop.f32.mrb[28].mxu1  ;;  %1155 = vrot.lane.b32.xlu1 %v2647_v33, %s2164_s29  ;;  %v1564_v19 = vadd.f32 %v1563_v20, %v1562_v62  ;;  %v1769_v25 = vadd.f32 %v1768_v63, %v1767_v26  ;;  %v1505_v47 = vadd.f32 %v1504_v22, %v1503_v17 }
 0x131   : > { %v1681_v59 = vsel %vm1258_vm8, %v1622_v43, 0.0  ;;  %v2848_v48 = vpop.f32.mrb[29].mxu1  ;;  %v1772_v5 = vsel %vm1225_vm9, %v1718_v3, 0.0  ;;  %v1508_v53 = vsel %vm1258_vm8, %v2771_v9, 0.0  ;;  %v1623_v46 = vmul.f32 %v2771_v9, %v2771_v9 }
 0x132   : > { %v1680_v44 = vadd.f32 %v1679_v56, %v1678_v6  ;;  %v2855_v37 = vpop.f32.mrb[30].mxu1  ;;  %1367 = vrot.lane.b32.xlu0 %v2633_v13, %s2163_s28  ;;  %v1771_v33 = vadd.f32 %v1770_v1, %v1769_v25  ;;  %v1512_v22 = vsel %vm1258_vm8, %v2761_v0, 0.0  ;;  %v1687_v17 = vsel %vm1258_vm8, %v1625_v4, 0.0 }
 0x133   : > { %v1507_v20 = vadd.f32 %v1506_v60, %v1505_v47  ;;  %v2862_v26 = vpop.f32.mrb[31].mxu1  ;;  %v1683_v62 = vsel %vm1258_vm8, %v1623_v46, 0.0  ;;  %v1566_v43 = vadd.f32 %v1565_v18, %v1564_v19  ;;  %v1567_v56 = vsel %vm1225_vm9, %v2797_v24, 0.0 }
 0x134   : > { %v1682_v3 = vadd.f32 %v1681_v59, %v1680_v44  ;;  %1369 = vrot.lane.b32.xlu1 %v2649_v34, %s2163_s28  ;;  %v1721_v1 = vmul.f32 %v2792_v14, %v2792_v14  ;;  %v1719_v63 = vmul.f32 %v2797_v24, %v2797_v24  ;;  %v1773_v60 = vadd.f32 %v1772_v5, %v1771_v33 }
 0x135   : > { %v1509_v6 = vadd.f32 %v1508_v53, %v1507_v20  ;;  %v1571_v44 = vsel %vm1225_vm9, %v2792_v14, 0.0  ;;  %v1568_v46 = vadd.f32 %v1567_v56, %v1566_v43  ;;  %v1722_v18 = vmul.f32 %v2804_v31, %v2804_v31 }
 0x136   : > { %v1684_v4 = vadd.f32 %v1683_v62, %v1682_v3  ;;  %1363 = vrot.lane.b32.xlu0 %v2644_v21, %s2163_s28  ;;  %v1774_v25 = vsel %vm1225_vm9, %v1719_v63, 0.0  ;;  %v1569_v59 = vsel %vm1225_vm9, %v2812_v15, 0.0  ;;  %v1720_v47 = vmul.f32 %v2812_v15, %v2812_v15 }
 0x137   : > { %v1511_v19 = vadd.f32 %v1510_v42, %v1509_v6  ;;  %v1775_v53 = vadd.f32 %v1774_v25, %v1773_v60  ;;  %v1570_v33 = vadd.f32 %v1569_v59, %v1568_v46  ;;  %v1778_v3 = vsel %vm1225_vm9, %v1721_v1, 0.0 }
 0x138   : > { %v1686_v5 = vadd.f32 %v1685_v45, %v1684_v4  ;;  %1365 = vrot.lane.b32.xlu1 %v2660_v28, %s2163_s28  ;;  %v1573_v42 = vsel %vm1225_vm9, %v2804_v31, 0.0  ;;  %v1776_v62 = vsel %vm1225_vm9, %v1720_v47, 0.0  ;;  %v1780_v45 = vsel %vm1225_vm9, %v1722_v18, 0.0 }
 0x139   : > { %v2886_v20 = vadd.f32 %v1512_v22, %v1511_v19  ;;  %v1572_v56 = vadd.f32 %v1571_v44, %v1570_v33  ;;  %v1777_v6 = vadd.f32 %v1776_v62, %v1775_v53  ;;  %v1575_v22 = vsel %vm1225_vm9, %v2848_v48, 0.0 }
 0x13a   : > { %v2892_v43 = vadd.f32 %v1687_v17, %v1686_v5  ;;  %1165 = vrot.lane.b32.xlu0 %v2677_v7, %s2164_s29  ;;  %v1723_v1 = vmul.f32 %v2848_v48, %v2848_v48  ;;  %v1725_v17 = vmul.f32 %v2843_v58, %v2843_v58  ;;  %v1577_v7 = vsel %vm1225_vm9, %v2862_v26, 0.0 }
 0x13b   : > { %v1779_v63 = vadd.f32 %v1778_v3, %v1777_v6  ;;  %v1574_v60 = vadd.f32 %v1573_v42, %v1572_v56  ;;  %v1724_v44 = vmul.f32 %v2862_v26, %v2862_v26  ;;  %v1579_v19 = vsel %vm1225_vm9, %v2843_v58, 0.0 }
 0x13c   : > { %1167 = vrot.lane.b32.xlu1 %v2695_v32, %s2164_s29  ;;  %v1782_v4 = vsel %vm1225_vm9, %v1723_v1, 0.0  ;;  %v1726_v32 = vmul.f32 %v2855_v37, %v2855_v37  ;;  %v1786_v5 = vsel %vm1225_vm9, %v1725_v17, 0.0  ;;  %v1581_v53 = vsel %vm1225_vm9, %v2855_v37, 0.0 }
 0x13d   : > { %v1576_v46 = vadd.f32 %v1575_v22, %v1574_v60  ;;  %v1781_v18 = vadd.f32 %v1780_v45, %v1779_v63  ;;  %v1784_v25 = vsel %vm1225_vm9, %v1724_v44, 0.0 }
 0x13e   : > { %1161 = vrot.lane.b32.xlu0 %v2685_v16, %s2164_s29  ;;  %v1788_v3 = vsel %vm1225_vm9, %v1726_v32, 0.0 }
 0x13f   : > { %v1783_v59 = vadd.f32 %v1782_v4, %v1781_v18  ;;  %v1578_v47 = vadd.f32 %v1577_v7, %v1576_v46 }
 0x140   : > { %1163 = vrot.lane.b32.xlu1 %v2705_v51, %s2164_s29 }
 0x141   : > { %v1580_v33 = vadd.f32 %v1579_v19, %v1578_v47  ;;  %v1785_v16 = vadd.f32 %v1784_v25, %v1783_v59 }
 0x142   : > { %1375 = vrot.lane.b32.xlu0 %v2687_v50, %s2163_s28 }
 0x143   : > { %v1582_v42 = vadd.f32 %v1581_v53, %v1580_v33  ;;  %v1787_v62 = vadd.f32 %v1786_v5, %v1785_v16 }
 0x144   : > { %1377 = vrot.lane.b32.xlu1 %v2707_v52, %s2163_s28 }
 0x145   : > { %v1789_v56 = vadd.f32 %v1788_v3, %v1787_v62  ;;  %v1583_v51 = vrot.slane %v1582_v42, 4 }
 0x146   : > { %1371 = vrot.lane.b32.xlu0 %v2699_v40, %s2163_s28 }
 0x147   : > { %v1790_v6 = vrot.slane %v1789_v56, 4  ;;  %v1584_v45 = vadd.f32 %v1583_v51, %v1582_v42 }
 0x148   : > { %1373 = vrot.lane.b32.xlu1 %v2716_v55, %s2163_s28 }
 0x14a   : > { %1173 = vrot.lane.b32.xlu0 %v2734_v38, %s2164_s29  ;;  %v1791_v38 = vadd.f32 %v1790_v6, %v1789_v56 }
 0x14c   : > { %1175 = vrot.lane.b32.xlu1 %v2749_v41, %s2164_s29  ;;  %v1792_v41 = vrot.slane %v1791_v38, 2 }
 0x14e   : > { %1169 = vrot.lane.b32.xlu0 %v2742_v49, %s2164_s29  ;;  %v1585_v49 = vrot.slane %v1584_v45, 2 }
 0x150   : > { %1171 = vrot.lane.b32.xlu1 %v2759_v36, %s2164_s29 }
 0x152   : > { %1379 = vrot.lane.b32.xlu0 %v2753_v23, %s2163_s28 }
 0x154   : > { %1381 = vrot.lane.b32.xlu1 %v2771_v9, %s2163_s28 }
 0x156   : > { %1181 = vrot.lane.b32.xlu0 %v2792_v14, %s2164_s29 }
 0x158   : > { %1183 = vrot.lane.b32.xlu1 %v2804_v31, %s2164_s29  ;;  %v1586_v31 = vadd.f32 %v1585_v49, %v1584_v45 }
 0x15a   : > { %1177 = vrot.lane.b32.xlu0 %v2797_v24, %s2164_s29  ;;  %v1793_v24 = vadd.f32 %v1792_v41, %v1791_v38  ;;  %v1587_v1 = vrot.slane %v1586_v31, 1 }
 0x15c   : > { %v1328_v36 = vpop.permute.xlu0 %1327  ;;  %1179 = vrot.lane.b32.xlu1 %v2812_v15, %s2164_s29  ;;  %v1794_v63 = vrot.slane %v1793_v24, 1  ;;  %v1588_v60 = vadd.f32 %v1587_v1, %v1586_v31 }
 0x15d   : > { %1421 = vst.msk [vmem:[%s2955_s8 + $0x10] sm:$0xff] %vm1225_vm9, %v1328_v36 }
 0x15e   : > { %v1330_v14 = vpop.permute.xlu1 %1329  ;;  %1189 = vrot.lane.b32.xlu0 %v2843_v58, %s2164_s29  ;;  %v1795_v17 = vadd.f32 %v1794_v63, %v1793_v24  ;;  %v3212_v63 = vld [vmem:[#allocation3_spill] sm:$0xff] }
 0x15f   : > { %1422 = vst.msk [vmem:[%s2955_s8 + $0x18] sm:$0xff] %vm1225_vm9, %v1330_v14 }
 0x160   : > { %v1324_v22 = vpop.permute.xlu0 %1323  ;;  %1191 = vrot.lane.b32.xlu1 %v2855_v37, %s2164_s29 }
 0x161   : > { %1419 = vst.msk [vmem:[%s2955_s8] sm:$0xff] %vm1225_vm9, %v1324_v22  ;;  %v3211_v22 = vld [vmem:[#allocation4_spill] sm:$0xff] }
 0x162   : > { %v1326_v15 = vpop.permute.xlu1 %1325  ;;  %1185 = vrot.lane.b32.xlu0 %v2848_v48, %s2164_s29 }
 0x163   : > { %1420 = vst.msk [vmem:[%s2955_s8 + $0x8] sm:$0xff] %vm1225_vm9, %v1326_v15 }
 0x164   : > { %v1336_v58 = vpop.permute.xlu0 %1335  ;;  %1187 = vrot.lane.b32.xlu1 %v2862_v26, %s2164_s29 }
 0x165   : > { %1425 = vst.msk [vmem:[%s2955_s8 + $0x30] sm:$0xff] %vm1225_vm9, %v1336_v58 }
 0x166   : > { %v1338_v37 = vpop.permute.xlu1 %1337  ;;  %1590 = vrot.lane.b32.xlu0 %v1588_v60, %s2165_s9 }
 0x167   : > { %1426 = vst.msk [vmem:[%s2955_s8 + $0x38] sm:$0xff] %vm1225_vm9, %v1338_v37  ;;  %v3213_v37 = vld [vmem:[#allocation5_spill] sm:$0xff] }
 0x168   : > { %v1332_v48 = vpop.permute.xlu0 %1331  ;;  %1797 = vrot.lane.b32.xlu1 %v1795_v17, %s2165_s9 }
 0x169   : > { %1423 = vst.msk [vmem:[%s2955_s8 + $0x20] sm:$0xff] %vm1225_vm9, %v1332_v48 }
 0x16a   : > { %v1334_v4 = vpop.permute.xlu1 %1333  ;;  %1383 = vrot.lane.b32.xlu0 %v2744_v57, %s2163_s28 }
 0x16b   : > { %1424 = vst.msk [vmem:[%s2955_s8 + $0x28] sm:$0xff] %vm1225_vm9, %v1334_v4 }
 0x16c   : > { %v1130_v26 = vpop.permute.xlu0 %1129  ;;  %1385 = vrot.lane.b32.xlu1 %v2761_v0, %s2163_s28 }
 0x16d   : > { %v1226_v7 = vsel %vm1225_vm9, %v2423_v11, %v1130_v26 }
 0x16e   : > { %1259 = vst.msk [vmem:[%s2990_s12] sm:$0xff] %vm1258_vm8, %v1226_v7  ;;  %v1134_v44 = vpop.permute.xlu1 %1133 }
 0x16f   : > { %v1228_v46 = vsel %vm1225_vm9, %v2419_v35, %v1134_v44 }
 0x170   : > { %1261 = vst.msk [vmem:[%s2990_s12 + $0x10] sm:$0xff] %vm1258_vm8, %v1228_v46  ;;  %v1344_v18 = vpop.permute.xlu0 %1343  ;;  %v3214_v46 = vld [vmem:[#allocation6_spill] sm:$0xff] }
 0x171   : > { %1429 = vst.msk [vmem:[%s2955_s8 + $0x50] sm:$0xff] %vm1225_vm9, %v1344_v18 }
 0x172   : > { %v1136_v19 = vpop.permute.xlu1 %1135 }
 0x173   : > { %v1229_v32 = vsel %vm1225_vm9, %v2427_v10, %v1136_v19 }
 0x174   : > { %1262 = vst.msk [vmem:[%s2990_s12 + $0x18] sm:$0xff] %vm1258_vm8, %v1229_v32  ;;  %v1132_v11 = vpop.permute.xlu0 %1131  ;;  %v3215_v32 = vld [vmem:[#allocation8_spill] sm:$0xff] }
 0x175   : > { %v1227_v25 = vsel %vm1225_vm9, %v2431_v12, %v1132_v11 }
 0x176   : > { %1260 = vst.msk [vmem:[%s2990_s12 + $0x8] sm:$0xff] %vm1258_vm8, %v1227_v25  ;;  %v1346_v35 = vpop.permute.xlu1 %1345 }
 0x177   : > { %1430 = vst.msk [vmem:[%s2955_s8 + $0x58] sm:$0xff] %vm1225_vm9, %v1346_v35  ;;  %v3216_v35 = vld [vmem:[#allocation7_spill] sm:$0xff] }
 0x178   : > { %v1340_v59 = vpop.permute.xlu0 %1339 }
 0x179   : > { %1427 = vst.msk [vmem:[%s2955_s8 + $0x40] sm:$0xff] %vm1225_vm9, %v1340_v59 }
 0x17a   : > { %v1342_v47 = vpop.permute.xlu1 %1341 }
 0x17b   : > { %1428 = vst.msk [vmem:[%s2955_s8 + $0x48] sm:$0xff] %vm1225_vm9, %v1342_v47 }
 0x17c   : > { %v1142_v10 = vpop.permute.xlu0 %1141 }
 0x17d   : > { %v1232_v5 = vsel %vm1225_vm9, %v2454_v27, %v1142_v10  ;;  %v3217_v10 = vld [vmem:[#allocation9_spill] sm:$0xff] }
 0x17e   : > { %1265 = vst.msk [vmem:[%s2990_s12 + $0x30] sm:$0xff] %vm1258_vm8, %v1232_v5  ;;  %v1144_v12 = vpop.permute.xlu1 %1143 }
 0x17f   : > { %v1233_v53 = vsel %vm1225_vm9, %v2465_v30, %v1144_v12 }
 0x180   : > { %1266 = vst.msk [vmem:[%s2990_s12 + $0x38] sm:$0xff] %vm1258_vm8, %v1233_v53  ;;  %v1138_v33 = vpop.permute.xlu0 %1137 }
 0x181   : > { %v1230_v16 = vsel %vm1225_vm9, %v2458_v29, %v1138_v33 }
 0x182   : > { %1263 = vst.msk [vmem:[%s2990_s12 + $0x20] sm:$0xff] %vm1258_vm8, %v1230_v16  ;;  %v1140_v3 = vpop.permute.xlu1 %1139 }
 0x183   : > { %v1231_v27 = vsel %vm1225_vm9, %v2469_v39, %v1140_v3 }
 0x184   : > { %1264 = vst.msk [vmem:[%s2990_s12 + $0x28] sm:$0xff] %vm1258_vm8, %v1231_v27  ;;  %v1352_v42 = vpop.permute.xlu0 %1351 }
 0x185   : > { %1433 = vst.msk [vmem:[%s2955_s8 + $0x70] sm:$0xff] %vm1225_vm9, %v1352_v42 }
 0x186   : > { %v1354_v30 = vpop.permute.xlu1 %1353 }
 0x187   : > { %1434 = vst.msk [vmem:[%s2955_s8 + $0x78] sm:$0xff] %vm1225_vm9, %v1354_v30 }
 0x188   : > { %v1348_v62 = vpop.permute.xlu0 %1347 }
 0x189   : > { %1431 = vst.msk [vmem:[%s2955_s8 + $0x60] sm:$0xff] %vm1225_vm9, %v1348_v62 }
 0x18a   : > { %v1350_v29 = vpop.permute.xlu1 %1349 }
 0x18b   : > { %1432 = vst.msk [vmem:[%s2955_s8 + $0x68] sm:$0xff] %vm1225_vm9, %v1350_v29 }
 0x18c   : > { %v1150_v56 = vpop.permute.xlu0 %1149 }
 0x18d   : > { %v1236_v39 = vsel %vm1225_vm9, %v2488_v54, %v1150_v56 }
 0x18e   : > { %1269 = vst.msk [vmem:[%s2990_s12 + $0x50] sm:$0xff] %vm1258_vm8, %v1236_v39  ;;  %v1152_v51 = vpop.permute.xlu1 %1151 }
 0x18f   : > { %v1237_v6 = vsel %vm1225_vm9, %v2502_v2, %v1152_v51 }
 0x190   : > { %1270 = vst.msk [vmem:[%s2990_s12 + $0x58] sm:$0xff] %vm1258_vm8, %v1237_v6  ;;  %v1146_v45 = vpop.permute.xlu0 %1145  ;;  %v1514_v6 = vrot.slane %v2886_v20, 4 }
 0x191   : > { %v1234_v38 = vsel %vm1225_vm9, %v2494_v61, %v1146_v45 }
 0x192   : > { %1267 = vst.msk [vmem:[%s2990_s12 + $0x40] sm:$0xff] %vm1258_vm8, %v1234_v38  ;;  %v1148_v49 = vpop.permute.xlu1 %1147 }
 0x193   : > { %v1235_v54 = vsel %vm1225_vm9, %v2507_v8, %v1148_v49  ;;  %v3210_v8 = vld [vmem:[#allocation2_spill] sm:$0xff] }
 0x194   : > { %1268 = vst.msk [vmem:[%s2990_s12 + $0x48] sm:$0xff] %vm1258_vm8, %v1235_v54  ;;  %v1360_v41 = vpop.permute.xlu0 %1359  ;;  %v1515_v54 = vadd.f32 %v1514_v6, %v2886_v20 }
 0x195   : > { %1437 = vst.msk [vmem:[%s2955_s8 + $0x90] sm:$0xff] %vm1225_vm9, %v1360_v41 }
 0x196   : > { %v1362_v2 = vpop.permute.xlu1 %1361 }
 0x197   : > { %1438 = vst.msk [vmem:[%s2955_s8 + $0x98] sm:$0xff] %vm1225_vm9, %v1362_v2 }
 0x198   : > { %v1356_v36 = vpop.permute.xlu0 %1355 }
 0x199   : > { %1435 = vst.msk [vmem:[%s2955_s8 + $0x80] sm:$0xff] %vm1225_vm9, %v1356_v36 }
 0x19a   : > { %v1358_v61 = vpop.permute.xlu1 %1357 }
 0x19b   : > { %1436 = vst.msk [vmem:[%s2955_s8 + $0x88] sm:$0xff] %vm1225_vm9, %v1358_v61  ;;  %v1516_v61 = vrot.slane %v1515_v54, 2 }
 0x19c   : > { %v1158_v31 = vpop.permute.xlu0 %1157 }
 0x19d   : > { %v1240_v14 = vsel %vm1225_vm9, %v3210_v8, %v1158_v31 }
 0x19e   : > { %1273 = vst.msk [vmem:[%s2990_s12 + $0x70] sm:$0xff] %vm1258_vm8, %v1240_v14  ;;  %v1160_v24 = vpop.permute.xlu1 %1159  ;;  %v1517_v14 = vadd.f32 %v1516_v61, %v1515_v54 }
 0x19f   : > { %v1241_v1 = vsel %vm1225_vm9, %v3211_v22, %v1160_v24 }
 0x1a0   : > { %1274 = vst.msk [vmem:[%s2990_s12 + $0x78] sm:$0xff] %vm1258_vm8, %v1241_v1  ;;  %v1154_v15 = vpop.permute.xlu0 %1153 }
 0x1a1   : > { %v1238_v58 = vsel %vm1225_vm9, %v3212_v63, %v1154_v15  ;;  %v1518_v15 = vrot.slane %v1517_v14, 1 }
 0x1a2   : > { %1271 = vst.msk [vmem:[%s2990_s12 + $0x60] sm:$0xff] %vm1258_vm8, %v1238_v58  ;;  %v1156_v60 = vpop.permute.xlu1 %1155 }
 0x1a3   : > { %v1239_v17 = vsel %vm1225_vm9, %v3213_v37, %v1156_v60  ;;  %v1519_v60 = vadd.f32 %v1518_v15, %v1517_v14 }
 0x1a4   : > { %1272 = vst.msk [vmem:[%s2990_s12 + $0x68] sm:$0xff] %vm1258_vm8, %v1239_v17  ;;  %v1368_v48 = vpop.permute.xlu0 %1367 }
 0x1a5   : > { %1441 = vst.msk [vmem:[%s2955_s8 + $0xb0] sm:$0xff] %vm1225_vm9, %v1368_v48 }
 0x1a6   : > { %v1370_v4 = vpop.permute.xlu1 %1369 }
 0x1a7   : > { %1442 = vst.msk [vmem:[%s2955_s8 + $0xb8] sm:$0xff] %vm1225_vm9, %v1370_v4 }
 0x1a8   : > { %v1364_v26 = vpop.permute.xlu0 %1363 }
 0x1a9   : > { %1439 = vst.msk [vmem:[%s2955_s8 + $0xa0] sm:$0xff] %vm1225_vm9, %v1364_v26 }
 0x1aa   : > { %v1366_v7 = vpop.permute.xlu1 %1365 }
 0x1ab   : > { %1440 = vst.msk [vmem:[%s2955_s8 + $0xa8] sm:$0xff] %vm1225_vm9, %v1366_v7 }
 0x1ac   : > { %v1166_v44 = vpop.permute.xlu0 %1165 }
 0x1ad   : > { %v1244_v18 = vsel %vm1225_vm9, %v3214_v46, %v1166_v44 }
 0x1ae   : > { %1277 = vst.msk [vmem:[%s2990_s12 + $0x90] sm:$0xff] %vm1258_vm8, %v1244_v18  ;;  %v1168_v19 = vpop.permute.xlu1 %1167 }
 0x1af   : > { %v1245_v11 = vsel %vm1225_vm9, %v3215_v32, %v1168_v19 }
 0x1b0   : > { %1278 = vst.msk [vmem:[%s2990_s12 + $0x98] sm:$0xff] %vm1258_vm8, %v1245_v11  ;;  %v1162_v25 = vpop.permute.xlu0 %1161 }
 0x1b1   : > { %v1242_v59 = vsel %vm1225_vm9, %v3216_v35, %v1162_v25 }
 0x1b2   : > { %1275 = vst.msk [vmem:[%s2990_s12 + $0x80] sm:$0xff] %vm1258_vm8, %v1242_v59  ;;  %v1164_v47 = vpop.permute.xlu1 %1163 }
 0x1b3   : > { %v1243_v5 = vsel %vm1225_vm9, %v3217_v10, %v1164_v47 }
 0x1b4   : > { %1276 = vst.msk [vmem:[%s2990_s12 + $0x88] sm:$0xff] %vm1258_vm8, %v1243_v5  ;;  %v1376_v12 = vpop.permute.xlu0 %1375 }
 0x1b5   : > { %1445 = vst.msk [vmem:[%s2955_s8 + $0xd0] sm:$0xff] %vm1225_vm9, %v1376_v12 }
 0x1b6   : > { %v1378_v53 = vpop.permute.xlu1 %1377 }
 0x1b7   : > { %1446 = vst.msk [vmem:[%s2955_s8 + $0xd8] sm:$0xff] %vm1225_vm9, %v1378_v53 }
 0x1b8   : > { %v1372_v33 = vpop.permute.xlu0 %1371 }
 0x1b9   : > { %1443 = vst.msk [vmem:[%s2955_s8 + $0xc0] sm:$0xff] %vm1225_vm9, %v1372_v33 }
 0x1ba   : > { %v1374_v16 = vpop.permute.xlu1 %1373 }
 0x1bb   : > { %1444 = vst.msk [vmem:[%s2955_s8 + $0xc8] sm:$0xff] %vm1225_vm9, %v1374_v16 }
 0x1bc   : > { %v1174_v3 = vpop.permute.xlu0 %1173 }
 0x1bd   : > { %v1248_v27 = vsel %vm1225_vm9, %v2633_v13, %v1174_v3 }
 0x1be   : > { %1281 = vst.msk [vmem:[%s2990_s12 + $0xb0] sm:$0xff] %vm1258_vm8, %v1248_v27  ;;  %v1176_v42 = vpop.permute.xlu1 %1175 }
 0x1bf   : > { %v1249_v30 = vsel %vm1225_vm9, %v2649_v34, %v1176_v42  ;;  %v1689_v34 = vrot.slane %v2892_v43, 4 }
 0x1c0   : > { %1282 = vst.msk [vmem:[%s2990_s12 + $0xb8] sm:$0xff] %vm1258_vm8, %v1249_v30  ;;  %v1170_v62 = vpop.permute.xlu0 %1169 }
 0x1c1   : > { %v1246_v29 = vsel %vm1225_vm9, %v2644_v21, %v1170_v62 }
 0x1c2   : > { %1279 = vst.msk [vmem:[%s2990_s12 + $0xa0] sm:$0xff] %vm1258_vm8, %v1246_v29  ;;  %v1172_v56 = vpop.permute.xlu1 %1171 }
 0x1c3   : > { %v1247_v13 = vsel %vm1225_vm9, %v2660_v28, %v1172_v56  ;;  %v1690_v28 = vadd.f32 %v1689_v34, %v2892_v43 }
 0x1c4   : > { %1280 = vst.msk [vmem:[%s2990_s12 + $0xa8] sm:$0xff] %vm1258_vm8, %v1247_v13  ;;  %v1380_v39 = vpop.permute.xlu0 %1379 }
 0x1c5   : > { %1447 = vst.msk [vmem:[%s2955_s8 + $0xe0] sm:$0xff] %vm1225_vm9, %v1380_v39  ;;  %v1691_v36 = vrot.slane %v1690_v28, 2 }
 0x1c6   : > { %v1382_v51 = vpop.permute.xlu1 %1381 }
 0x1c7   : > { %1448 = vst.msk [vmem:[%s2955_s8 + $0xe8] sm:$0xff] %vm1225_vm9, %v1382_v51  ;;  %v1692_v31 = vadd.f32 %v1691_v36, %v1690_v28 }
 0x1c8   : > { %v1182_v21 = vpop.permute.xlu0 %1181 }
 0x1c9   : > { %v1252_v45 = vsel %vm1225_vm9, %v2687_v50, %v1182_v21  ;;  %v1693_v22 = vrot.slane %v1692_v31, 1 }
 0x1ca   : > { %1285 = vst.msk [vmem:[%s2990_s12 + $0xd0] sm:$0xff] %vm1258_vm8, %v1252_v45  ;;  %v1184_v38 = vpop.permute.xlu1 %1183 }
 0x1cb   : > { %v1253_v49 = vsel %vm1225_vm9, %v2707_v52, %v1184_v38  ;;  %v1694_v63 = vadd.f32 %v1693_v22, %v1692_v31 }
 0x1cc   : > { %1286 = vst.msk [vmem:[%s2990_s12 + $0xd8] sm:$0xff] %vm1258_vm8, %v1253_v49  ;;  %v1178_v41 = vpop.permute.xlu0 %1177 }
 0x1cd   : > { %v1250_v2 = vsel %vm1225_vm9, %v2699_v40, %v1178_v41 }
 0x1ce   : > { %1283 = vst.msk [vmem:[%s2990_s12 + $0xc0] sm:$0xff] %vm1258_vm8, %v1250_v2  ;;  %v1180_v50 = vpop.permute.xlu1 %1179 }
 0x1cf   : > { %v1251_v43 = vsel %vm1225_vm9, %v2716_v55, %v1180_v50 }
 0x1d0   : > { %1284 = vst.msk [vmem:[%s2990_s12 + $0xc8] sm:$0xff] %vm1258_vm8, %v1251_v43  ;;  %v1190_v52 = vpop.permute.xlu0 %1189 }
 0x1d1   : > { %v1256_v20 = vsel %vm1225_vm9, %v2744_v57, %v1190_v52 }
 0x1d2   : > { %1289 = vst.msk [vmem:[%s2990_s12 + $0xf0] sm:$0xff] %vm1258_vm8, %v1256_v20  ;;  %v1192_v40 = vpop.permute.xlu1 %1191 }
 0x1d3   : > { %v1257_v8 = vsel %vm1225_vm9, %v2761_v0, %v1192_v40 }
 0x1d4   : > { %1290 = vst.msk [vmem:[%s2990_s12 + $0xf8] sm:$0xff] %vm1258_vm8, %v1257_v8  ;;  %v1186_v55 = vpop.permute.xlu0 %1185 }
 0x1d5   : > { %v1254_v24 = vsel %vm1225_vm9, %v2753_v23, %v1186_v55 }
 0x1d6   : > { %1287 = vst.msk [vmem:[%s2990_s12 + $0xe0] sm:$0xff] %vm1258_vm8, %v1254_v24  ;;  %v1188_v57 = vpop.permute.xlu1 %1187 }
 0x1d7   : > { %v1255_v1 = vsel %vm1225_vm9, %v2771_v9, %v1188_v57 }
 0x1d8   : > { %1288 = vst.msk [vmem:[%s2990_s12 + $0xe8] sm:$0xff] %vm1258_vm8, %v1255_v1  ;;  %v1591_v0 = vpop.permute.xlu0 %1590 }
 0x1d9   : > { %v1593_v9 = vsel %vm1258_vm8, %v1519_v60, %v1591_v0 }
 0x1da   : > { %v1798_v58 = vpop.permute.xlu1 %1797 }
 0x1db   : > { %v1800_v37 = vsel %vm1258_vm8, %v1694_v63, %v1798_v58 }
 0x1dc   : > { %v1802_v23 = vrot.slane %v1800_v37, 7  ;;  %v1384_v17 = vpop.permute.xlu0 %1383 }
 0x1dd   : > { %1449 = vst.msk [vmem:[%s2955_s8 + $0xf0] sm:$0xff] %vm1225_vm9, %v1384_v17 }
 0x1de   : > { %v1805_v48 = vsel %vm688_vm2, %v1593_v9, %v1802_v23  ;;  %v1386_v4 = vpop.permute.xlu1 %1385 }
 0x1df   : > { %1807 = vst.msk [vmem:[%s247_s16] sm:$0x3] %vm1806_vm10, %v1805_v48 }
 0x1e0   : > { %1450 = vst.msk [vmem:[%s2955_s8 + $0xf8] sm:$0xff] %vm1225_vm9, %v1386_v4 }
 0x1e1 PF: > { %s16_s18 = sadd.s32 1, %s2161_s18  }
 0x1e2   : > { %p13_p4 = scmp.ge.s32.totalorder %s16_s18, 4  }
 0x1e4   :  { %15 = sbr.rel (!%p13_p4) target bundleno = 1 (0x1), region = 86 }

// kernel: inception_block.4
= control target key start
LH: loop header
LB: loop body
LE: loop exit
PB: predicated region body
PF: predicated region fallthrough
CT: control target
= control target key end

     0   :  { %s5000_s21 = smov 0   ;;  %s7139_s0 = inlined_call_operand.vmem [shape: f32[2,16,16,8], index: 0, kind: input, shape index: {}]   ;;  %s7140_s1 = inlined_call_operand.vmem [shape: f32[1,8], index: 1, kind: input, shape index: {}]   ;;  %s7141_s2 = inlined_call_operand.vmem [shape: f32[1,8], index: 2, kind: input, shape index: {}]   ;;  %s7142_s3 = inlined_call_operand.vmem [shape: bf16[3,12,8], index: 3, kind: input, shape index: {}]   ;;  %s7143_s4 = inlined_call_operand.vmem [shape: bf16[5,20,8], index: 4, kind: input, shape index: {}]   ;;  %s7144_s5 = inlined_call_operand.vmem [shape: f32[2,16,16,16], index: 5, kind: output, shape index: {0}]   ;;  %s7145_s6 = inlined_call_operand.vmem [shape: f32[2,2,16], index: 6, kind: output, shape index: {1}]  }
   0x1 LB: > { %s4126_s22 = sadd.s32 4294967295, %s4957_s21   ;;  %p4130_p0 = scmp.ge.s32.totalorder %s4957_s21, 1  ;;  %s4957_s21 = sphi %s5000_s21, %s17_s21  }
   0x2   : > { %p215_p1 = scmp.lt.s32.totalorder %s4957_s21, 3 }
   0x4   : > { %p216_p2 = pnand %p4130_p0, %p215_p1 }
   0x6   : > { %219 = sbr.rel (%p216_p2) target bundleno = 998 (0x3e6), region = 40 }
   0xd   : > { %p249_p3 = scmp.lt.s32.totalorder %s4126_s22, 1  ;;  %v5014_v0 = vld [vmem:[%s7140_s1] ss:$0 sm:$0xff]  ;;  %s4959_s7 = smov 124   ;;  %vm575_vm0 = vcmask 1040384   ;;  %v4960_v56 = vmov 0  }
   0xe   : > { %v5026_v1 = vld [vmem:[%s7141_s2] ss:$0 sm:$0xff]  ;;  %v5083_v57 = vrot.slane %v4960_v56, 7  ;;  %vm576_vm1 = vsmask.f32 256  ;;  %vm869_vm4 = vcmask 1046528  }
   0xf   : > { %s7249_s22 = smov (!%p249_p3, %s4126_s22), 1  ;;  %vm612_vm2 = vsmask.f32 7424  ;;  %vm5187_vm3 = vmand %vm575_vm0, %vm576_vm1  ;;  %vm2027_vm5 = vsmask.f32 6400  ;;  %vm1084_vm6 = vcmask 1045504  }
  0x10   : > { %s4297_s23 = sshll.u32 %s7249_s22, 8  ;;  %7174 = vst [vmem:[#allocation2_spill] sm:$0xff] %v5083_v57  ;;  %s4961_s8 = smov 4   ;;  %vm2482_vm7 = vcmask 1041408   ;;  %vm950_vm8 = vcmask 31744   ;;  %vm983_vm9 = vcmask 64512  }
  0x11   : > { %s5021_s28 = scalar_lea.vmem %s7139_s0, %s4297_s23  ;;  %s4962_s9 = smov 8   ;;  %vm1051_vm10 = vcmask 97280   ;;  %vm2359_vm11 = vcmask 130048   ;;  %vm2449_vm12 = vcmask 162816   ;;  %vm4038_vm13 = vcmask 123904  }
  0x12   : > { %v266_v2 = vld [vmem:[%s5021_s28] sm:$0xff]  ;;  %v267_v3 = vld [vmem:[%s5021_s28 + $0x8] sm:$0xff]  ;;  %v268_v4 = vld [vmem:[%s5021_s28 + $0x10] sm:$0xff]  ;;  %s4963_s10 = smov 12   ;;  %s4964_s11 = smov 16  }
  0x13   : > { %v304_v5 = vmul.f32 %v5014_v0, %v266_v2  ;;  %v305_v6 = vmul.f32 %v5014_v0, %v267_v3  ;;  %v269_v7 = vld [vmem:[%s5021_s28 + $0x18] sm:$0xff]  ;;  %v306_v8 = vmul.f32 %v5014_v0, %v268_v4  ;;  %v270_v9 = vld [vmem:[%s5021_s28 + $0x20] sm:$0xff]  ;;  %v271_v10 = vld [vmem:[%s5021_s28 + $0x28] sm:$0xff]  ;;  %s6995_s27 = scalar_lea.vmem %s7144_s5, %s4297_s23  ;;  %s4135_s23 = sshll.u32 %s7249_s22, 1 }
  0x14   : > { %v307_v11 = vmul.f32 %v5014_v0, %v269_v7  ;;  %v308_v12 = vmul.f32 %v5014_v0, %v270_v9  ;;  %v309_v13 = vmul.f32 %v5014_v0, %v271_v10  ;;  %v272_v14 = vld [vmem:[%s5021_s28 + $0x30] sm:$0xff]  ;;  %v273_v15 = vld [vmem:[%s5021_s28 + $0x38] sm:$0xff]  ;;  %v274_v24 = vld [vmem:[%s5021_s28 + $0x40] sm:$0xff]  ;;  %s262_s29 = scalar_lea.vmem %s7145_s6, %s4135_s23 }
  0x15   : > { %v342_v16 = vadd.f32 %v5026_v1, %v304_v5  ;;  %v343_v17 = vadd.f32 %v5026_v1, %v305_v6  ;;  %v344_v18 = vadd.f32 %v5026_v1, %v306_v8  ;;  %v310_v19 = vmul.f32 %v5014_v0, %v272_v14  ;;  %v275_v25 = vld [vmem:[%s5021_s28 + $0x48] sm:$0xff]  ;;  %v276_v30 = vld [vmem:[%s5021_s28 + $0x50] sm:$0xff]  ;;  %v277_v45 = vld [vmem:[%s5021_s28 + $0x58] sm:$0xff] }
  0x16   : > { %v345_v20 = vadd.f32 %v5026_v1, %v307_v11  ;;  %v346_v21 = vadd.f32 %v5026_v1, %v308_v12  ;;  %v347_v22 = vadd.f32 %v5026_v1, %v309_v13  ;;  %v311_v23 = vmul.f32 %v5014_v0, %v273_v15  ;;  %v278_v49 = vld [vmem:[%s5021_s28 + $0x60] sm:$0xff]  ;;  %v279_v50 = vld [vmem:[%s5021_s28 + $0x68] sm:$0xff]  ;;  %v280_v53 = vld [vmem:[%s5021_s28 + $0x70] sm:$0xff] }
  0x17   : > { %v374_v26 = vmax.f32 %v342_v16, 0.0  ;;  %v375_v27 = vmax.f32 %v343_v17, 0.0  ;;  %v376_v28 = vmax.f32 %v344_v18, 0.0  ;;  %v348_v29 = vadd.f32 %v5026_v1, %v310_v19  ;;  %v281_v55 = vld [vmem:[%s5021_s28 + $0x78] sm:$0xff]  ;;  %v282_v60 = vld [vmem:[%s5021_s28 + $0x80] sm:$0xff]  ;;  %v283_v4 = vld [vmem:[%s5021_s28 + $0x88] sm:$0xff] }
  0x18   : > { %v377_v31 = vmax.f32 %v345_v20, 0.0  ;;  %v378_v32 = vmax.f32 %v346_v21, 0.0  ;;  %v379_v33 = vmax.f32 %v347_v22, 0.0  ;;  %v349_v34 = vadd.f32 %v5026_v1, %v311_v23  ;;  %v286_v7 = vld [vmem:[%s5021_s28 + $0xa0] sm:$0xff]  ;;  %v287_v16 = vld [vmem:[%s5021_s28 + $0xa8] sm:$0xff]  ;;  %v284_v17 = vld [vmem:[%s5021_s28 + $0x90] sm:$0xff] }
  0x19   : > { %v5055_v35 = vpack.c.bf16 %v375_v27, %v374_v26  ;;  %v380_v36 = vmax.f32 %v348_v29, 0.0  ;;  %v312_v37 = vmul.f32 %v5014_v0, %v274_v24  ;;  %v313_v38 = vmul.f32 %v5014_v0, %v275_v25  ;;  %v285_v21 = vld [vmem:[%s5021_s28 + $0x98] sm:$0xff] }
  0x1a   : > { %v5059_v39 = vpack.c.bf16 %v379_v33, %v378_v32  ;;  %v381_v40 = vmax.f32 %v349_v34, 0.0  ;;  %v314_v41 = vmul.f32 %v5014_v0, %v276_v30  ;;  %v5064_v42 = vpack.c.bf16 %v377_v31, %v376_v28 }
  0x1b   : > { %1640 = vrot.lane.b32.xlu0 %v5055_v35, %s4959_s7  ;;  %v350_v43 = vadd.f32 %v5026_v1, %v312_v37  ;;  %v351_v44 = vadd.f32 %v5026_v1, %v313_v38  ;;  %v315_v51 = vmul.f32 %v5014_v0, %v277_v45  ;;  %v316_v61 = vmul.f32 %v5014_v0, %v278_v49  ;;  %v290_v38 = vld [vmem:[%s5021_s28 + $0xc0] sm:$0xff] }
  0x1c   : > { %1644 = vrot.lane.b32.xlu1 %v5059_v39, %s4959_s7  ;;  %v5071_v46 = vpack.c.bf16 %v381_v40, %v380_v36  ;;  %v352_v52 = vadd.f32 %v5026_v1, %v314_v41  ;;  %v317_v63 = vmul.f32 %v5014_v0, %v279_v50  ;;  %v318_v2 = vmul.f32 %v5014_v0, %v280_v53 }
  0x1d   : > { %v382_v47 = vmax.f32 %v350_v43, 0.0  ;;  %v383_v48 = vmax.f32 %v351_v44, 0.0  ;;  %v353_v58 = vadd.f32 %v5026_v1, %v315_v51  ;;  %v319_v3 = vmul.f32 %v5014_v0, %v281_v55 }
  0x1e   : > { %v384_v59 = vmax.f32 %v352_v52, 0.0  ;;  %v354_v5 = vadd.f32 %v5026_v1, %v316_v61  ;;  %v320_v6 = vmul.f32 %v5014_v0, %v282_v60  ;;  %v5101_v8 = vsel %vm575_vm0, 0, %v5083_v57  ;;  %v291_v52 = vld [vmem:[%s5021_s28 + $0xc8] sm:$0xff] }
  0x1f   : > { %1642 = vrot.lane.b32.xlu0 %v5064_v42, %s4959_s7  ;;  %v5080_v54 = vpack.c.bf16 %v383_v48, %v382_v47  ;;  %v385_v62 = vmax.f32 %v353_v58, 0.0  ;;  %v355_v10 = vadd.f32 %v5026_v1, %v317_v63  ;;  %v356_v11 = vadd.f32 %v5026_v1, %v318_v2  ;;  %v288_v58 = vld [vmem:[%s5021_s28 + $0xb0] sm:$0xff]  ;;  %v289_v2 = vld [vmem:[%s5021_s28 + $0xb8] sm:$0xff] }
  0x20   : > { %1646 = vrot.lane.b32.xlu1 %v5071_v46, %s4959_s7  ;;  %v357_v12 = vadd.f32 %v5026_v1, %v319_v3  ;;  %v386_v13 = vmax.f32 %v354_v5, 0.0  ;;  %v321_v14 = vmul.f32 %v5014_v0, %v283_v4  ;;  %v358_v15 = vadd.f32 %v5026_v1, %v320_v6 }
  0x21   : > { %v5103_v9 = vpack.c.bf16 %v385_v62, %v384_v59  ;;  %v5114_v18 = vsel %vm575_vm0, %v5083_v57, 0  ;;  %v387_v19 = vmax.f32 %v355_v10, 0.0  ;;  %v388_v20 = vmax.f32 %v356_v11, 0.0 }
  0x22   : > { %v1744_v22 = vshll.u32 %v5101_v8, 16  ;;  %v389_v23 = vmax.f32 %v357_v12, 0.0  ;;  %v359_v24 = vadd.f32 %v5026_v1, %v321_v14  ;;  %v390_v25 = vmax.f32 %v358_v15, 0.0  ;;  %v292_v12 = vld [vmem:[%s5021_s28 + $0xd0] sm:$0xff] }
  0x23   : > { %1648 = vrot.lane.b32.xlu0 %v5080_v54, %s4959_s7  ;;  %v324_v26 = vmul.f32 %v5014_v0, %v286_v7  ;;  %v5122_v27 = vpack.c.bf16 %v387_v19, %v386_v13  ;;  %v325_v28 = vmul.f32 %v5014_v0, %v287_v16  ;;  %v322_v29 = vmul.f32 %v5014_v0, %v284_v17 }
  0x24   : > { %1650 = vrot.lane.b32.xlu1 %v5103_v9, %s4959_s7  ;;  %v1748_v30 = vshll.u32 %v5114_v18, 16  ;;  %v5127_v31 = vpack.c.bf16 %v389_v23, %v388_v20  ;;  %v391_v32 = vmax.f32 %v359_v24, 0.0  ;;  %v323_v34 = vmul.f32 %v5014_v0, %v285_v21 }
  0x25   : > { %v362_v33 = vadd.f32 %v5026_v1, %v324_v26  ;;  %v430_v36 = vshrl.u32 %v5055_v35, 16  ;;  %v363_v37 = vadd.f32 %v5026_v1, %v325_v28  ;;  %v1742_v40 = vshrl.u32 %v5101_v8, 16 }
  0x26   : > { %v1952_v41 = vrot.slane %v5101_v8, 1  ;;  %v5140_v43 = vpack.c.bf16 %v391_v32, %v390_v25  ;;  %v1746_v45 = vrot.slane %v1744_v22, 1  ;;  %v1953_v47 = vrot.slane %v5114_v18, 1 }
  0x27   : > { %1652 = vrot.lane.b32.xlu0 %v5122_v27, %s4959_s7  ;;  %v394_v44 = vmax.f32 %v362_v33, 0.0  ;;  %v437_v48 = vshrl.u32 %v5064_v42, 16  ;;  %v395_v49 = vmax.f32 %v363_v37, 0.0  ;;  %v360_v50 = vadd.f32 %v5026_v1, %v322_v29 }
  0x28   : > { %1654 = vrot.lane.b32.xlu1 %v5127_v31, %s4959_s7  ;;  %v361_v51 = vadd.f32 %v5026_v1, %v323_v34  ;;  %v433_v53 = vshll.u32 %v5055_v35, 16  ;;  %v444_v55 = vshrl.u32 %v5059_v39, 16  ;;  %v328_v56 = vmul.f32 %v5014_v0, %v290_v38 }
  0x29   : > { %v1750_v59 = vrot.slane %v1748_v30, 1  ;;  %v432_v60 = vrot.slane %v430_v36, 7  ;;  %v5157_v61 = vpack.c.bf16 %v395_v49, %v394_v44  ;;  %v392_v62 = vmax.f32 %v360_v50, 0.0 }
  0x2a   : > { %v393_v63 = vmax.f32 %v361_v51, 0.0  ;;  %v440_v35 = vshll.u32 %v5064_v42, 16  ;;  %v447_v3 = vshll.u32 %v5059_v39, 16  ;;  %v329_v4 = vmul.f32 %v5014_v0, %v291_v52  ;;  %v293_v39 = vld [vmem:[%s5021_s28 + $0xd8] sm:$0xff] }
  0x2b   : > { %1656 = vrot.lane.b32.xlu0 %v5140_v43, %s4959_s7  ;;  %v366_v5 = vadd.f32 %v5026_v1, %v328_v56  ;;  %v439_v6 = vrot.slane %v437_v48, 7  ;;  %v451_v7 = vshrl.u32 %v5071_v46, 16  ;;  %v326_v11 = vmul.f32 %v5014_v0, %v288_v58 }
  0x2c   : > { %v5165_v10 = vpack.c.bf16 %v393_v63, %v392_v62  ;;  %v5169_v13 = vrot.slane %v444_v55, 7  ;;  %v367_v14 = vadd.f32 %v5026_v1, %v329_v4  ;;  %v327_v42 = vmul.f32 %v5014_v0, %v289_v2 }
  0x2d   : > { %v398_v15 = vmax.f32 %v366_v5, 0.0  ;;  %v435_v16 = vor.u32 %v433_v53, %v432_v60  ;;  %v454_v17 = vshll.u32 %v5071_v46, 16  ;;  %v458_v19 = vshrl.u32 %v5080_v54, 16 }
  0x2e   : > { %1658 = vrot.lane.b32.xlu1 %v5165_v10, %s4959_s7  ;;  %v364_v20 = vadd.f32 %v5026_v1, %v326_v11  ;;  %v399_v21 = vmax.f32 %v367_v14, 0.0  ;;  %v365_v23 = vadd.f32 %v5026_v1, %v327_v42  ;;  %v1747_v24 = vor.u32 %v1746_v45, %v1742_v40 }
  0x2f   : > { %1660 = vrot.lane.b32.xlu0 %v5157_v61, %s4959_s7  ;;  %v330_v25 = vmul.f32 %v5014_v0, %v292_v12  ;;  %v442_v26 = vor.u32 %v440_v35, %v439_v6  ;;  %v5191_v28 = vrot.slane %v451_v7, 7  ;;  %v331_v32 = vmul.f32 %v5014_v0, %v293_v39 }
  0x30   : > { %v396_v29 = vmax.f32 %v364_v20, 0.0  ;;  %v461_v33 = vshll.u32 %v5080_v54, 16  ;;  %v5195_v34 = vpack.c.bf16 %v399_v21, %v398_v15  ;;  %v397_v36 = vmax.f32 %v365_v23, 0.0 }
  0x31   : > { %v368_v37 = vadd.f32 %v5026_v1, %v330_v25  ;;  %v5198_v38 = vrot.slane %v458_v19, 7  ;;  %v369_v44 = vadd.f32 %v5026_v1, %v331_v32  ;;  %v5203_v45 = vsel %vm5187_vm3, 0, %v435_v16 }
  0x32   : > { %v5207_v48 = vsel %vm5187_vm3, %v432_v60, 0  ;;  %v465_v0 = vshrl.u32 %v5103_v9, 16  ;;  %v5212_v54 = vpack.c.bf16 %v397_v36, %v396_v29  ;;  %v1751_v49 = vsel %vm612_vm2, %v1747_v24, %v1750_v59 }
  0x33   : > { %1664 = vrot.lane.b32.xlu0 %v5195_v34, %s4959_s7  ;;  %v400_v50 = vmax.f32 %v368_v37, 0.0  ;;  %v401_v51 = vmax.f32 %v369_v44, 0.0  ;;  %v626_v1 = vshrl.u32 %v5203_v45, 16  ;;  %v628_v52 = vshll.u32 %v5203_v45, 16 }
  0x34   : > { %v633_v53 = vshll.u32 %v5207_v48, 16  ;;  %v449_v55 = vor.u32 %v447_v3, %v5169_v13  ;;  %v456_v56 = vor.u32 %v454_v17, %v5191_v28  ;;  %1662 = vrot.lane.b32.xlu1 %v5212_v54, %s4959_s7  ;;  %v2031_v58 = vshrl.u32 %v5114_v18, 16 }
  0x35   : > { %v2194_v59 = vrot.slane %v5101_v8, 2  ;;  %v5224_v60 = vpack.c.bf16 %v401_v51, %v400_v50  ;;  %v630_v62 = vrot.slane %v628_v52, 1  ;;  %v5228_v2 = vsel %vm5187_vm3, 0, %v442_v26 }
  0x36   : > { %v635_v63 = vrot.slane %v633_v53, 1  ;;  %v463_v35 = vor.u32 %v461_v33, %v5198_v38  ;;  %v5231_v3 = vrot.slane %v465_v0, 7  ;;  %v468_v4 = vshll.u32 %v5103_v9, 16 }
  0x37   : > { %1892 = vrot.lane.b32.xlu0 %v1751_v49, %s4961_s8  ;;  %v5237_v5 = vsel %vm5187_vm3, %v439_v6, 0  ;;  %v472_v7 = vshrl.u32 %v5122_v27, 16  ;;  %v631_v11 = vor.u32 %v630_v62, %v626_v1  ;;  %v638_v12 = vshrl.u32 %v5228_v2, 16 }
  0x38   : > { %v640_v14 = vshll.u32 %v5228_v2, 16  ;;  %v479_v15 = vshrl.u32 %v5127_v31, 16  ;;  %1666 = vrot.lane.b32.xlu1 %v5224_v60, %s4959_s7  ;;  %v645_v9 = vshll.u32 %v5237_v5, 16  ;;  %v2028_v42 = vrot.slane %v1742_v40, 1 }
  0x39   : > { %v2029_v6 = vrot.slane %v1744_v22, 2  ;;  %v636_v39 = vsel %vm612_vm2, %v631_v11, %v635_v63  ;;  %v1954_v16 = vsel %vm869_vm4, %v1952_v41, %v1953_v47  ;;  %v2033_v19 = vrot.slane %v2031_v58, 1 }
  0x3a   : > { %v642_v17 = vrot.slane %v640_v14, 1  ;;  %v647_v20 = vrot.slane %v645_v9, 1  ;;  %v2034_v40 = vrot.slane %v1748_v30, 2  ;;  %v2195_v23 = vrot.slane %v5114_v18, 2 }
  0x3b   : > { %807 = vrot.lane.b32.xlu0 %v636_v39, %s4961_s8  ;;  %v2030_v21 = vor.u32 %v2029_v6, %v2028_v42  ;;  %v470_v22 = vor.u32 %v468_v4, %v5231_v3  ;;  %v475_v24 = vshll.u32 %v5122_v27, 16  ;;  %v482_v25 = vshll.u32 %v5127_v31, 16 }
  0x3c   : > { %v643_v26 = vor.u32 %v642_v17, %v638_v12  ;;  %v5263_v29 = vrot.slane %v472_v7, 7  ;;  %v5265_v41 = vrot.slane %v479_v15, 7  ;;  %1997 = vrot.lane.b32.xlu1 %v1954_v16, %s4962_s9  ;;  %v2035_v47 = vor.u32 %v2034_v40, %v2033_v19 }
  0x3d   : > { %v873_v32 = vrot.slane %v5203_v45, 1  ;;  %v874_v18 = vrot.slane %v5207_v48, 1  ;;  %v5273_v27 = vsel %vm5187_vm3, 0, %v449_v55  ;;  %v598_v31 = vsel %vm5187_vm3, %v5169_v13, 0 }
  0x3e   : > { %v648_v30 = vsel %vm612_vm2, %v643_v26, %v647_v20  ;;  %v493_v33 = vshrl.u32 %v5165_v10, 16  ;;  %v2036_v36 = vsel %vm2027_vm5, %v2030_v21, %v2035_v47  ;;  %v2196_v37 = vsel %vm1084_vm6, %v2194_v59, %v2195_v23 }
  0x3f   : > { %809 = vrot.lane.b32.xlu0 %v648_v30, %s4961_s8  ;;  %v652_v44 = vshll.u32 %v5273_v27, 16  ;;  %v650_v48 = vshrl.u32 %v5273_v27, 16  ;;  %v657_v0 = vshll.u32 %v598_v31, 16  ;;  %v5286_v49 = vsel %vm5187_vm3, 0, %v456_v56 }
  0x40   : > { %v599_v13 = vsel %vm5187_vm3, %v5191_v28, 0  ;;  %2163 = vrot.lane.b32.xlu1 %v2036_v36, %s4963_s10  ;;  %v662_v51 = vshrl.u32 %v5286_v49, 16  ;;  %v664_v1 = vshll.u32 %v5286_v49, 16  ;;  %v486_v53 = vshrl.u32 %v5140_v43, 16 }
  0x41   : > { %v654_v50 = vrot.slane %v652_v44, 1  ;;  %v669_v52 = vshll.u32 %v599_v13, 16  ;;  %v875_v55 = vsel %vm869_vm4, %v873_v32, %v874_v18  ;;  %v876_v56 = vrot.slane %v5228_v2, 1 }
  0x42   : > { %v877_v58 = vrot.slane %v5237_v5, 1  ;;  %v477_v59 = vor.u32 %v475_v24, %v5263_v29  ;;  %v666_v28 = vrot.slane %v664_v1, 1  ;;  %v5302_v63 = vsel %vm5187_vm3, 0, %v463_v35 }
  0x43   : > { %2239 = vrot.lane.b32.xlu0 %v2196_v37, %s4964_s11  ;;  %v671_v62 = vrot.slane %v669_v52, 1  ;;  %v484_v4 = vor.u32 %v482_v25, %v5265_v41  ;;  %v5305_v7 = vrot.slane %v493_v33, 7  ;;  %v496_v11 = vshll.u32 %v5165_v10, 16 }
  0x44   : > { %v659_v12 = vrot.slane %v657_v0, 1  ;;  %920 = vrot.lane.b32.xlu1 %v875_v55, %s4962_s9  ;;  %v655_v5 = vor.u32 %v654_v50, %v650_v48  ;;  %v667_v14 = vor.u32 %v666_v28, %v662_v51  ;;  %v882_v15 = vrot.slane %v5286_v49, 1 }
  0x45   : > { %v883_v9 = vrot.slane %v599_v13, 1  ;;  %v878_v42 = vsel %vm869_vm4, %v876_v56, %v877_v58  ;;  %v676_v6 = vshll.u32 %v5302_v63, 16  ;;  %v5314_v35 = vsel %vm5187_vm3, 0, %v470_v22  ;;  %v4936_v56 = vld [vmem:[%s7143_s4] sm:$0xff]  }
  0x46   : > { %v601_v10 = vsel %vm5187_vm3, %v5231_v3, 0  ;;  %v672_v39 = vsel %vm612_vm2, %v667_v14, %v671_v62  ;;  %v879_v16 = vrot.slane %v5273_v27, 1  ;;  %v880_v17 = vrot.slane %v598_v31, 1  ;;  %4578 = vmatprep.subr.bf16.mxu1 %v4936_v56 }
  0x47   : > { %v600_v19 = vsel %vm5187_vm3, %v5198_v38, 0  ;;  %v489_v20 = vshll.u32 %v5140_v43, 16  ;;  %813 = vrot.lane.b32.xlu0 %v672_v39, %s4961_s8  ;;  %v686_v21 = vshrl.u32 %v5314_v35, 16  ;;  %v688_v40 = vshll.u32 %v5314_v35, 16  ;;  %4579 = vmatpush3.bf16.msra.mxu1 %v4936_v56 }
  0x48   : > { %v693_v23 = vshll.u32 %v601_v10, 16  ;;  %v488_v22 = vrot.slane %v486_v53, 7  ;;  %922 = vrot.lane.b32.xlu1 %v878_v42, %s4962_s9  ;;  %v660_v3 = vsel %vm612_vm2, %v655_v5, %v659_v12  ;;  %v884_v24 = vsel %vm869_vm4, %v882_v15, %v883_v9  ;;  %v4937_v42 = vld [vmem:[%s7143_s4 + $0x8] ss:$0 sps:$4 sm:$0x33]  }
  0x49   : > { %v674_v25 = vshrl.u32 %v5302_v63, 16  ;;  %v678_v26 = vrot.slane %v676_v6, 1  ;;  %v681_v38 = vshll.u32 %v600_v19, 16  ;;  %v690_v47 = vrot.slane %v688_v40, 1  ;;  %4918 = vmatprep.subr.msk.bf16.mxu1 %vm2482_vm7, %v4937_v42 }
  0x4a   : > { %v695_v43 = vrot.slane %v693_v23, 1  ;;  %v498_v32 = vor.u32 %v496_v11, %v5305_v7  ;;  %v881_v30 = vsel %vm869_vm4, %v879_v16, %v880_v17  ;;  %v5336_v18 = vsel %vm5187_vm3, 0, %v477_v59 }
  0x4b   : > { %7177 = vst [vmem:[#allocation3_spill] sm:$0xff] %v5336_v18  ;;  %v5340_v31 = vsel %vm5187_vm3, 0, %v484_v4  ;;  %926 = vrot.lane.b32.xlu0 %v884_v24, %s4962_s9  ;;  %v691_v33 = vor.u32 %v690_v47, %v686_v21  ;;  %v888_v36 = vrot.slane %v5314_v35, 1  ;;  %v889_v37 = vrot.slane %v601_v10, 1 }
  0x4c   : > { %7178 = vst [vmem:[#allocation4_spill] sm:$0xff] %v5340_v31  ;;  %v603_v44 = vsel %vm5187_vm3, %v5265_v41, 0  ;;  %811 = vrot.lane.b32.xlu1 %v660_v3, %s4961_s8  ;;  %v5351_v48 = vsel %vm5187_vm3, %v5263_v29, 0  ;;  %v710_v0 = vshrl.u32 %v5340_v31, 16  ;;  %v712_v13 = vshll.u32 %v5340_v31, 16 }
  0x4d   : > { %v717_v50 = vshll.u32 %v603_v44, 16  ;;  %v679_v51 = vor.u32 %v678_v26, %v674_v25  ;;  %v683_v1 = vrot.slane %v681_v38, 1  ;;  %v696_v52 = vsel %vm612_vm2, %v691_v33, %v695_v43 }
  0x4e   : > { %v700_v53 = vshll.u32 %v5336_v18, 16  ;;  %v491_v55 = vor.u32 %v489_v20, %v488_v22  ;;  %v714_v41 = vrot.slane %v712_v13, 1  ;;  %v885_v29 = vrot.slane %v5302_v63, 1 }
  0x4f   : > { %817 = vrot.lane.b32.xlu0 %v696_v52, %s4961_s8  ;;  %v886_v58 = vrot.slane %v600_v19, 1  ;;  %v705_v59 = vshll.u32 %v5351_v48, 16  ;;  %v890_v28 = vsel %vm869_vm4, %v888_v36, %v889_v37  ;;  %v698_v62 = vshrl.u32 %v5336_v18, 16  ;;  %v4938_v36 = vld [vmem:[%s7142_s3 + $0x8] sm:$0x3f]  }
  0x50   : > { %924 = vrot.lane.b32.xlu1 %v881_v30, %s4962_s9  ;;  %v715_v4 = vor.u32 %v714_v41, %v710_v0  ;;  %v719_v11 = vrot.slane %v717_v50, 1  ;;  %v684_v12 = vsel %vm612_vm2, %v679_v51, %v683_v1  ;;  %v702_v5 = vrot.slane %v700_v53, 1  ;;  %4914 = vmatprep.subr.msk.bf16.mxu0 %vm1084_vm6, %v4938_v36 }
  0x51   : > { %v5369_v14 = vsel %vm5187_vm3, 0, %v498_v32  ;;  %v605_v15 = vsel %vm5187_vm3, %v5305_v7, 0  ;;  %v5376_v9 = vsel %vm5187_vm3, 0, %v491_v55  ;;  %v887_v6 = vsel %vm869_vm4, %v885_v29, %v886_v58 }
  0x52   : > { %7179 = vst [vmem:[#allocation5_spill] sm:$0xff] %v5369_v14  ;;  %7180 = vst [vmem:[#allocation6_spill] sm:$0xff] %v5376_v9  ;;  %v707_v10 = vrot.slane %v705_v59, 1  ;;  %v894_v39 = vrot.slane %v5340_v31, 1  ;;  %v736_v16 = vshll.u32 %v5369_v14, 16  ;;  %v720_v7 = vsel %vm612_vm2, %v715_v4, %v719_v11 }
  0x53   : > { %930 = vrot.lane.b32.xlu0 %v890_v28, %s4962_s9  ;;  %v895_v17 = vrot.slane %v603_v44, 1  ;;  %v734_v19 = vshrl.u32 %v5369_v14, 16  ;;  %v741_v20 = vshll.u32 %v605_v15, 16  ;;  %v703_v21 = vor.u32 %v702_v5, %v698_v62 }
  0x54   : > { %815 = vrot.lane.b32.xlu1 %v684_v12, %s4961_s8  ;;  %v724_v40 = vshll.u32 %v5376_v9, 16  ;;  %v738_v23 = vrot.slane %v736_v16, 1  ;;  %v604_v3 = vsel %vm5187_vm3, %v488_v22, 0  ;;  %v2657_v24 = vsel %vm2482_vm7, %v4937_v42, 0 }
  0x55   : > { %v891_v25 = vrot.slane %v5336_v18, 1  ;;  %4581 = vmatpush3.bf16.msra.mxu1 %v2657_v24  ;;  %v892_v26 = vrot.slane %v5351_v48, 1  ;;  %v896_v38 = vsel %vm869_vm4, %v894_v39, %v895_v17  ;;  %v743_v43 = vrot.slane %v741_v20, 1 }
  0x56   : > { %v739_v47 = vor.u32 %v738_v23, %v734_v19  ;;  %v708_v32 = vsel %vm612_vm2, %v703_v21, %v707_v10  ;;  %v722_v22 = vshrl.u32 %v5376_v9, 16  ;;  %v726_v30 = vrot.slane %v724_v40, 1 }
  0x57   : > { %821 = vrot.lane.b32.xlu0 %v720_v7, %s4961_s8  ;;  %v729_v33 = vshll.u32 %v604_v3, 16  ;;  %v900_v44 = vrot.slane %v5369_v14, 1  ;;  %v901_v48 = vrot.slane %v605_v15, 1  ;;  %v893_v0 = vsel %vm869_vm4, %v891_v25, %v892_v26 }
  0x58   : > { %928 = vrot.lane.b32.xlu1 %v887_v6, %s4962_s9  ;;  %v744_v37 = vsel %vm612_vm2, %v739_v47, %v743_v43  ;;  %v727_v13 = vor.u32 %v726_v30, %v722_v22  ;;  %v1086_v51 = vsel %vm1084_vm6, %v4938_v36, 0  ;;  %v897_v53 = vrot.slane %v5376_v9, 1 }
  0x59   : > { %v731_v50 = vrot.slane %v729_v33, 1  ;;  %v902_v1 = vsel %vm869_vm4, %v900_v44, %v901_v48  ;;  %4441 = vmatpush3.bf16.msra.mxu0 %v1086_v51  ;;  %v898_v55 = vrot.slane %v604_v3, 1  ;;  %v500_v3 = vshrl.u32 %v5157_v61, 16 }
  0x5b   : > { %934 = vrot.lane.b32.xlu0 %v896_v38, %s4962_s9  ;;  %v732_v52 = vsel %vm612_vm2, %v727_v13, %v731_v50  ;;  %v899_v41 = vsel %vm869_vm4, %v897_v53, %v898_v55  ;;  %v502_v51 = vrot.slane %v500_v3, 7 }
  0x5c   : > { %819 = vrot.lane.b32.xlu1 %v708_v32, %s4961_s8 }
  0x5f   : > { %825 = vrot.lane.b32.xlu0 %v744_v37, %s4961_s8 }
  0x60   : > { %932 = vrot.lane.b32.xlu1 %v893_v0, %s4962_s9 }
  0x63   : > { %938 = vrot.lane.b32.xlu0 %v902_v1, %s4962_s9  ;;  %v503_v1 = vshll.u32 %v5157_v61, 16 }
  0x64   : > { %823 = vrot.lane.b32.xlu1 %v732_v52, %s4961_s8  ;;  %v507_v52 = vshrl.u32 %v5212_v54, 16 }
  0x68   : > { %936 = vrot.lane.b32.xlu1 %v899_v41, %s4962_s9 }
  0x8d   : > { %v1641_v56 = vpop.permute.xlu0 %1640 }
  0x8e   : > { %v1674_v29 = vrot.slane %v1641_v56, 7  ;;  %v1645_v58 = vpop.permute.xlu1 %1644 }
  0x8f   : > { %v1676_v12 = vrot.slane %v1645_v58, 7 }
  0x90   : > { %v5420_v59 = vsel %vm575_vm0, 0, %v1674_v29  ;;  %v5423_v28 = vsel %vm575_vm0, %v1674_v29, 0 }
  0x91   : > { %7181 = vst [vmem:[#allocation7_spill] sm:$0xff] %v5420_v59  ;;  %v1643_v62 = vpop.permute.xlu0 %1642  ;;  %v2197_v11 = vrot.slane %v5420_v59, 2  ;;  %v2198_v5 = vrot.slane %v5423_v28, 2  ;;  %v1955_v15 = vrot.slane %v5420_v59, 1  ;;  %v1956_v10 = vrot.slane %v5423_v28, 1 }
  0x92   : > { %v1675_v4 = vrot.slane %v1643_v62, 7  ;;  %v1647_v39 = vpop.permute.xlu1 %1646  ;;  %v5437_v7 = vsel %vm575_vm0, %v1676_v12, 0  ;;  %v5443_v20 = vsel %vm575_vm0, 0, %v1676_v12 }
  0x93   : > { %v2199_v16 = vsel %vm1084_vm6, %v2197_v11, %v2198_v5  ;;  %v1957_v17 = vsel %vm869_vm4, %v1955_v15, %v1956_v10  ;;  %7183 = vst [vmem:[#allocation9_spill] sm:$0xff] %v5443_v20  ;;  %v1677_v21 = vrot.slane %v1647_v39, 7  ;;  %v2203_v26 = vrot.slane %v5443_v20, 2 }
  0x94   : > { %v5429_v42 = vsel %vm575_vm0, 0, %v1675_v4  ;;  %v5432_v6 = vsel %vm575_vm0, %v1675_v4, 0  ;;  %2241 = vrot.lane.b32.xlu1 %v2199_v16, %s4964_s11  ;;  %1999 = vrot.lane.b32.xlu0 %v1957_v17, %s4962_s9  ;;  %v2204_v47 = vrot.slane %v5437_v7, 2  ;;  %v1961_v43 = vrot.slane %v5443_v20, 1 }
  0x95   : > { %7182 = vst [vmem:[#allocation8_spill] sm:$0xff] %v5429_v42  ;;  %v2200_v19 = vrot.slane %v5429_v42, 2  ;;  %v2201_v40 = vrot.slane %v5432_v6, 2  ;;  %v1649_v23 = vpop.permute.xlu0 %1648  ;;  %v1958_v24 = vrot.slane %v5429_v42, 1  ;;  %v1959_v25 = vrot.slane %v5432_v6, 1 }
  0x96   : > { %v1962_v32 = vrot.slane %v5437_v7, 1  ;;  %v5456_v22 = vsel %vm575_vm0, %v1677_v21, 0  ;;  %v1678_v33 = vrot.slane %v1649_v23, 7  ;;  %v5461_v36 = vsel %vm575_vm0, 0, %v1677_v21  ;;  %v1651_v44 = vpop.permute.xlu1 %1650 }
  0x97   : > { %v2202_v38 = vsel %vm1084_vm6, %v2200_v19, %v2201_v40  ;;  %v1960_v30 = vsel %vm869_vm4, %v1958_v24, %v1959_v25  ;;  %7184 = vst [vmem:[#allocation10_spill] sm:$0xff] %v5461_v36  ;;  %v2205_v37 = vsel %vm1084_vm6, %v2203_v26, %v2204_v47  ;;  %v2206_v13 = vrot.slane %v5461_v36, 2 }
  0x98   : > { %2243 = vrot.lane.b32.xlu1 %v2202_v38, %s4964_s11  ;;  %2001 = vrot.lane.b32.xlu0 %v1960_v30, %s4962_s9  ;;  %v5466_v48 = vsel %vm575_vm0, %v1678_v33, 0  ;;  %v1963_v0 = vsel %vm869_vm4, %v1961_v43, %v1962_v32  ;;  %v2207_v53 = vrot.slane %v5456_v22, 2  ;;  %v5474_v55 = vsel %vm575_vm0, 0, %v1678_v33 }
  0x99   : > { %v1653_v50 = vpop.permute.xlu0 %1652  ;;  %v1679_v41 = vrot.slane %v1651_v44, 7  ;;  %v1964_v56 = vrot.slane %v5461_v36, 1  ;;  %v1965_v29 = vrot.slane %v5456_v22, 1  ;;  %v2209_v61 = vrot.slane %v5474_v55, 2 }
  0x9a   : > { %v2208_v58 = vsel %vm1084_vm6, %v2206_v13, %v2207_v53  ;;  %v2210_v62 = vrot.slane %v5466_v48, 2  ;;  %v1967_v12 = vrot.slane %v5474_v55, 1  ;;  %v1968_v5 = vrot.slane %v5466_v48, 1  ;;  %v1655_v17 = vpop.permute.xlu1 %1654 }
  0x9b   : > { %v5484_v4 = vsel %vm575_vm0, %v1679_v41, 0  ;;  %v1966_v11 = vsel %vm869_vm4, %v1964_v56, %v1965_v29  ;;  %v514_v10 = vshrl.u32 %v5195_v34, 16  ;;  %v5492_v39 = vrot.slane %v507_v52, 7 }
  0x9c   : > { %2245 = vrot.lane.b32.xlu1 %v2205_v37, %s4964_s11  ;;  %2003 = vrot.lane.b32.xlu0 %v1963_v0, %s4962_s9  ;;  %v510_v16 = vshll.u32 %v5212_v54, 16  ;;  %v505_v19 = vor.u32 %v503_v1, %v502_v51  ;;  %v5496_v21 = vsel %vm575_vm0, 0, %v1679_v41  ;;  %v1680_v40 = vrot.slane %v1653_v50, 7 }
  0x9d   : > { %v5489_v15 = vpop.permute.xlu0 %1656  ;;  %v2211_v23 = vsel %vm1084_vm6, %v2209_v61, %v2210_v62  ;;  %v2212_v3 = vrot.slane %v5496_v21, 2  ;;  %v2213_v24 = vrot.slane %v5484_v4, 2  ;;  %v1969_v54 = vsel %vm869_vm4, %v1967_v12, %v1968_v5 }
  0x9e   : > { %v5504_v25 = vsel %vm575_vm0, %v1680_v40, 0  ;;  %v1970_v26 = vrot.slane %v5496_v21, 1  ;;  %v1971_v38 = vrot.slane %v5484_v4, 1  ;;  %v5511_v43 = vrot.slane %v514_v10, 7 }
  0x9f   : > { %v512_v30 = vor.u32 %v510_v16, %v5492_v39  ;;  %v1681_v33 = vrot.slane %v1655_v17, 7  ;;  %v5519_v0 = vsel %vm575_vm0, 0, %v1680_v40  ;;  %v5524_v13 = vsel %vm5187_vm3, 0, %v505_v19 }
  0xa0   : > { %2247 = vrot.lane.b32.xlu1 %v2208_v58, %s4964_s11  ;;  %2005 = vrot.lane.b32.xlu0 %v1966_v11, %s4962_s9  ;;  %v5515_v37 = vpop.permute.xlu1 %1658  ;;  %v5528_v50 = vsel %vm5187_vm3, %v502_v51, 0  ;;  %v2214_v52 = vsel %vm1084_vm6, %v2212_v3, %v2213_v24  ;;  %v2215_v53 = vrot.slane %v5519_v0, 2  ;;  %v2216_v41 = vrot.slane %v5504_v25, 2 }
  0xa1   : > { %v5509_v47 = vpop.permute.xlu0 %1660  ;;  %v5532_v1 = vsel %vm575_vm0, %v1681_v33, 0  ;;  %v1764_v56 = vshll.u32 %v5429_v42, 16  ;;  %v1972_v29 = vsel %vm869_vm4, %v1970_v26, %v1971_v38  ;;  %v1973_v58 = vrot.slane %v5519_v0, 1 }
  0xa2   : > { %v1974_v51 = vrot.slane %v5504_v25, 1  ;;  %v5542_v61 = vsel %vm575_vm0, 0, %v1681_v33  ;;  %v748_v12 = vshll.u32 %v5524_v13, 16  ;;  %v5550_v5 = vsel %vm5187_vm3, 0, %v512_v30 }
  0xa3   : > { %v1754_v10 = vshll.u32 %v5420_v59, 16  ;;  %v1758_v16 = vshll.u32 %v5423_v28, 16  ;;  %v2218_v17 = vrot.slane %v5542_v61, 2  ;;  %v2219_v19 = vrot.slane %v5532_v1, 2 }
  0xa4   : > { %2249 = vrot.lane.b32.xlu1 %v2211_v23, %s4964_s11  ;;  %2007 = vrot.lane.b32.xlu0 %v1969_v54, %s4962_s9  ;;  %v2040_v40 = vshrl.u32 %v5423_v28, 16  ;;  %v2217_v23 = vsel %vm1084_vm6, %v2215_v53, %v2216_v41  ;;  %v1976_v3 = vrot.slane %v5542_v61, 1  ;;  %v1752_v24 = vshrl.u32 %v5420_v59, 16 }
  0xa5   : > { %v5544_v62 = vpop.permute.xlu0 %1664  ;;  %v1975_v26 = vsel %vm869_vm4, %v1973_v58, %v1974_v51  ;;  %v1977_v38 = vrot.slane %v5532_v1, 1  ;;  %v1762_v30 = vshrl.u32 %v5429_v42, 16  ;;  %v1766_v33 = vrot.slane %v1764_v56, 1 }
  0xa6   : > { %7185 = vst [vmem:[#allocation11_spill] sm:$0xff] %v5544_v62  ;;  %v5562_v54 = vpop.permute.xlu1 %1662  ;;  %v2049_v28 = vshrl.u32 %v5432_v6, 16  ;;  %v1774_v41 = vshll.u32 %v5443_v20, 16  ;;  %v2220_v32 = vsel %vm1084_vm6, %v2218_v17, %v2219_v19  ;;  %v1756_v58 = vrot.slane %v1754_v10, 1 }
  0xa7   : > { %v2037_v44 = vrot.slane %v1752_v24, 1  ;;  %v2038_v11 = vrot.slane %v1754_v10, 2  ;;  %v2042_v59 = vrot.slane %v2040_v40, 1  ;;  %v2043_v42 = vrot.slane %v1758_v16, 2 }
  0xa8   : > { %2251 = vrot.lane.b32.xlu1 %v2214_v52, %s4964_s11  ;;  %2009 = vrot.lane.b32.xlu0 %v1972_v29, %s4962_s9  ;;  %v1768_v52 = vshll.u32 %v5432_v6, 16  ;;  %v5569_v29 = vrot.slane %v748_v12, 1  ;;  %v1978_v53 = vsel %vm869_vm4, %v1976_v3, %v1977_v38  ;;  %v1767_v57 = vor.u32 %v1766_v33, %v1762_v30 }
  0xa9   : > { %v5577_v6 = vpop.permute.xlu0 %1892  ;;  %v2046_v62 = vrot.slane %v1762_v30, 1  ;;  %v1778_v17 = vshll.u32 %v5437_v7, 16  ;;  %v1784_v19 = vshll.u32 %v5461_v36, 16  ;;  %v2051_v51 = vrot.slane %v2049_v28, 1 }
  0xaa   : > { %v5579_v12 = vpop.permute.xlu1 %1666  ;;  %v2052_v14 = vrot.slane %v1768_v52, 2  ;;  %v1788_v10 = vshll.u32 %v5456_v22, 16  ;;  %v1770_v40 = vrot.slane %v1768_v52, 1  ;;  %v1757_v9 = vor.u32 %v1756_v58, %v1752_v24 }
  0xab   : > { %7186 = vst [vmem:[#allocation12_spill] sm:$0xff] %v5579_v12  ;;  %v2067_v12 = vshrl.u32 %v5456_v22, 16  ;;  %v1794_v3 = vshll.u32 %v5474_v55, 16  ;;  %v2044_v38 = vor.u32 %v2043_v42, %v2042_v59  ;;  %v1760_v28 = vrot.slane %v1758_v16, 1 }
  0xac   : > { %2253 = vrot.lane.b32.xlu1 %v2217_v23, %s4964_s11  ;;  %2011 = vrot.lane.b32.xlu0 %v1975_v26, %s4962_s9  ;;  %v2047_v23 = vrot.slane %v1764_v56, 2  ;;  %v2058_v26 = vshrl.u32 %v5437_v7, 16  ;;  %v2039_v56 = vor.u32 %v2038_v11, %v2037_v44  ;;  %v1771_v33 = vsel %vm612_vm2, %v1767_v57, %v1770_v40 }
  0xad   : > { %v1772_v31 = vshrl.u32 %v5443_v20, 16  ;;  %v2053_v18 = vor.u32 %v2052_v14, %v2051_v51  ;;  %v1786_v24 = vrot.slane %v1784_v19, 1  ;;  %v1776_v52 = vrot.slane %v1774_v41, 1  ;;  %v5595_v22 = vpop.permute.xlu0 %807 }
  0xae   : > { %v5590_v30 = vpop.permute.xlu1 %1997  ;;  %v2048_v7 = vor.u32 %v2047_v23, %v2046_v62  ;;  %v2076_v44 = vshrl.u32 %v5466_v48, 16  ;;  %v1804_v59 = vshll.u32 %v5496_v21, 16  ;;  %v1761_v57 = vsel %vm612_vm2, %v1757_v9, %v1760_v28 }
  0xaf   : > { %v1808_v42 = vshll.u32 %v5484_v4, 16  ;;  %v2085_v14 = vshrl.u32 %v5484_v4, 16  ;;  %v2045_v62 = vsel %vm2027_vm5, %v2039_v56, %v2044_v38  ;;  %v1790_v11 = vrot.slane %v1788_v10, 1 }
  0xb0   : > { %2255 = vrot.lane.b32.xlu1 %v2220_v32, %s4964_s11  ;;  %2013 = vrot.lane.b32.xlu0 %v1978_v53, %s4962_s9  ;;  %v1782_v32 = vshrl.u32 %v5461_v36, 16  ;;  %v2055_v53 = vrot.slane %v1772_v31, 1  ;;  %v2056_v51 = vrot.slane %v1774_v41, 2  ;;  %v2060_v23 = vrot.slane %v2058_v26, 1 }
  0xb1   : > { %v2061_v40 = vrot.slane %v1778_v17, 2  ;;  %v2054_v58 = vsel %vm2027_vm5, %v2048_v7, %v2053_v18  ;;  %v1777_v20 = vor.u32 %v1776_v52, %v1772_v31  ;;  %v1780_v9 = vrot.slane %v1778_v17, 1  ;;  %v5615_v18 = vpop.permute.xlu0 %809 }
  0xb2   : > { %v5606_v16 = vpop.permute.xlu1 %2163  ;;  %v2064_v28 = vrot.slane %v1782_v32, 1  ;;  %v2065_v4 = vrot.slane %v1784_v19, 2  ;;  %v2069_v36 = vrot.slane %v2067_v12, 1  ;;  %v1682_v41 = vrot.slane %v5489_v15, 7 }
  0xb3   : > { %v1792_v26 = vshrl.u32 %v5474_v55, 16  ;;  %v2057_v17 = vor.u32 %v2056_v51, %v2055_v53  ;;  %v2062_v7 = vor.u32 %v2061_v40, %v2060_v23  ;;  %v1802_v19 = vshrl.u32 %v5496_v21, 16 }
  0xb4   : > { %1896 = vrot.lane.b32.xlu1 %v1771_v33, %s4961_s8  ;;  %1894 = vrot.lane.b32.xlu0 %v1761_v57, %s4961_s8  ;;  %v1787_v33 = vor.u32 %v1786_v24, %v1782_v32  ;;  %v2070_v57 = vrot.slane %v1788_v10, 2  ;;  %v1806_v12 = vrot.slane %v1804_v59, 1  ;;  %v1824_v10 = vshll.u32 %v5542_v61, 16 }
  0xb5   : > { %v1781_v15 = vsel %vm612_vm2, %v1777_v20, %v1780_v9  ;;  %v2066_v52 = vor.u32 %v2065_v4, %v2064_v28  ;;  %v1683_v53 = vrot.slane %v5515_v37, 7  ;;  %v2073_v51 = vrot.slane %v1792_v26, 1 }
  0xb6   : > { %v5617_v31 = vpop.permute.xlu1 %920  ;;  %v1791_v24 = vsel %vm612_vm2, %v1787_v33, %v1790_v11  ;;  %v2074_v23 = vrot.slane %v1794_v3, 2  ;;  %v2078_v40 = vrot.slane %v2076_v44, 1  ;;  %v7187_v38 = vshll.u32 %v5466_v48, 16 }
  0xb7   : > { %v5632_v20 = vsel %vm575_vm0, 0, %v1682_v41  ;;  %v2063_v11 = vsel %vm2027_vm5, %v2057_v17, %v2062_v7  ;;  %v1810_v33 = vrot.slane %v1808_v42, 1  ;;  %v2082_v9 = vrot.slane %v1802_v19, 1 }
  0xb8   : > { %2165 = vrot.lane.b32.xlu1 %v2045_v62, %s4963_s10  ;;  %2167 = vrot.lane.b32.xlu0 %v2054_v58, %s4963_s10  ;;  %v2071_v58 = vor.u32 %v2070_v57, %v2069_v36  ;;  %v1796_v62 = vrot.slane %v1794_v3, 1  ;;  %v2079_v56 = vrot.slane %v7187_v38, 2  ;;  %v1807_v36 = vor.u32 %v1806_v12, %v1802_v19  ;;  %v5635_v57 = vpop.permute.xlu0 %2239 }
  0xb9   : > { %v2083_v37 = vrot.slane %v1804_v59, 2  ;;  %v2087_v28 = vrot.slane %v2085_v14, 1  ;;  %v2088_v4 = vrot.slane %v1808_v42, 2  ;;  %v2075_v17 = vor.u32 %v2074_v23, %v2073_v51 }
  0xba   : > { %v5629_v32 = vpop.permute.xlu1 %922  ;;  %v2072_v3 = vsel %vm2027_vm5, %v2066_v52, %v2071_v58  ;;  %v1797_v44 = vor.u32 %v1796_v62, %v1792_v26  ;;  %v2080_v59 = vor.u32 %v2079_v56, %v2078_v40  ;;  %v1822_v42 = vshrl.u32 %v5542_v61, 16 }
  0xbb   : > { %v1826_v14 = vrot.slane %v1824_v10, 1  ;;  %v2094_v26 = vshrl.u32 %v5504_v25, 16  ;;  %v2103_v48 = vshrl.u32 %v5532_v1, 16  ;;  %v5653_v19 = vsel %vm575_vm0, %v1682_v41, 0 }
  0xbc   : > { %1900 = vrot.lane.b32.xlu1 %v1791_v24, %s4961_s8  ;;  %1898 = vrot.lane.b32.xlu0 %v1781_v15, %s4961_s8  ;;  %v1800_v24 = vrot.slane %v7187_v38, 1  ;;  %v5642_v15 = vsel %vm575_vm0, 0, %v1683_v53  ;;  %v1812_v12 = vshrl.u32 %v5519_v0, 16  ;;  %v1811_v56 = vsel %vm612_vm2, %v1807_v36, %v1810_v33  ;;  %v5659_v23 = vpop.permute.xlu0 %813 }
  0xbd   : > { %v2084_v52 = vor.u32 %v2083_v37, %v2082_v9  ;;  %v2089_v58 = vor.u32 %v2088_v4, %v2087_v28  ;;  %v7188_v62 = vshll.u32 %v5519_v0, 16  ;;  %v1834_v40 = vshll.u32 %v5632_v20, 16 }
  0xbe   : > { %v5648_v7 = vpop.permute.xlu1 %811  ;;  %v5665_v41 = vsel %vm575_vm0, %v1683_v53, 0  ;;  %v2081_v36 = vsel %vm2027_vm5, %v2075_v17, %v2080_v59  ;;  %v2270_v33 = vsel %vm950_vm8, %v5101_v8, %v5577_v6  ;;  %v1827_v9 = vor.u32 %v1826_v14, %v1822_v42 }
  0xbf   : > { %v1816_v51 = vrot.slane %v7188_v62, 1  ;;  %v7189_v37 = vshll.u32 %v5532_v1, 16  ;;  %v7190_v53 = vmov %v7188_v62  ;;  %v2090_v17 = vsel %vm2027_vm5, %v2084_v52, %v2089_v58 }
  0xc0   : > { %2169 = vrot.lane.b32.xlu1 %v2063_v11, %s4963_s10  ;;  %2171 = vrot.lane.b32.xlu0 %v2072_v3, %s4963_s10  ;;  %v1801_v11 = vsel %vm612_vm2, %v1797_v44, %v1800_v24  ;;  %v2091_v44 = vrot.slane %v1812_v12, 1  ;;  %v2092_v38 = vrot.slane %v7190_v53, 2  ;;  %v2096_v24 = vrot.slane %v2094_v26, 1 }
  0xc1   : > { %v1830_v28 = vrot.slane %v7189_v37, 1  ;;  %v1817_v59 = vor.u32 %v1816_v51, %v1812_v12  ;;  %v2100_v6 = vrot.slane %v1822_v42, 1  ;;  %v2101_v14 = vrot.slane %v1824_v10, 2  ;;  %v5698_v10 = vpop.permute.xlu0 %926 }
  0xc2   : > { %v5675_v4 = vpop.permute.xlu1 %924  ;;  %v2105_v37 = vrot.slane %v2103_v48, 1  ;;  %v7193_v3 = vshll.u32 %v5532_v1, 16  ;;  %v2300_v26 = vsel %vm983_vm9, %v2270_v33, %v5590_v30  ;;  %v1848_v12 = vshll.u32 %v5665_v41, 16 }
  0xc3   : > { %v954_v42 = vsel %vm950_vm8, %v5203_v45, %v5595_v22  ;;  %v2093_v1 = vor.u32 %v2092_v38, %v2091_v44  ;;  %v1832_v58 = vshrl.u32 %v5632_v20, 16  ;;  %v1836_v30 = vrot.slane %v1834_v40, 1 }
  0xc4   : > { %1904 = vrot.lane.b32.xlu1 %v1811_v56, %s4961_s8  ;;  %1902 = vrot.lane.b32.xlu0 %v1801_v11, %s4961_s8  ;;  %v7191_v56 = vshll.u32 %v5504_v25, 16  ;;  %v2106_v53 = vrot.slane %v7193_v3, 2  ;;  %v1831_v25 = vsel %vm612_vm2, %v1827_v9, %v1830_v28  ;;  %v1842_v3 = vshrl.u32 %v5642_v15, 16 }
  0xc5   : > { %v2330_v45 = vsel %vm1051_vm10, %v2300_v26, %v5606_v16  ;;  %v2102_v22 = vor.u32 %v2101_v14, %v2100_v6  ;;  %v956_v28 = vsel %vm950_vm8, %v5228_v2, %v5615_v18  ;;  %v2112_v38 = vshrl.u32 %v5653_v19, 16 }
  0xc6   : > { %v2097_v62 = vrot.slane %v7191_v56, 2  ;;  %v7192_v11 = vmov %v7191_v56  ;;  %v1838_v56 = vshll.u32 %v5653_v19, 16  ;;  %v816_v48 = vpop.permute.xlu1 %815  ;;  %v2107_v9 = vor.u32 %v2106_v53, %v2105_v37  ;;  %v5747_v37 = vpop.permute.xlu0 %817 }
  0xc7   : > { %v1820_v8 = vrot.slane %v7192_v11, 1  ;;  %v5715_v44 = vsel %vm2359_vm11, %v2330_v45, %v5635_v57  ;;  %v5729_v2 = vsel %vm5187_vm3, %v5492_v39, 0  ;;  %v1850_v6 = vrot.slane %v1848_v12, 1 }
  0xc8   : > { %2173 = vrot.lane.b32.xlu1 %v2081_v36, %s4963_s10  ;;  %2175 = vrot.lane.b32.xlu0 %v2090_v17, %s4963_s10  ;;  %v2098_v52 = vor.u32 %v2097_v62, %v2096_v24  ;;  %v7194_v36 = vshll.u32 %v5642_v15, 16  ;;  %v7195_v24 = vshrl.u32 %v5524_v13, 16  ;;  %v7196_v62 = vshll.u32 %v5528_v50, 16 }
  0xc9   : > { %v1821_v51 = vsel %vm612_vm2, %v1817_v59, %v1820_v8  ;;  %4582 = vmatprep.mubr.msk.bf16.mxu1 %vm2449_vm12, %v5715_v44  ;;  %v1837_v59 = vor.u32 %v1836_v30, %v1832_v58  ;;  %v1840_v11 = vrot.slane %v1838_v56, 1  ;;  %v5741_v39 = vsel %vm983_vm9, %v956_v28, %v5629_v32 }
  0xca   : > { %v1846_v33 = vrot.slane %v7194_v36, 1  ;;  %v751_v16 = vor.u32 %v5569_v29, %v7195_v24  ;;  %v755_v17 = vrot.slane %v7196_v62, 1  ;;  %v929_v18 = vpop.permute.xlu1 %928  ;;  %v2099_v57 = vsel %vm2027_vm5, %v2093_v1, %v2098_v52  ;;  %4583 = vmatmul.mubr.msk.bf16.vlgmr.msra.gmra.mrb[0].mxu1 %vm2449_vm12, %v5715_v44  ;;  %v931_v62 = vpop.permute.xlu0 %930 }
  0xcb   : > { %v758_v29 = vshrl.u32 %v5550_v5, 16  ;;  %v5745_v14 = vsel %vm983_vm9, %v954_v42, %v5617_v31  ;;  %v2108_v53 = vsel %vm2027_vm5, %v2102_v22, %v2107_v9  ;;  %v7197_v26 = vshll.u32 %v5550_v5, 16 }
  0xcc   : > { %1908 = vrot.lane.b32.xlu1 %v1831_v25, %s4961_s8  ;;  %1906 = vrot.lane.b32.xlu0 %v1821_v51, %s4961_s8  ;;  %v1847_v8 = vor.u32 %v1846_v33, %v1842_v3  ;;  %v765_v1 = vshll.u32 %v5729_v2, 16  ;;  %v958_v32 = vsel %vm950_vm8, %v5273_v27, %v5648_v7  ;;  %v2109_v31 = vrot.slane %v1832_v58, 1 }
  0xcd   : > { %v762_v25 = vrot.slane %v7197_v26, 1  ;;  %4442 = vmatprep.mubr.msk.bf16.mxu0 %vm1051_vm10, %v5745_v14  ;;  %v2110_v42 = vrot.slane %v1834_v40, 2  ;;  %v2114_v52 = vrot.slane %v2112_v38, 1  ;;  %v2115_v30 = vrot.slane %v1838_v56, 2 }
  0xce   : > { %4443 = vmatmul.mubr.msk.bf16.vlgmr.msra.gmra.mrb[0].mxu0 %vm1051_vm10, %v5741_v39  ;;  %v524_v51 = vshll.u32 %v5224_v60, 16  ;;  %v1841_v36 = vsel %vm612_vm2, %v1837_v59, %v1840_v11  ;;  %v1979_v33 = vrot.slane %v5632_v20, 1  ;;  %v1980_v45 = vrot.slane %v5653_v19, 1  ;;  %v820_v27 = vpop.permute.xlu1 %819 }
  0xcf   : > { %v7198_v7 = vshrl.u32 %v5224_v60, 16  ;;  %v1851_v40 = vsel %vm612_vm2, %v1847_v8, %v1850_v6  ;;  %v960_v56 = vsel %vm950_vm8, %v5286_v49, %v5659_v23  ;;  %v5778_v22 = vsel %vm983_vm9, %v958_v32, %v5675_v4  ;;  %v294_v32 = vld [vmem:[%s5021_s28 + $0xe0] sm:$0xff] }
  0xd0   : > { %2177 = vrot.lane.b32.xlu1 %v2099_v57, %s4963_s10  ;;  %2179 = vrot.lane.b32.xlu0 %v2108_v53, %s4963_s10  ;;  %v756_v9 = vsel %vm612_vm2, %v751_v16, %v755_v17  ;;  %v903_v28 = vrot.slane %v5524_v13, 1  ;;  %v904_v60 = vrot.slane %v5528_v50, 1  ;;  %v962_v38 = vsel %vm950_vm8, %v5302_v63, %v816_v48 }
  0xd1   : > { %v5770_v58 = vrot.slane %v7198_v7, 7  ;;  %4446 = vmatprep.mubr.msk.bf16.mxu0 %vm1051_vm10, %v5778_v22  ;;  %v2111_v49 = vor.u32 %v2110_v42, %v2109_v31  ;;  %v2116_v23 = vor.u32 %v2115_v30, %v2114_v52  ;;  %v763_v4 = vor.u32 %v762_v25, %v758_v29  ;;  %v295_v31 = vld [vmem:[%s5021_s28 + $0xe8] sm:$0xff] }
  0xd2   : > { %v767_v24 = vrot.slane %v765_v1, 1  ;;  %v7199_v16 = vshll.u32 %v5195_v34, 16  ;;  %v1684_v57 = vrot.slane %v5509_v47, 7  ;;  %v1981_v50 = vsel %vm869_vm4, %v1979_v33, %v1980_v45  ;;  %v7201_v7 = vld [vmem:[#allocation3_spill] sm:$0xff] }
  0xd3   : > { %v5796_v59 = vsel %vm983_vm9, %v960_v56, %v5698_v10  ;;  %v1685_v63 = vrot.slane %v5562_v54, 7  ;;  %v1982_v48 = vrot.slane %v5642_v15, 1  ;;  %v1983_v11 = vrot.slane %v5665_v41, 1  ;;  %v933_v10 = vpop.permute.xlu1 %932 }
  0xd4   : > { %1912 = vrot.lane.b32.xlu1 %v1851_v40, %s4961_s8  ;;  %1910 = vrot.lane.b32.xlu0 %v1841_v36, %s4961_s8  ;;  %v519_v17 = vor.u32 %v7199_v16, %v5511_v43  ;;  %v5802_v29 = vsel %vm983_vm9, %v962_v38, %v929_v18  ;;  %v5805_v34 = vor.u32 %v524_v51, %v5770_v58  ;;  %v2121_v47 = vshrl.u32 %v5665_v41, 16  ;;  %v822_v51 = vpop.permute.xlu0 %821 }
  0xd5   : > { %v2117_v54 = vsel %vm2027_vm5, %v2111_v49, %v2116_v23  ;;  %v905_v8 = vsel %vm869_vm4, %v903_v28, %v904_v60  ;;  %v768_v6 = vsel %vm612_vm2, %v763_v4, %v767_v24  ;;  %v906_v18 = vrot.slane %v5550_v5, 1 }
  0xd6   : > { %4447 = vmatmul.mubr.msk.bf16.gmra.mrb[4].mxu0 %vm1051_vm10, %v5796_v59  ;;  %v5817_v53 = vsel %vm575_vm0, 0, %v1684_v57  ;;  %v907_v26 = vrot.slane %v5729_v2, 1  ;;  %v5822_v25 = vsel %vm5187_vm3, 0, %v519_v17  ;;  %v5827_v1 = vsel %vm5187_vm3, %v5511_v43, 0 }
  0xd7   : > { %4450 = vmatprep.mubr.msk.bf16.mxu0 %vm1051_vm10, %v5802_v29  ;;  %v5834_v42 = vsel %vm575_vm0, 0, %v1685_v63  ;;  %v1984_v52 = vsel %vm869_vm4, %v1982_v48, %v1983_v11  ;;  %v2118_v2 = vrot.slane %v1842_v3, 1  ;;  %v964_v30 = vsel %vm950_vm8, %v5314_v35, %v5747_v37  ;;  %v4949_v35 = vld [vmem:[%s7140_s1] ss:$0 sm:$0xff]  ;;  %v824_v38 = vpop.permute.xlu1 %823 }
  0xd8   : > { %827 = vrot.lane.b32.xlu1 %v756_v9, %s4961_s8  ;;  %2015 = vrot.lane.b32.xlu0 %v1981_v50, %s4962_s9  ;;  %v7200_v43 = vshll.u32 %v5642_v15, 16  ;;  %v2123_v33 = vrot.slane %v2121_v47, 1  ;;  %v2124_v45 = vrot.slane %v1848_v12, 2  ;;  %v966_v40 = vsel %vm950_vm8, %v7201_v7, %v820_v27  ;;  %v4950_v48 = vld [vmem:[%s7141_s2] ss:$0 sm:$0xff] }
  0xd9   : > { %v5850_v56 = vsel %vm575_vm0, %v1684_v57, 0  ;;  %v1854_v3 = vshll.u32 %v5817_v53, 16  ;;  %v332_v37 = vmul.f32 %v4949_v35, %v294_v32  ;;  %v333_v9 = vmul.f32 %v4949_v35, %v295_v31 }
  0xda   : > { %v2119_v36 = vrot.slane %v7200_v43, 2  ;;  %v5858_v28 = vsel %vm575_vm0, %v1685_v63, 0  ;;  %v2221_v12 = vrot.slane %v5632_v20, 2  ;;  %v2222_v27 = vrot.slane %v5653_v19, 2  ;;  %v935_v63 = vpop.permute.xlu0 %934 }
  0xdb   : > { %v5863_v60 = vsel %vm983_vm9, %v964_v30, %v931_v62  ;;  %v1864_v49 = vshll.u32 %v5834_v42, 16  ;;  %v908_v23 = vsel %vm869_vm4, %v906_v18, %v907_v26  ;;  %v770_v4 = vshrl.u32 %v5822_v25, 16  ;;  %v296_v18 = vld [vmem:[%s5021_s28 + $0xf0] sm:$0xff]  ;;  %v297_v30 = vld [vmem:[%s5021_s28 + $0xf8] sm:$0xff]  ;;  %v937_v7 = vpop.permute.xlu1 %936 }
  0xdc   : > { %2181 = vrot.lane.b32.xlu1 %v2117_v54, %s4963_s10  ;;  %2017 = vrot.lane.b32.xlu0 %v1984_v52, %s4962_s9  ;;  %v5869_v24 = vsel %vm983_vm9, %v966_v40, %v933_v10  ;;  %v2120_v16 = vor.u32 %v2119_v36, %v2118_v2  ;;  %v2125_v17 = vor.u32 %v2124_v45, %v2123_v33  ;;  %v772_v19 = vshll.u32 %v5822_v25, 16  ;;  %v7202_v52 = vld [vmem:[#allocation4_spill] sm:$0xff] }
  0xdd   : > { %v777_v62 = vshll.u32 %v5827_v1, 16  ;;  %v1858_v57 = vshll.u32 %v5850_v56, 16  ;;  %v1868_v50 = vshll.u32 %v5858_v28, 16  ;;  %v370_v11 = vadd.f32 %v4950_v48, %v332_v37 }
  0xde   : > { %4451 = vmatmul.mubr.msk.bf16.gmra.mrb[8].mxu0 %vm1051_vm10, %v5863_v60  ;;  %v371_v47 = vadd.f32 %v4950_v48, %v333_v9  ;;  %v2223_v10 = vsel %vm1084_vm6, %v2221_v12, %v2222_v27  ;;  %v2224_v54 = vrot.slane %v5642_v15, 2  ;;  %v2225_v26 = vrot.slane %v5665_v41, 2  ;;  %v7203_v41 = vld [vmem:[#allocation6_spill] sm:$0xff] }
  0xdf   : > { %4454 = vmatprep.mubr.msk.bf16.mxu0 %vm1051_vm10, %v5869_v24  ;;  %v1862_v32 = vshrl.u32 %v5834_v42, 16  ;;  %v1866_v31 = vrot.slane %v1864_v49, 1  ;;  %v968_v2 = vsel %vm950_vm8, %v7202_v52, %v822_v51  ;;  %v2126_v43 = vsel %vm2027_vm5, %v2120_v16, %v2125_v17 }
  0xe0   : > { %940 = vrot.lane.b32.xlu1 %v905_v8, %s4962_s9  ;;  %829 = vrot.lane.b32.xlu0 %v768_v6, %s4961_s8  ;;  %v1852_v8 = vshrl.u32 %v5817_v53, 16  ;;  %v1856_v6 = vrot.slane %v1854_v3, 1  ;;  %v774_v36 = vrot.slane %v772_v19, 1  ;;  %v5902_v33 = vsel %vm5187_vm3, 0, %v5805_v34 }
  0xe1   : > { %v970_v45 = vsel %vm950_vm8, %v7203_v41, %v824_v38  ;;  %v2130_v40 = vshrl.u32 %v5850_v56, 16  ;;  %v402_v51 = vmax.f32 %v370_v11, 0.0  ;;  %v403_v37 = vmax.f32 %v371_v47, 0.0 }
  0xe2   : > { %v334_v9 = vmul.f32 %v4949_v35, %v296_v18  ;;  %v1857_v12 = vor.u32 %v1856_v6, %v1852_v8  ;;  %v1860_v27 = vrot.slane %v1858_v57, 1  ;;  %v5909_v16 = vsel %vm983_vm9, %v968_v2, %v935_v63 }
  0xe3   : > { %v335_v17 = vmul.f32 %v4949_v35, %v297_v30  ;;  %v2226_v34 = vsel %vm1084_vm6, %v2224_v54, %v2225_v26  ;;  %v1867_v19 = vor.u32 %v1866_v31, %v1862_v32  ;;  %v1870_v38 = vrot.slane %v1868_v50, 1 }
  0xe4   : > { %2257 = vrot.lane.b32.xlu1 %v2223_v10, %s4964_s11  ;;  %2183 = vrot.lane.b32.xlu0 %v2126_v43, %s4963_s10  ;;  %v826_v10 = vpop.permute.xlu0 %825  ;;  %v5917_v52 = vsel %vm983_vm9, %v970_v45, %v937_v7  ;;  %v775_v11 = vor.u32 %v774_v36, %v770_v4  ;;  %v779_v47 = vrot.slane %v777_v62, 1  ;;  %v5923_v35 = vsel %vm5187_vm3, %v5770_v58, 0 }
  0xe5   : > { %v784_v63 = vshll.u32 %v5902_v33, 16  ;;  %v2127_v54 = vrot.slane %v1852_v8, 1  ;;  %v2128_v6 = vrot.slane %v1854_v3, 2  ;;  %v2132_v18 = vrot.slane %v2130_v40, 1  ;;  %v7204_v8 = vld [vmem:[#allocation5_spill] sm:$0xff] }
  0xe6   : > { %v2133_v26 = vrot.slane %v1858_v57, 2  ;;  %4455 = vmatmul.mubr.msk.bf16.gmra.mrb[12].mxu0 %vm1051_vm10, %v5909_v16  ;;  %v1861_v4 = vsel %vm612_vm2, %v1857_v12, %v1860_v27  ;;  %v1985_v62 = vrot.slane %v5817_v53, 1  ;;  %v1986_v58 = vrot.slane %v5850_v56, 1 }
  0xe7   : > { %v5934_v31 = vpack.c.bf16 %v403_v37, %v402_v51  ;;  %4458 = vmatprep.mubr.msk.bf16.mxu0 %vm1051_vm10, %v5917_v52  ;;  %v972_v3 = vsel %vm950_vm8, %v7204_v8, %v826_v10  ;;  %v372_v57 = vadd.f32 %v4950_v48, %v334_v9  ;;  %v373_v2 = vadd.f32 %v4950_v48, %v335_v17 }
  0xe8   : > { %2259 = vrot.lane.b32.xlu1 %v2226_v34, %s4964_s11  ;;  %942 = vrot.lane.b32.xlu0 %v908_v23, %s4962_s9  ;;  %v1871_v23 = vsel %vm612_vm2, %v1867_v19, %v1870_v38  ;;  %v780_v30 = vsel %vm612_vm2, %v775_v11, %v779_v47  ;;  %v2129_v43 = vor.u32 %v2128_v6, %v2127_v54  ;;  %v782_v41 = vshrl.u32 %v5902_v33, 16  ;;  %v939_v7 = vpop.permute.xlu0 %938  ;;  %v7205_v6 = vld [vmem:[#allocation11_spill] sm:$0xff] }
  0xe9   : > { %v2134_v36 = vor.u32 %v2133_v26, %v2132_v18  ;;  %v789_v45 = vshll.u32 %v5923_v35, 16  ;;  %v1987_v40 = vsel %vm869_vm4, %v1985_v62, %v1986_v58  ;;  %v786_v51 = vrot.slane %v784_v63, 1  ;;  %v7206_v26 = vld [vmem:[#allocation12_spill] sm:$0xff] }
  0xea   : > { %v528_v37 = vshrl.u32 %v5934_v31, 16  ;;  %v5949_v48 = vsel %vm983_vm9, %v972_v3, %v939_v7  ;;  %v1988_v9 = vrot.slane %v5834_v42, 1  ;;  %v1989_v12 = vrot.slane %v5858_v28, 1 }
  0xeb   : > { %v404_v27 = vmax.f32 %v372_v57, 0.0  ;;  %v405_v17 = vmax.f32 %v373_v2, 0.0  ;;  %v2139_v34 = vshrl.u32 %v5858_v28, 16  ;;  %v2135_v19 = vsel %vm2027_vm5, %v2129_v43, %v2134_v36 }
  0xec   : > { %1916 = vrot.lane.b32.xlu1 %v1871_v23, %s4961_s8  ;;  %1914 = vrot.lane.b32.xlu0 %v1861_v4, %s4961_s8  ;;  %v909_v38 = vrot.slane %v5822_v25, 1  ;;  %v910_v10 = vrot.slane %v5827_v1, 1  ;;  %v787_v11 = vor.u32 %v786_v51, %v782_v41  ;;  %v791_v47 = vrot.slane %v789_v45, 1 }
  0xed   : > { %v530_v63 = vrot.slane %v528_v37, 7  ;;  %v531_v54 = vshll.u32 %v5934_v31, 16  ;;  %v1686_v18 = vrot.slane %v7205_v6, 7  ;;  %v1687_v4 = vrot.slane %v7206_v26, 7 }
  0xee   : > { %4459 = vmatmul.mubr.msk.bf16.gmra.mrb[16].mxu0 %vm1051_vm10, %v5949_v48  ;;  %v1990_v62 = vsel %vm869_vm4, %v1988_v9, %v1989_v12  ;;  %v421_v58 = vpack.c.bf16 %v405_v17, %v404_v27  ;;  %v2136_v1 = vrot.slane %v1862_v32, 1  ;;  %v2137_v23 = vrot.slane %v1864_v49, 2 }
  0xef   : > { %v2141_v8 = vrot.slane %v2139_v34, 1  ;;  %v2142_v3 = vrot.slane %v1868_v50, 2  ;;  %v911_v57 = vsel %vm869_vm4, %v909_v38, %v910_v10  ;;  %v792_v2 = vsel %vm612_vm2, %v787_v11, %v791_v47 }
  0xf0   : > { %831 = vrot.lane.b32.xlu1 %v780_v30, %s4961_s8  ;;  %2019 = vrot.lane.b32.xlu0 %v1987_v40, %s4962_s9  ;;  %v533_v30 = vor.u32 %v531_v54, %v530_v63  ;;  %v535_v43 = vshrl.u32 %v421_v58, 16  ;;  %v5976_v36 = vsel %vm575_vm0, 0, %v1686_v18  ;;  %v2227_v32 = vrot.slane %v5817_v53, 2 }
  0xf1   : > { %v2228_v41 = vrot.slane %v5850_v56, 2  ;;  %v5981_v49 = vsel %vm575_vm0, 0, %v1687_v4  ;;  %v2138_v50 = vor.u32 %v2137_v23, %v2136_v1  ;;  %v2143_v45 = vor.u32 %v2142_v3, %v2141_v8 }
  0xf2   : > { %v912_v7 = vrot.slane %v5902_v33, 1  ;;  %v913_v40 = vrot.slane %v5923_v35, 1  ;;  %v1874_v51 = vshll.u32 %v5976_v36, 16  ;;  %v5990_v37 = vsel %vm5187_vm3, 0, %v533_v30 }
  0xf3   : > { %v537_v56 = vrot.slane %v535_v43, 7  ;;  %v538_v9 = vshll.u32 %v421_v58, 16  ;;  %v5993_v12 = vsel %vm575_vm0, %v1686_v18, 0  ;;  %v1884_v27 = vshll.u32 %v5981_v49, 16 }
  0xf4   : > { %2185 = vrot.lane.b32.xlu1 %v2135_v19, %s4963_s10  ;;  %2021 = vrot.lane.b32.xlu0 %v1990_v62, %s4962_s9  ;;  %v2229_v17 = vsel %vm1084_vm6, %v2227_v32, %v2228_v41  ;;  %v5998_v34 = vsel %vm575_vm0, %v1687_v4, 0  ;;  %v2144_v35 = vsel %vm2027_vm5, %v2138_v50, %v2143_v45  ;;  %v914_v19 = vsel %vm869_vm4, %v912_v7, %v913_v40  ;;  %v4939_v45 = vld [vmem:[%s7142_s3] sm:$0x3f]   ;;  %v4940_v7 = vld [vmem:[%s7143_s4 + $0x18] sm:$0xff]  }
  0xf5   : > { %v6006_v38 = vsel %vm5187_vm3, %v530_v63, 0  ;;  %v796_v10 = vshll.u32 %v5990_v37, 16  ;;  %v1878_v11 = vshll.u32 %v5993_v12, 16  ;;  %v540_v47 = vor.u32 %v538_v9, %v537_v56  ;;  %4915 = vmatprep.subr.msk.bf16.mxu0 %vm1084_vm6, %v4939_v45  ;;  %4614 = vmatprep.subr.bf16.mxu1 %v4940_v7 }
  0xf6   : > { %v1872_v54 = vshrl.u32 %v5976_v36, 16  ;;  %v1876_v6 = vrot.slane %v1874_v51, 1  ;;  %v1888_v18 = vshll.u32 %v5998_v34, 16  ;;  %v1882_v26 = vshrl.u32 %v5981_v49, 16  ;;  %4615 = vmatpush3.bf16.msra.mxu1 %v4940_v7 }
  0xf7   : > { %v1886_v4 = vrot.slane %v1884_v27, 1  ;;  %v2230_v63 = vrot.slane %v5834_v42, 2  ;;  %v2231_v62 = vrot.slane %v5858_v28, 2  ;;  %v794_v1 = vshrl.u32 %v5990_v37, 16 }
  0xf8   : > { %944 = vrot.lane.b32.xlu1 %v911_v57, %s4962_s9  ;;  %833 = vrot.lane.b32.xlu0 %v792_v2, %s4961_s8  ;;  %v798_v23 = vrot.slane %v796_v10, 1  ;;  %v801_v8 = vshll.u32 %v6006_v38, 16  ;;  %v2148_v3 = vshrl.u32 %v5993_v12, 16  ;;  %v6025_v57 = vsel %vm5187_vm3, 0, %v540_v47 }
  0xf9   : > { %v1877_v2 = vor.u32 %v1876_v6, %v1872_v54  ;;  %v1880_v30 = vrot.slane %v1878_v11, 1  ;;  %v1890_v28 = vrot.slane %v1888_v18, 1  ;;  %v2232_v43 = vsel %vm1084_vm6, %v2230_v63, %v2231_v62 }
  0xfa   : > { %v799_v32 = vor.u32 %v798_v23, %v794_v1  ;;  %v803_v41 = vrot.slane %v801_v8, 1  ;;  %v1021_v50 = vshll.u32 %v6025_v57, 16  ;;  %v2150_v40 = vrot.slane %v2148_v3, 1 }
  0xfb   : > { %v2145_v47 = vrot.slane %v1872_v54, 1  ;;  %v2146_v6 = vrot.slane %v1874_v51, 2  ;;  %v1991_v63 = vrot.slane %v5976_v36, 1  ;;  %v1019_v62 = vshrl.u32 %v6025_v57, 16 }
  0xfc   : > { %2261 = vrot.lane.b32.xlu1 %v2229_v17, %s4964_s11  ;;  %2187 = vrot.lane.b32.xlu0 %v2144_v35, %s4963_s10  ;;  %v6046_v17 = vsel %vm5187_vm3, %v537_v56, 0  ;;  %v2151_v35 = vrot.slane %v1878_v11, 2  ;;  %v804_v56 = vsel %vm612_vm2, %v799_v32, %v803_v41  ;;  %v1023_v11 = vrot.slane %v1021_v50, 1 }
  0xfd   : > { %v1026_v54 = vshll.u32 %v6046_v17, 16  ;;  %v1257_v51 = vsel %vm1084_vm6, %v4939_v45, 0  ;;  %v2157_v23 = vshrl.u32 %v5998_v34, 16  ;;  %v2147_v3 = vor.u32 %v2146_v6, %v2145_v47 }
  0xfe   : > { %4475 = vmatpush3.bf16.msra.mxu0 %v1257_v51  ;;  %v915_v50 = vrot.slane %v5990_v37, 1  ;;  %v916_v45 = vrot.slane %v6006_v38, 1  ;;  %v2160_v47 = vrot.slane %v1888_v18, 2  ;;  %v2154_v38 = vrot.slane %v1882_v26, 1 }
  0xff   : > { %v1028_v32 = vrot.slane %v1026_v54, 1  ;;  %v2159_v7 = vrot.slane %v2157_v23, 1  ;;  %v2234_v54 = vrot.slane %v5993_v12, 2 }
 0x100   : > { %1668 = vrot.lane.b32.xlu1 %v5934_v31, %s4959_s7  ;;  %946 = vrot.lane.b32.xlu0 %v914_v19, %s4962_s9  ;;  %v1887_v31 = vor.u32 %v1886_v4, %v1882_v26  ;;  %v1992_v4 = vrot.slane %v5993_v12, 1  ;;  %v917_v18 = vsel %vm869_vm4, %v915_v50, %v916_v45 }
 0x102   : > { %v1891_v10 = vsel %vm612_vm2, %v1887_v31, %v1890_v28  ;;  %v1993_v31 = vsel %vm869_vm4, %v1991_v63, %v1992_v4  ;;  %v1994_v28 = vrot.slane %v5981_v49, 1  ;;  %v2155_v4 = vrot.slane %v1884_v27, 2 }
 0x103   : > { %v2233_v27 = vrot.slane %v5976_v36, 2 }
 0x104   : > { %1670 = vrot.lane.b32.xlu1 %v421_v58, %s4959_s7  ;;  %2263 = vrot.lane.b32.xlu0 %v2232_v43, %s4964_s11  ;;  %v1881_v58 = vsel %vm612_vm2, %v1877_v2, %v1880_v30  ;;  %v2152_v2 = vor.u32 %v2151_v35, %v2150_v40  ;;  %v1995_v30 = vrot.slane %v5998_v34, 1  ;;  %v1024_v43 = vor.u32 %v1023_v11, %v1019_v62  ;;  %v7207_v35 = vld [vmem:[#allocation2_spill] sm:$0xff] }
 0x105   : > { %v4941_v62 = vld [vmem:[%s7143_s4 + $0x20] ss:$0 sps:$4 sm:$0x33]   ;;  %v595_v51 = vsel %vm5187_vm3, %v7207_v35, 0  ;;  %v2156_v23 = vor.u32 %v2155_v4, %v2154_v38  ;;  %v2235_v45 = vsel %vm1084_vm6, %v2233_v27, %v2234_v54 }
 0x106   : > { %v6041_v9 = vpop.permute.xlu1 %2241  ;;  %v6048_v19 = vpop.permute.xlu0 %1999  ;;  %v1996_v6 = vsel %vm869_vm4, %v1994_v28, %v1995_v30  ;;  %v1029_v63 = vsel %vm612_vm2, %v1024_v43, %v1028_v32  ;;  %4919 = vmatprep.subr.msk.bf16.mxu1 %vm2482_vm7, %v4941_v62  ;;  %v2879_v12 = vsel %vm2482_vm7, %v4941_v62, 0  ;;  %v621_v43 = vshll.u32 %v595_v51, 16 }
 0x107   : > { %4617 = vmatpush3.bf16.msra.mxu1 %v2879_v12  ;;  %v2237_v32 = vrot.slane %v5998_v34, 2 }
 0x108   : > { %1920 = vrot.lane.b32.xlu1 %v1891_v10, %s4961_s8  ;;  %1918 = vrot.lane.b32.xlu0 %v1881_v58, %s4961_s8  ;;  %v2153_v58 = vsel %vm2027_vm5, %v2147_v3, %v2152_v2  ;;  %v6080_v10 = vsel %vm5187_vm3, 0, %v7207_v35  ;;  %v2161_v3 = vor.u32 %v2160_v47, %v2159_v7  ;;  %v1034_v2 = vrot.slane %v6025_v57, 1 }
 0x109   : > { %v616_v11 = vshll.u32 %v6080_v10, 16  ;;  %v614_v28 = vshrl.u32 %v6080_v10, 16  ;;  %v2236_v7 = vrot.slane %v5981_v49, 2  ;;  %v871_v35 = vrot.slane %v595_v51, 1 }
 0x10a   : > { %v6060_v1 = vpop.permute.xlu1 %2243  ;;  %v6063_v8 = vpop.permute.xlu0 %2001  ;;  %v623_v4 = vrot.slane %v621_v43, 1 }
 0x10b   : > { %v618_v46 = vrot.slane %v616_v11, 1 }
 0x10c   : > { %835 = vrot.lane.b32.xlu1 %v804_v56, %s4961_s8  ;;  %2023 = vrot.lane.b32.xlu0 %v1993_v31, %s4962_s9  ;;  %v1035_v31 = vrot.slane %v6046_v17, 1  ;;  %v870_v17 = vrot.slane %v6080_v10, 1 }
 0x10d   : > { %v619_v38 = vor.u32 %v618_v46, %v614_v28 }
 0x10e   : > { %v6070_v41 = vpop.permute.xlu1 %2245  ;;  %v6074_v40 = vpop.permute.xlu0 %2003  ;;  %v872_v62 = vsel %vm869_vm4, %v870_v17, %v871_v35 }
 0x10f   : > { %v624_v11 = vsel %vm612_vm2, %v619_v38, %v623_v4  ;;  %v7211_v4 = vld [vmem:[#allocation9_spill] sm:$0xff] }
 0x110   : > { %2189 = vrot.lane.b32.xlu1 %v2153_v58, %s4963_s10  ;;  %2025 = vrot.lane.b32.xlu0 %v1996_v6, %s4962_s9  ;;  %v2162_v58 = vsel %vm2027_vm5, %v2156_v23, %v2161_v3  ;;  %v1036_v6 = vsel %vm869_vm4, %v1034_v2, %v1035_v31  ;;  %v7208_v2 = vld [vmem:[#allocation8_spill] sm:$0xff]  ;;  %v7209_v31 = vld [vmem:[#allocation7_spill] sm:$0xff] }
 0x112   : > { %v6095_v56 = vpop.permute.xlu1 %2247  ;;  %v6100_v26 = vpop.permute.xlu0 %2005 }
 0x114   : > { %1030 = vrot.lane.b32.xlu1 %v1029_v63, %s4961_s8  ;;  %948 = vrot.lane.b32.xlu0 %v917_v18, %s4962_s9  ;;  %v2238_v63 = vsel %vm1084_vm6, %v2236_v7, %v2237_v32 }
 0x116   : > { %v6111_v30 = vpop.permute.xlu1 %2249  ;;  %v2008_v50 = vpop.permute.xlu0 %2007 }
 0x118   : > { %2265 = vrot.lane.b32.xlu1 %v2235_v45, %s4964_s11  ;;  %2191 = vrot.lane.b32.xlu0 %v2162_v58, %s4963_s10 }
 0x11a   : > { %v2252_v47 = vpop.permute.xlu1 %2251  ;;  %v2010_v34 = vpop.permute.xlu0 %2009 }
 0x11c   : > { %2267 = vrot.lane.b32.xlu1 %v2238_v63, %s4964_s11  ;;  %1037 = vrot.lane.b32.xlu0 %v1036_v6, %s4962_s9 }
 0x11e   : > { %v2254_v18 = vpop.permute.xlu1 %2253  ;;  %v2012_v54 = vpop.permute.xlu0 %2011 }
 0x120   : > { %918 = vrot.lane.b32.xlu1 %v872_v62, %s4962_s9  ;;  %805 = vrot.lane.b32.xlu0 %v624_v11, %s4961_s8 }
 0x122   : > { %v2256_v27 = vpop.permute.xlu1 %2255  ;;  %v2014_v51 = vpop.permute.xlu0 %2013 }
 0x126   : > { %v1897_v23 = vpop.permute.xlu1 %1896  ;;  %v1895_v3 = vpop.permute.xlu0 %1894 }
 0x127   : > { %v2274_v12 = vsel %vm950_vm8, %v7208_v2, %v1897_v23  ;;  %v2272_v28 = vsel %vm950_vm8, %v7209_v31, %v1895_v3 }
 0x128   : > { %v2302_v43 = vsel %vm983_vm9, %v2272_v28, %v6048_v19  ;;  %v2304_v45 = vsel %vm983_vm9, %v2274_v12, %v6063_v8  ;;  %v7210_v8 = vld [vmem:[#allocation10_spill] sm:$0xff] }
 0x12a   : > { %v2166_v46 = vpop.permute.xlu1 %2165  ;;  %v2168_v7 = vpop.permute.xlu0 %2167 }
 0x12b   : > { %v2332_v32 = vsel %vm1051_vm10, %v2302_v43, %v2166_v46  ;;  %v2334_v58 = vsel %vm1051_vm10, %v2304_v45, %v2168_v7 }
 0x12c   : > { %v6142_v17 = vsel %vm2359_vm11, %v2332_v32, %v6041_v9  ;;  %v6148_v35 = vsel %vm2359_vm11, %v2334_v58, %v6060_v1 }
 0x12d   : > { %4586 = vmatprep.mubr.msk.bf16.mxu1 %vm2449_vm12, %v6142_v17 }
 0x12e   : > { %v1901_v19 = vpop.permute.xlu1 %1900  ;;  %4587 = vmatmul.mubr.msk.bf16.gmra.mrb[4].mxu1 %vm2449_vm12, %v6148_v35  ;;  %v1899_v6 = vpop.permute.xlu0 %1898 }
 0x12f   : > { %v2278_v38 = vsel %vm950_vm8, %v7210_v8, %v1901_v19  ;;  %v2276_v63 = vsel %vm950_vm8, %v7211_v4, %v1899_v6  ;;  %v6206_v6 = vld [vmem:[%s7143_s4 + $0x24] sm:$0xff]  }
 0x130   : > { %v2306_v62 = vsel %vm983_vm9, %v2276_v63, %v6074_v40  ;;  %v2308_v1 = vsel %vm983_vm9, %v2278_v38, %v6100_v26  ;;  %4650 = vmatprep.subr.bf16.mxu1 %v6206_v6 }
 0x132   : > { %v2170_v9 = vpop.permute.xlu1 %2169  ;;  %v2172_v23 = vpop.permute.xlu0 %2171 }
 0x133   : > { %v2336_v11 = vsel %vm1051_vm10, %v2306_v62, %v2170_v9  ;;  %v2338_v2 = vsel %vm1051_vm10, %v2308_v1, %v2172_v23 }
 0x134   : > { %v6163_v3 = vsel %vm2359_vm11, %v2336_v11, %v6070_v41  ;;  %v6168_v12 = vsel %vm2359_vm11, %v2338_v2, %v6095_v56 }
 0x135   : > { %4590 = vmatprep.mubr.msk.bf16.mxu1 %vm2449_vm12, %v6163_v3 }
 0x136   : > { %v1905_v40 = vpop.permute.xlu1 %1904  ;;  %4591 = vmatmul.mubr.msk.bf16.gmra.mrb[8].mxu1 %vm2449_vm12, %v6168_v12  ;;  %v1903_v31 = vpop.permute.xlu0 %1902 }
 0x137   : > { %v2282_v26 = vsel %vm950_vm8, %v5496_v21, %v1905_v40  ;;  %v2280_v41 = vsel %vm950_vm8, %v5474_v55, %v1903_v31 }
 0x138   : > { %v2310_v46 = vsel %vm983_vm9, %v2280_v41, %v2008_v50  ;;  %v2312_v43 = vsel %vm983_vm9, %v2282_v26, %v2010_v34 }
 0x13a   : > { %v2174_v28 = vpop.permute.xlu1 %2173  ;;  %v2176_v32 = vpop.permute.xlu0 %2175 }
 0x13b   : > { %v2340_v56 = vsel %vm1051_vm10, %v2310_v46, %v2174_v28  ;;  %v2342_v7 = vsel %vm1051_vm10, %v2312_v43, %v2176_v32 }
 0x13c   : > { %v6183_v45 = vsel %vm2359_vm11, %v2340_v56, %v6111_v30  ;;  %v6187_v58 = vsel %vm2359_vm11, %v2342_v7, %v2252_v47  ;;  %v6201_v47 = vld [vmem:[%s7142_s3 + $0x10] sm:$0x3f]  }
 0x13d   : > { %4594 = vmatprep.mubr.msk.bf16.mxu1 %vm2449_vm12, %v6183_v45  ;;  %4916 = vmatprep.subr.msk.bf16.mxu0 %vm1084_vm6, %v6201_v47 }
 0x13e   : > { %v1909_v55 = vpop.permute.xlu1 %1908  ;;  %4595 = vmatmul.mubr.msk.bf16.gmra.mrb[12].mxu1 %vm2449_vm12, %v6187_v58  ;;  %v1907_v21 = vpop.permute.xlu0 %1906 }
 0x13f   : > { %v2286_v50 = vsel %vm950_vm8, %v5542_v61, %v1909_v55  ;;  %v2284_v30 = vsel %vm950_vm8, %v5519_v0, %v1907_v21 }
 0x140   : > { %v2314_v19 = vsel %vm983_vm9, %v2284_v30, %v2012_v54  ;;  %v2316_v61 = vsel %vm983_vm9, %v2286_v50, %v2014_v51 }
 0x142   : > { %v2178_v34 = vpop.permute.xlu1 %2177  ;;  %v2180_v38 = vpop.permute.xlu0 %2179 }
 0x143   : > { %v2344_v8 = vsel %vm1051_vm10, %v2314_v19, %v2178_v34  ;;  %v2346_v54 = vsel %vm1051_vm10, %v2316_v61, %v2180_v38 }
 0x144   : > { %v6211_v0 = vsel %vm2359_vm11, %v2344_v8, %v2254_v18  ;;  %v6218_v4 = vsel %vm2359_vm11, %v2346_v54, %v2256_v27 }
 0x145   : > { %4598 = vmatprep.mubr.msk.bf16.mxu1 %vm2449_vm12, %v6211_v0 }
 0x146   : > { %v1913_v63 = vpop.permute.xlu1 %1912  ;;  %4599 = vmatmul.mubr.msk.bf16.gmra.mrb[16].mxu1 %vm2449_vm12, %v6218_v4  ;;  %v1911_v51 = vpop.permute.xlu0 %1910 }
 0x147   : > { %v2288_v40 = vsel %vm950_vm8, %v5632_v20, %v1911_v51  ;;  %v2290_v46 = vsel %vm950_vm8, %v5642_v15, %v1913_v63 }
 0x14a   : > { %v828_v18 = vpop.permute.xlu1 %827  ;;  %v2016_v9 = vpop.permute.xlu0 %2015 }
 0x14b   : > { %v974_v1 = vsel %vm950_vm8, %v5524_v13, %v828_v18  ;;  %v2318_v31 = vsel %vm983_vm9, %v2288_v40, %v2016_v9 }
 0x14e   : > { %v2182_v62 = vpop.permute.xlu1 %2181  ;;  %v2018_v11 = vpop.permute.xlu0 %2017 }
 0x14f   : > { %v2348_v26 = vsel %vm1051_vm10, %v2318_v31, %v2182_v62  ;;  %v2320_v20 = vsel %vm983_vm9, %v2290_v46, %v2018_v11 }
 0x152   : > { %v941_v23 = vpop.permute.xlu1 %940  ;;  %v830_v27 = vpop.permute.xlu0 %829 }
 0x153   : > { %v6227_v2 = vsel %vm983_vm9, %v974_v1, %v941_v23  ;;  %v976_v56 = vsel %vm950_vm8, %v5550_v5, %v830_v27 }
 0x154   : > { %4462 = vmatprep.mubr.msk.bf16.mxu0 %vm1051_vm10, %v6227_v2 }
 0x156   : > { %v2258_v41 = vpop.permute.xlu1 %2257  ;;  %v2184_v13 = vpop.permute.xlu0 %2183 }
 0x157   : > { %v6236_v28 = vsel %vm2359_vm11, %v2348_v26, %v2258_v41  ;;  %v2350_v43 = vsel %vm1051_vm10, %v2320_v20, %v2184_v13 }
 0x158   : > { %4602 = vmatprep.mubr.msk.bf16.mxu1 %vm2449_vm12, %v6236_v28 }
 0x15a   : > { %v2260_v32 = vpop.permute.xlu1 %2259  ;;  %v943_v55 = vpop.permute.xlu0 %942 }
 0x15b   : > { %v6247_v7 = vsel %vm2359_vm11, %v2350_v43, %v2260_v32  ;;  %v6250_v21 = vsel %vm983_vm9, %v976_v56, %v943_v55 }
 0x15c   : > { %4603 = vmatmul.mubr.msk.bf16.gmra.mrb[20].mxu1 %vm2449_vm12, %v6247_v7  ;;  %4463 = vmatmul.mubr.msk.bf16.gmra.mrb[20].mxu0 %vm1051_vm10, %v6250_v21 }
 0x15e   : > { %v1917_v15 = vpop.permute.xlu1 %1916  ;;  %v1915_v50 = vpop.permute.xlu0 %1914 }
 0x15f   : > { %v2292_v63 = vsel %vm950_vm8, %v5817_v53, %v1915_v50  ;;  %v2294_v27 = vsel %vm950_vm8, %v5834_v42, %v1917_v15 }
 0x162   : > { %v832_v30 = vpop.permute.xlu1 %831  ;;  %v2020_v5 = vpop.permute.xlu0 %2019 }
 0x163   : > { %v978_v8 = vsel %vm950_vm8, %v5822_v25, %v832_v30  ;;  %v2322_v51 = vsel %vm983_vm9, %v2292_v63, %v2020_v5 }
 0x166   : > { %v2186_v34 = vpop.permute.xlu1 %2185  ;;  %v2022_v19 = vpop.permute.xlu0 %2021 }
 0x167   : > { %v2352_v18 = vsel %vm1051_vm10, %v2322_v51, %v2186_v34  ;;  %v2324_v31 = vsel %vm983_vm9, %v2294_v27, %v2022_v19 }
 0x16a   : > { %v945_v61 = vpop.permute.xlu1 %944  ;;  %v834_v54 = vpop.permute.xlu0 %833 }
 0x16b   : > { %v6259_v38 = vsel %vm983_vm9, %v978_v8, %v945_v61  ;;  %v980_v11 = vsel %vm950_vm8, %v5902_v33, %v834_v54 }
 0x16c   : > { %4466 = vmatprep.mubr.msk.bf16.mxu0 %vm1051_vm10, %v6259_v38 }
 0x16e   : > { %v2262_v9 = vpop.permute.xlu1 %2261  ;;  %v2188_v25 = vpop.permute.xlu0 %2187 }
 0x16f   : > { %v6268_v62 = vsel %vm2359_vm11, %v2352_v18, %v2262_v9  ;;  %v2354_v56 = vsel %vm1051_vm10, %v2324_v31, %v2188_v25 }
 0x170   : > { %4606 = vmatprep.mubr.msk.bf16.mxu1 %vm2449_vm12, %v6268_v62 }
 0x172   : > { %v1669_v1 = vpop.permute.xlu1 %1668  ;;  %v947_v23 = vpop.permute.xlu0 %946 }
 0x173   : > { %v1688_v53 = vrot.slane %v1669_v1, 7  ;;  %v6277_v40 = vsel %vm983_vm9, %v980_v11, %v947_v23 }
 0x174   : > { %4467 = vmatmul.mubr.msk.bf16.gmra.mrb[24].mxu0 %vm1051_vm10, %v6277_v40 }
 0x175   : > { %v6281_v26 = vsel %vm575_vm0, 0, %v1688_v53  ;;  %v1740_v41 = vsel %vm575_vm0, %v1688_v53, 0 }
 0x176   : > { %v2393_v33 = vshrl.u32 %v6281_v26, 16  ;;  %v2395_v13 = vshll.u32 %v6281_v26, 16  ;;  %v2399_v46 = vshll.u32 %v1740_v41, 16  ;;  %v2408_v20 = vrot.slane %v1740_v41, 1  ;;  %v1671_v42 = vpop.permute.xlu1 %1670  ;;  %v2264_v55 = vpop.permute.xlu0 %2263 }
 0x177   : > { %v2415_v43 = vshrl.u32 %v1740_v41, 16  ;;  %v1689_v32 = vrot.slane %v1671_v42, 7  ;;  %v2407_v15 = vrot.slane %v6281_v26, 1  ;;  %v6291_v30 = vsel %vm2359_vm11, %v2354_v56, %v2264_v55 }
 0x178   : > { %v2418_v50 = vrot.slane %v2399_v46, 2  ;;  %v2412_v5 = vrot.slane %v2393_v33, 1  ;;  %v2413_v34 = vrot.slane %v2395_v13, 2  ;;  %4607 = vmatmul.mubr.msk.bf16.gmra.mrb[24].mxu1 %vm2449_vm12, %v6291_v30  ;;  %v2397_v1 = vrot.slane %v2395_v13, 1 }
 0x179   : > { %v2417_v19 = vrot.slane %v2415_v43, 1  ;;  %v6294_v8 = vsel %vm575_vm0, 0, %v1689_v32  ;;  %v1741_v61 = vsel %vm575_vm0, %v1689_v32, 0  ;;  %v2409_v54 = vsel %vm869_vm4, %v2407_v15, %v2408_v20 }
 0x17a   : > { %v2822_v63 = vshll.u32 %v6294_v8, 16  ;;  %2410 = vrot.lane.b32.xlu1 %v2409_v54, %s4962_s9  ;;  %v1921_v51 = vpop.permute.xlu1 %1920  ;;  %v1919_v18 = vpop.permute.xlu0 %1918  ;;  %v2414_v9 = vor.u32 %v2413_v34, %v2412_v5  ;;  %v2826_v25 = vshll.u32 %v1741_v61, 16  ;;  %v2424_v53 = vrot.slane %v1740_v41, 2 }
 0x17b   : > { %v2419_v11 = vor.u32 %v2418_v50, %v2417_v19  ;;  %v2820_v23 = vshrl.u32 %v6294_v8, 16  ;;  %v2398_v42 = vor.u32 %v2397_v1, %v2393_v33  ;;  %v2401_v56 = vrot.slane %v2399_v46, 1 }
 0x17c   : > { %v2824_v27 = vrot.slane %v2822_v63, 1  ;;  %v2423_v20 = vrot.slane %v6281_v26, 2  ;;  %v2842_v15 = vshrl.u32 %v1741_v61, 16  ;;  %v2828_v50 = vrot.slane %v2826_v25, 1 }
 0x17d   : > { %v2420_v31 = vsel %vm2027_vm5, %v2414_v9, %v2419_v11  ;;  %v2402_v5 = vsel %vm612_vm2, %v2398_v42, %v2401_v56  ;;  %v2851_v41 = vrot.slane %v1741_v61, 2  ;;  %v2850_v46 = vrot.slane %v6294_v8, 2 }
 0x17e   : > { %v836_v43 = vpop.permute.xlu1 %835  ;;  %2421 = vrot.lane.b32.xlu1 %v2420_v31, %s4963_s10  ;;  %v2024_v32 = vpop.permute.xlu0 %2023  ;;  %v2825_v55 = vor.u32 %v2824_v27, %v2820_v23  ;;  %2403 = vrot.lane.b32.xlu0 %v2402_v5, %s4961_s8  ;;  %v2425_v13 = vsel %vm1084_vm6, %v2423_v20, %v2424_v53  ;;  %v2835_v19 = vrot.slane %v1741_v61, 1  ;;  %v2845_v54 = vrot.slane %v2826_v25, 2 }
 0x17f   : > { %v2844_v11 = vrot.slane %v2842_v15, 1  ;;  %v2834_v1 = vrot.slane %v6294_v8, 1  ;;  %v2839_v27 = vrot.slane %v2820_v23, 1  ;;  %v2840_v31 = vrot.slane %v2822_v63, 2 }
 0x180   : > { %v2829_v34 = vsel %vm612_vm2, %v2825_v55, %v2828_v50  ;;  %v982_v42 = vsel %vm950_vm8, %v5990_v37, %v836_v43  ;;  %v2852_v53 = vsel %vm1084_vm6, %v2850_v46, %v2851_v41  ;;  %v2296_v61 = vsel %vm950_vm8, %v5976_v36, %v1919_v18 }
 0x181   : > { %v2836_v20 = vsel %vm869_vm4, %v2834_v1, %v2835_v19  ;;  %v2841_v63 = vor.u32 %v2840_v31, %v2839_v27  ;;  %v2846_v23 = vor.u32 %v2845_v54, %v2844_v11  ;;  %v2326_v37 = vsel %vm983_vm9, %v2296_v61, %v2024_v32  ;;  %v4945_v11 = vld [vmem:[%s7143_s4 + $0xc] sm:$0xff]  }
 0x182   : > { %v2190_v33 = vpop.permute.xlu1 %2189  ;;  %2426 = vrot.lane.b32.xlu1 %v2425_v13, %s4964_s11  ;;  %v2026_v9 = vpop.permute.xlu0 %2025  ;;  %2830 = vrot.lane.b32.xlu0 %v2829_v34, %s4961_s8  ;;  %v2298_v5 = vsel %vm950_vm8, %v5981_v49, %v1921_v51  ;;  %v6383_v1 = vld [vmem:[%s7143_s4 + $0x30] sm:$0xff]  }
 0x183   : > { %v2356_v43 = vsel %vm1051_vm10, %v2326_v37, %v2190_v33  ;;  %v2847_v50 = vsel %vm2027_vm5, %v2841_v63, %v2846_v23  ;;  %v2328_v32 = vsel %vm983_vm9, %v2298_v5, %v2026_v9  ;;  %v1429_v9 = vsel %vm1084_vm6, %v6201_v47, 0 }
 0x186   : > { %v1031_v56 = vpop.permute.xlu1 %1030  ;;  %2853 = vrot.lane.b32.xlu1 %v2852_v53, %s4964_s11  ;;  %v949_v25 = vpop.permute.xlu0 %948  ;;  %2837 = vrot.lane.b32.xlu0 %v2836_v20, %s4962_s9 }
 0x187   : > { %v6322_v55 = vsel %vm983_vm9, %v982_v42, %v949_v25  ;;  %v1040_v41 = vsel %vm950_vm8, %v6025_v57, %v1031_v56 }
 0x188   : > { %4470 = vmatprep.mubr.msk.bf16.mxu0 %vm1051_vm10, %v6322_v55 }
 0x18a   : > { %v2266_v36 = vpop.permute.xlu1 %2265  ;;  %v2192_v15 = vpop.permute.xlu0 %2191  ;;  %2848 = vrot.lane.b32.xlu0 %v2847_v50, %s4963_s10 }
 0x18b   : > { %v6330_v18 = vsel %vm2359_vm11, %v2356_v43, %v2266_v36  ;;  %v2358_v13 = vsel %vm1051_vm10, %v2328_v32, %v2192_v15 }
 0x18c   : > { %4610 = vmatprep.mubr.msk.bf16.mxu1 %vm2449_vm12, %v6330_v18 }
 0x18e   : > { %v2268_v34 = vpop.permute.xlu1 %2267  ;;  %v1038_v46 = vpop.permute.xlu0 %1037 }
 0x18f   : > { %v6343_v33 = vsel %vm2359_vm11, %v2358_v13, %v2268_v34  ;;  %v6346_v49 = vsel %vm983_vm9, %v1040_v41, %v1038_v46 }
 0x190   : > { %4611 = vmatmul.mubr.msk.bf16.gmra.mrb[28].mxu1 %vm2449_vm12, %v6343_v33  ;;  %4471 = vmatmul.mubr.msk.bf16.gmra.mrb[28].mxu0 %vm1051_vm10, %v6346_v49 }
 0x191   : > { %4618 = vmatprep.mubr.msk.bf16.mxu1 %vm2449_vm12, %v6142_v17 }
 0x192   : > { %v919_v57 = vpop.permute.xlu1 %918  ;;  %v806_v51 = vpop.permute.xlu0 %805 }
 0x193   : > { %v952_v19 = vsel %vm950_vm8, %v6080_v10, %v806_v51  ;;  %v4944_v10 = vld [vmem:[%s7143_s4 + $0x2c] ss:$0 sps:$4 sm:$0x33]  }
 0x194   : > { %v6357_v54 = vsel %vm983_vm9, %v952_v19, %v919_v57  ;;  %v3088_v47 = vsel %vm2482_vm7, %v4944_v10, 0 }
 0x195   : > { %4476 = vmatprep.mubr.msk.bf16.mxu0 %vm1051_vm10, %v6357_v54 }
 0x198   : > { %4619 = vmatmul.mubr.msk.bf16.vlgmr.msra.gmra.mrb[0].mxu1 %vm2449_vm12, %v6148_v35  ;;  %4477 = vmatmul.mubr.msk.bf16.vlgmr.msra.gmra.mrb[0].mxu0 %vm1051_vm10, %v5745_v14  ;;  %v4947_v14 = vld [vmem:[%s7143_s4 + $0x14] ss:$0 sps:$4 sm:$0x33]  }
 0x199   : > { %4622 = vmatprep.mubr.msk.bf16.mxu1 %vm2449_vm12, %v6163_v3  ;;  %4480 = vmatprep.mubr.msk.bf16.mxu0 %vm1051_vm10, %v5741_v39 }
 0x19a   : > { %4509 = vmatpush3.bf16.msra.mxu0 %v1429_v9  ;;  %4651 = vmatpush3.bf16.msra.mxu1 %v6206_v6  ;;  %v2484_v6 = vsel %vm2482_vm7, %v4947_v14, 0 }
 0x19b   : > { %4542 = vmatprep.subr.bf16.mxu0 %v4945_v11  ;;  %4920 = vmatprep.subr.msk.bf16.mxu1 %vm2482_vm7, %v4944_v10 }
 0x19e   : > { %4653 = vmatpush3.bf16.msra.mxu1 %v3088_v47 }
 0x19f   : > { %4686 = vmatprep.subr.bf16.mxu1 %v6383_v1 }
 0x1a0   : > { %4623 = vmatmul.mubr.msk.bf16.gmra.mrb[4].mxu1 %vm2449_vm12, %v6168_v12  ;;  %4481 = vmatmul.mubr.msk.bf16.gmra.mrb[4].mxu0 %vm1051_vm10, %v5778_v22 }
 0x1a1   : > { %4626 = vmatprep.mubr.msk.bf16.mxu1 %vm2449_vm12, %v6183_v45  ;;  %4484 = vmatprep.mubr.msk.bf16.mxu0 %vm1051_vm10, %v5796_v59 }
 0x1a8   : > { %4627 = vmatmul.mubr.msk.bf16.gmra.mrb[8].mxu1 %vm2449_vm12, %v6187_v58  ;;  %4485 = vmatmul.mubr.msk.bf16.gmra.mrb[8].mxu0 %vm1051_vm10, %v5802_v29 }
 0x1a9   : > { %4630 = vmatprep.mubr.msk.bf16.mxu1 %vm2449_vm12, %v6211_v0  ;;  %4488 = vmatprep.mubr.msk.bf16.mxu0 %vm1051_vm10, %v5863_v60 }
 0x1b0   : > { %4631 = vmatmul.mubr.msk.bf16.gmra.mrb[12].mxu1 %vm2449_vm12, %v6218_v4  ;;  %4489 = vmatmul.mubr.msk.bf16.gmra.mrb[12].mxu0 %vm1051_vm10, %v5869_v24 }
 0x1b1   : > { %4634 = vmatprep.mubr.msk.bf16.mxu1 %vm2449_vm12, %v6236_v28  ;;  %4492 = vmatprep.mubr.msk.bf16.mxu0 %vm1051_vm10, %v5909_v16 }
 0x1b8   : > { %4635 = vmatmul.mubr.msk.bf16.gmra.mrb[16].mxu1 %vm2449_vm12, %v6247_v7  ;;  %4493 = vmatmul.mubr.msk.bf16.gmra.mrb[16].mxu0 %vm1051_vm10, %v5917_v52 }
 0x1b9   : > { %4638 = vmatprep.mubr.msk.bf16.mxu1 %vm2449_vm12, %v6268_v62  ;;  %4496 = vmatprep.mubr.msk.bf16.mxu0 %vm1051_vm10, %v5949_v48 }
 0x1c0   : > { %4639 = vmatmul.mubr.msk.bf16.gmra.mrb[20].mxu1 %vm2449_vm12, %v6291_v30  ;;  %4497 = vmatmul.mubr.msk.bf16.gmra.mrb[20].mxu0 %vm1051_vm10, %v6227_v2 }
 0x1c1   : > { %4642 = vmatprep.mubr.msk.bf16.mxu1 %vm2449_vm12, %v6330_v18  ;;  %4500 = vmatprep.mubr.msk.bf16.mxu0 %vm1051_vm10, %v6250_v21 }
 0x1c8   : > { %4643 = vmatmul.mubr.msk.bf16.gmra.mrb[24].mxu1 %vm2449_vm12, %v6343_v33  ;;  %4501 = vmatmul.mubr.msk.bf16.gmra.mrb[24].mxu0 %vm1051_vm10, %v6259_v38 }
 0x1c9   : > { %4504 = vmatprep.mubr.msk.bf16.mxu0 %vm1051_vm10, %v6277_v40 }
 0x1d0   : > { %4505 = vmatmul.mubr.msk.bf16.gmra.mrb[28].mxu0 %vm1051_vm10, %v6322_v55 }
 0x1d1   : > { %4510 = vmatprep.mubr.msk.bf16.mxu0 %vm1051_vm10, %v5741_v39 }
 0x1d8   : > { %4511 = vmatmul.mubr.msk.bf16.vlgmr.msra.gmra.mrb[0].mxu0 %vm1051_vm10, %v5778_v22 }
 0x1d9   : > { %4514 = vmatprep.mubr.msk.bf16.mxu0 %vm1051_vm10, %v5796_v59  ;;  %4543 = vmatpush3.bf16.msra.mxu0 %v4945_v11 }
 0x1da   : > { %4917 = vmatprep.subr.msk.bf16.mxu0 %vm2482_vm7, %v4947_v14 }
 0x1dd   : > { %4545 = vmatpush3.bf16.msra.mxu0 %v2484_v6 }
 0x1e0   : > { %4515 = vmatmul.mubr.msk.bf16.gmra.mrb[4].mxu0 %vm1051_vm10, %v5802_v29 }
 0x1e1   : > { %4518 = vmatprep.mubr.msk.bf16.mxu0 %vm1051_vm10, %v5863_v60 }
 0x1e8   : > { %4519 = vmatmul.mubr.msk.bf16.gmra.mrb[8].mxu0 %vm1051_vm10, %v5869_v24 }
 0x1e9   : > { %4522 = vmatprep.mubr.msk.bf16.mxu0 %vm1051_vm10, %v5909_v16 }
 0x1ec   : > { %v2411_v39 = vpop.permute.xlu1 %2410 }
 0x1f0   : > { %v2422_v22 = vpop.permute.xlu1 %2421  ;;  %4523 = vmatmul.mubr.msk.bf16.gmra.mrb[12].mxu0 %vm1051_vm10, %v5917_v52  ;;  %v2404_v59 = vpop.permute.xlu0 %2403 }
 0x1f1   : > { %4526 = vmatprep.mubr.msk.bf16.mxu0 %vm1051_vm10, %v5949_v48  ;;  %v2429_v29 = vsel %vm950_vm8, %v6281_v26, %v2404_v59 }
 0x1f2   : > { %v2431_v60 = vsel %vm983_vm9, %v2429_v29, %v2411_v39 }
 0x1f3   : > { %v2433_v24 = vsel %vm1051_vm10, %v2431_v60, %v2422_v22 }
 0x1f4   : > { %v2427_v27 = vpop.permute.xlu1 %2426  ;;  %v2831_v16 = vpop.permute.xlu0 %2830 }
 0x1f5   : > { %v6462_v31 = vsel %vm2359_vm11, %v2433_v24, %v2427_v27  ;;  %v2856_v48 = vsel %vm950_vm8, %v6294_v8, %v2831_v16 }
 0x1f6   : > { %4646 = vmatprep.mubr.msk.bf16.mxu1 %vm2449_vm12, %v6462_v31 }
 0x1f8   : > { %4527 = vmatmul.mubr.msk.bf16.gmra.mrb[16].mxu0 %vm1051_vm10, %v6227_v2  ;;  %v2838_v52 = vpop.permute.xlu0 %2837  ;;  %v2854_v53 = vpop.permute.xlu1 %2853  ;;  %v4948_v2 = vld [vmem:[%s7143_s4 + $0x38] ss:$0 sps:$4 sm:$0x33]  }
 0x1f9   : > { %4530 = vmatprep.mubr.msk.bf16.mxu0 %vm1051_vm10, %v6250_v21  ;;  %v2858_v26 = vsel %vm983_vm9, %v2856_v48, %v2838_v52  ;;  %v3297_v21 = vsel %vm2482_vm7, %v4948_v2, 0 }
 0x1fc   : > { %v2849_v42 = vpop.permute.xlu0 %2848 }
 0x1fd   : > { %v2860_v56 = vsel %vm1051_vm10, %v2858_v26, %v2849_v42 }
 0x1fe   : > { %v2862_v61 = vsel %vm2359_vm11, %v2860_v56, %v2854_v53 }
 0x1ff   : > { %4647 = vmatmul.mubr.msk.bf16.gmra.mrb[28].mxu1 %vm2449_vm12, %v2862_v61 }
 0x200   : > { %4531 = vmatmul.mubr.msk.bf16.gmra.mrb[20].mxu0 %vm1051_vm10, %v6259_v38  ;;  %4654 = vmatprep.mubr.msk.bf16.mxu1 %vm2449_vm12, %v6148_v35 }
 0x201   : > { %4534 = vmatprep.mubr.msk.bf16.mxu0 %vm1051_vm10, %v6277_v40 }
 0x207   : > { %4655 = vmatmul.mubr.msk.bf16.vlgmr.msra.gmra.mrb[0].mxu1 %vm2449_vm12, %v6163_v3 }
 0x208   : > { %4535 = vmatmul.mubr.msk.bf16.gmra.mrb[24].mxu0 %vm1051_vm10, %v6322_v55  ;;  %4687 = vmatpush3.bf16.msra.mxu1 %v6383_v1 }
 0x209   : > { %4538 = vmatprep.mubr.msk.bf16.mxu0 %vm1051_vm10, %v6346_v49  ;;  %4658 = vmatprep.mubr.msk.bf16.mxu1 %vm2449_vm12, %v6168_v12 }
 0x20a   : > { %4921 = vmatprep.subr.msk.bf16.mxu1 %vm2482_vm7, %v4948_v2 }
 0x20c   : > { %4689 = vmatpush3.bf16.msra.mxu1 %v3297_v21 }
 0x20f   : > { %4659 = vmatmul.mubr.msk.bf16.gmra.mrb[4].mxu1 %vm2449_vm12, %v6183_v45 }
 0x210   : > { %4539 = vmatmul.mubr.msk.bf16.gmra.mrb[28].mxu0 %vm1051_vm10, %v6357_v54  ;;  %4662 = vmatprep.mubr.msk.bf16.mxu1 %vm2449_vm12, %v6187_v58 }
 0x211   : > { %4546 = vmatprep.mubr.msk.bf16.mxu0 %vm2449_vm12, %v5715_v44 }
 0x217   : > { %4663 = vmatmul.mubr.msk.bf16.gmra.mrb[8].mxu1 %vm2449_vm12, %v6211_v0 }
 0x218   : > { %4547 = vmatmul.mubr.msk.bf16.vlgmr.msra.gmra.mrb[32].mxu0 %vm2449_vm12, %v6142_v17  ;;  %4666 = vmatprep.mubr.msk.bf16.mxu1 %vm2449_vm12, %v6218_v4 }
 0x219   : > { %4550 = vmatprep.mubr.msk.bf16.mxu0 %vm2449_vm12, %v6148_v35 }
 0x21f   : > { %4667 = vmatmul.mubr.msk.bf16.gmra.mrb[12].mxu1 %vm2449_vm12, %v6236_v28 }
 0x220   : > { %4551 = vmatmul.mubr.msk.bf16.gmra.mrb[36].mxu0 %vm2449_vm12, %v6163_v3  ;;  %4670 = vmatprep.mubr.msk.bf16.mxu1 %vm2449_vm12, %v6247_v7 }
 0x221   : > { %4554 = vmatprep.mubr.msk.bf16.mxu0 %vm2449_vm12, %v6168_v12 }
 0x227   : > { %4671 = vmatmul.mubr.msk.bf16.gmra.mrb[16].mxu1 %vm2449_vm12, %v6268_v62 }
 0x228   : > { %4555 = vmatmul.mubr.msk.bf16.gmra.mrb[40].mxu0 %vm2449_vm12, %v6183_v45  ;;  %4674 = vmatprep.mubr.msk.bf16.mxu1 %vm2449_vm12, %v6291_v30 }
 0x229   : > { %4558 = vmatprep.mubr.msk.bf16.mxu0 %vm2449_vm12, %v6187_v58 }
 0x22f   : > { %4675 = vmatmul.mubr.msk.bf16.gmra.mrb[20].mxu1 %vm2449_vm12, %v6330_v18 }
 0x230   : > { %4559 = vmatmul.mubr.msk.bf16.gmra.mrb[44].mxu0 %vm2449_vm12, %v6211_v0  ;;  %4678 = vmatprep.mubr.msk.bf16.mxu1 %vm2449_vm12, %v6343_v33 }
 0x231   : > { %4562 = vmatprep.mubr.msk.bf16.mxu0 %vm2449_vm12, %v6218_v4 }
 0x237   : > { %4679 = vmatmul.mubr.msk.bf16.gmra.mrb[24].mxu1 %vm2449_vm12, %v6462_v31 }
 0x238   : > { %4563 = vmatmul.mubr.msk.bf16.gmra.mrb[48].mxu0 %vm2449_vm12, %v6236_v28  ;;  %4682 = vmatprep.mubr.msk.bf16.mxu1 %vm2449_vm12, %v2862_v61 }
 0x239   : > { %4566 = vmatprep.mubr.msk.bf16.mxu0 %vm2449_vm12, %v6247_v7 }
 0x23f   : > { %4683 = vmatmul.mubr.msk.bf16.gmra.mrb[28].mxu1 %vm2449_vm12, %v5715_v44 }
 0x240   : > { %4567 = vmatmul.mubr.msk.bf16.gmra.mrb[52].mxu0 %vm2449_vm12, %v6268_v62  ;;  %4690 = vmatprep.mubr.msk.bf16.mxu1 %vm2449_vm12, %v6163_v3 }
 0x241   : > { %4570 = vmatprep.mubr.msk.bf16.mxu0 %vm2449_vm12, %v6291_v30 }
 0x247   : > { %4691 = vmatmul.mubr.msk.bf16.vlgmr.msra.gmra.mrb[0].mxu1 %vm2449_vm12, %v6168_v12 }
 0x248   : > { %4571 = vmatmul.mubr.msk.bf16.gmra.mrb[56].mxu0 %vm2449_vm12, %v6330_v18  ;;  %4694 = vmatprep.mubr.msk.bf16.mxu1 %vm2449_vm12, %v6183_v45 }
 0x249   : > { %4574 = vmatprep.mubr.msk.bf16.mxu0 %vm2449_vm12, %v6343_v33 }
 0x24f   : > { %4695 = vmatmul.mubr.msk.bf16.gmra.mrb[4].mxu1 %vm2449_vm12, %v6187_v58 }
 0x250   : > { %4575 = vmatmul.mubr.msk.bf16.gmra.mrb[60].mxu0 %vm2449_vm12, %v6462_v31  ;;  %4698 = vmatprep.mubr.msk.bf16.mxu1 %vm2449_vm12, %v6211_v0 }
 0x257   : > { %4699 = vmatmul.mubr.msk.bf16.gmra.mrb[8].mxu1 %vm2449_vm12, %v6218_v4 }
 0x258   : > { %4702 = vmatprep.mubr.msk.bf16.mxu1 %vm2449_vm12, %v6236_v28 }
 0x25f   : > { %4703 = vmatmul.mubr.msk.bf16.gmra.mrb[12].mxu1 %vm2449_vm12, %v6247_v7 }
 0x260   : > { %4706 = vmatprep.mubr.msk.bf16.mxu1 %vm2449_vm12, %v6268_v62 }
 0x267   : > { %4707 = vmatmul.mubr.msk.bf16.gmra.mrb[16].mxu1 %vm2449_vm12, %v6291_v30 }
 0x268   : > { %4710 = vmatprep.mubr.msk.bf16.mxu1 %vm2449_vm12, %v6330_v18 }
 0x26f   : > { %4711 = vmatmul.mubr.msk.bf16.gmra.mrb[20].mxu1 %vm2449_vm12, %v6343_v33 }
 0x270   : > { %4714 = vmatprep.mubr.msk.bf16.mxu1 %vm2449_vm12, %v6462_v31 }
 0x277   : > { %4715 = vmatmul.mubr.msk.bf16.gmra.mrb[24].mxu1 %vm2449_vm12, %v2862_v61 }
 0x278   : > { %4718 = vmatprep.mubr.msk.bf16.mxu1 %vm2449_vm12, %v5715_v44 }
 0x27f   : > { %4719 = vmatmul.mubr.msk.bf16.gmra.mrb[28].mxu1 %vm2449_vm12, %v5715_v44 }
 0x2ab   : > { %v6586_v17 = vpop.f32.mrb[0].mxu0 }
 0x2ac   : > { %v6588_v35 = vpop.f32.mrb[1].mxu0  ;;  %v3829_v58 = vmul.f32 %v6586_v17, %v6586_v17  ;;  %v3687_v7 = vsel %vm983_vm9, %v6586_v17, 0.0 }
 0x2ad   : > { %v3827_v3 = vmul.f32 %v6588_v35, %v6588_v35  ;;  %v6592_v12 = vpop.f32.mrb[2].mxu0  ;;  %v3684_v0 = vsel %vm983_vm9, %v6588_v35, 0.0 }
 0x2ae   : > { %v6594_v45 = vpop.f32.mrb[3].mxu0  ;;  %v3830_v62 = vmul.f32 %v6592_v12, %v6592_v12  ;;  %v3862_v25 = vsel %vm983_vm9, %v3829_v58, 0.0  ;;  %v3689_v20 = vsel %vm983_vm9, %v6592_v12, 0.0 }
 0x2af   : > { %v3685_v44 = vsel %vm983_vm9, %v6594_v45, 0.0  ;;  %v3828_v4 = vmul.f32 %v6594_v45, %v6594_v45  ;;  %v3859_v38 = vsel %vm983_vm9, %v3827_v3, 0.0 }
 0x2b0   : > { %v3686_v28 = vadd.f32 %v3685_v44, %v3684_v0  ;;  %v3864_v43 = vsel %vm983_vm9, %v3830_v62, 0.0 }
 0x2b1   : > { %v3860_v40 = vsel %vm983_vm9, %v3828_v4, 0.0 }
 0x2b2   : > { %v3688_v30 = vadd.f32 %v3687_v7, %v3686_v28  ;;  %v3861_v8 = vadd.f32 %v3860_v40, %v3859_v38 }
 0x2b3   : > { %v6613_v55 = vpop.f32.mrb[4].mxu0 }
 0x2b4   : > { %v3863_v63 = vadd.f32 %v3862_v25, %v3861_v8  ;;  %v6615_v23 = vpop.f32.mrb[5].mxu0  ;;  %v3690_v37 = vadd.f32 %v3689_v20, %v3688_v30  ;;  %v3833_v41 = vmul.f32 %v6613_v55, %v6613_v55  ;;  %v3695_v57 = vsel %vm983_vm9, %v6613_v55, 0.0 }
 0x2b5   : > { %v3691_v36 = vsel %vm983_vm9, %v6615_v23, 0.0  ;;  %v3831_v18 = vmul.f32 %v6615_v23, %v6615_v23  ;;  %v6622_v15 = vpop.f32.mrb[6].mxu0 }
 0x2b6   : > { %v3692_v5 = vadd.f32 %v3691_v36, %v3690_v37  ;;  %v3865_v50 = vadd.f32 %v3864_v43, %v3863_v63  ;;  %v6624_v32 = vpop.f32.mrb[7].mxu0  ;;  %v3834_v51 = vmul.f32 %v6622_v15, %v6622_v15  ;;  %v3870_v11 = vsel %vm983_vm9, %v3833_v41, 0.0 }
 0x2b7   : > { %v3866_v13 = vsel %vm983_vm9, %v3831_v18, 0.0  ;;  %v3693_v34 = vsel %vm983_vm9, %v6624_v32, 0.0  ;;  %v3832_v33 = vmul.f32 %v6624_v32, %v6624_v32  ;;  %v3697_v10 = vsel %vm983_vm9, %v6622_v15, 0.0 }
 0x2b8   : > { %v3867_v46 = vadd.f32 %v3866_v13, %v3865_v50  ;;  %v3694_v49 = vadd.f32 %v3693_v34, %v3692_v5  ;;  %v3872_v39 = vsel %vm983_vm9, %v3834_v51, 0.0 }
 0x2b9   : > { %v3868_v19 = vsel %vm983_vm9, %v3832_v33, 0.0 }
 0x2ba   : > { %v3696_v54 = vadd.f32 %v3695_v57, %v3694_v49  ;;  %v3869_v9 = vadd.f32 %v3868_v19, %v3867_v46 }
 0x2bb   : > { %v6641_v47 = vpop.f32.mrb[8].mxu0 }
 0x2bc   : > { %v3871_v1 = vadd.f32 %v3870_v11, %v3869_v9  ;;  %v6643_v14 = vpop.f32.mrb[9].mxu0  ;;  %v3698_v6 = vadd.f32 %v3697_v10, %v3696_v54  ;;  %v3837_v31 = vmul.f32 %v6641_v47, %v6641_v47  ;;  %v3703_v53 = vsel %vm983_vm9, %v6641_v47, 0.0 }
 0x2bd   : > { %v3699_v22 = vsel %vm983_vm9, %v6643_v14, 0.0  ;;  %v3835_v59 = vmul.f32 %v6643_v14, %v6643_v14  ;;  %v6650_v29 = vpop.f32.mrb[10].mxu0 }
 0x2be   : > { %v3700_v60 = vadd.f32 %v3699_v22, %v3698_v6  ;;  %v3873_v27 = vadd.f32 %v3872_v39, %v3871_v1  ;;  %v6652_v24 = vpop.f32.mrb[11].mxu0  ;;  %v3838_v56 = vmul.f32 %v6650_v29, %v6650_v29  ;;  %v3878_v3 = vsel %vm983_vm9, %v3837_v31, 0.0 }
 0x2bf   : > { %v3874_v16 = vsel %vm983_vm9, %v3835_v59, 0.0  ;;  %v3701_v52 = vsel %vm983_vm9, %v6652_v24, 0.0  ;;  %v3836_v48 = vmul.f32 %v6652_v24, %v6652_v24  ;;  %v3705_v58 = vsel %vm983_vm9, %v6650_v29, 0.0 }
 0x2c0   : > { %v3875_v26 = vadd.f32 %v3874_v16, %v3873_v27  ;;  %v3702_v42 = vadd.f32 %v3701_v52, %v3700_v60  ;;  %v3880_v7 = vsel %vm983_vm9, %v3838_v56, 0.0 }
 0x2c1   : > { %v3876_v61 = vsel %vm983_vm9, %v3836_v48, 0.0 }
 0x2c2   : > { %v3704_v2 = vadd.f32 %v3703_v53, %v3702_v42  ;;  %v3877_v21 = vadd.f32 %v3876_v61, %v3875_v26 }
 0x2c3   : > { %v6669_v0 = vpop.f32.mrb[12].mxu0 }
 0x2c4   : > { %v3879_v44 = vadd.f32 %v3878_v3, %v3877_v21  ;;  %v6671_v4 = vpop.f32.mrb[13].mxu0  ;;  %v3706_v28 = vadd.f32 %v3705_v58, %v3704_v2  ;;  %v3841_v20 = vmul.f32 %v6669_v0, %v6669_v0  ;;  %v3711_v5 = vsel %vm983_vm9, %v6669_v0, 0.0 }
 0x2c5   : > { %v3707_v38 = vsel %vm983_vm9, %v6671_v4, 0.0  ;;  %v3839_v62 = vmul.f32 %v6671_v4, %v6671_v4  ;;  %v6678_v40 = vpop.f32.mrb[14].mxu0 }
 0x2c6   : > { %v3708_v30 = vadd.f32 %v3707_v38, %v3706_v28  ;;  %v3881_v8 = vadd.f32 %v3880_v7, %v3879_v44  ;;  %v6680_v25 = vpop.f32.mrb[15].mxu0  ;;  %v3842_v50 = vmul.f32 %v6678_v40, %v6678_v40  ;;  %v3886_v33 = vsel %vm983_vm9, %v3841_v20, 0.0 }
 0x2c7   : > { %v3882_v63 = vsel %vm983_vm9, %v3839_v62, 0.0  ;;  %v3709_v37 = vsel %vm983_vm9, %v6680_v25, 0.0  ;;  %v3840_v43 = vmul.f32 %v6680_v25, %v6680_v25  ;;  %v3713_v46 = vsel %vm983_vm9, %v6678_v40, 0.0 }
 0x2c8   : > { %v3883_v36 = vadd.f32 %v3882_v63, %v3881_v8  ;;  %v3710_v18 = vadd.f32 %v3709_v37, %v3708_v30  ;;  %v3888_v54 = vsel %vm983_vm9, %v3842_v50, 0.0 }
 0x2c9   : > { %v3884_v41 = vsel %vm983_vm9, %v3840_v43, 0.0 }
 0x2ca   : > { %v3712_v13 = vadd.f32 %v3711_v5, %v3710_v18  ;;  %v3885_v34 = vadd.f32 %v3884_v41, %v3883_v36 }
 0x2cb   : > { %v6697_v49 = vpop.f32.mrb[16].mxu0 }
 0x2cc   : > { %7212 = vst [vmem:[#allocation3_spill] sm:$0xff] %v6697_v49  ;;  %v3887_v57 = vadd.f32 %v3886_v33, %v3885_v34  ;;  %v6699_v51 = vpop.f32.mrb[17].mxu0  ;;  %v3714_v19 = vadd.f32 %v3713_v46, %v3712_v13  ;;  %v3845_v22 = vmul.f32 %v6697_v49, %v6697_v49  ;;  %v3719_v52 = vsel %vm983_vm9, %v6697_v49, 0.0 }
 0x2cd   : > { %7213 = vst [vmem:[#allocation4_spill] sm:$0xff] %v6699_v51  ;;  %v3715_v9 = vsel %vm983_vm9, %v6699_v51, 0.0  ;;  %v3843_v11 = vmul.f32 %v6699_v51, %v6699_v51  ;;  %v6706_v10 = vpop.f32.mrb[18].mxu0 }
 0x2ce   : > { %7214 = vst [vmem:[#allocation6_spill] sm:$0xff] %v6706_v10  ;;  %v3716_v1 = vadd.f32 %v3715_v9, %v3714_v19  ;;  %v3889_v6 = vadd.f32 %v3888_v54, %v3887_v57  ;;  %v6708_v39 = vpop.f32.mrb[19].mxu0  ;;  %v3846_v48 = vmul.f32 %v6706_v10, %v6706_v10  ;;  %v3894_v56 = vsel %vm983_vm9, %v3845_v22, 0.0 }
 0x2cf   : > { %7215 = vst [vmem:[#allocation5_spill] sm:$0xff] %v6708_v39  ;;  %v3890_v59 = vsel %vm983_vm9, %v3843_v11, 0.0  ;;  %v3717_v60 = vsel %vm983_vm9, %v6708_v39, 0.0  ;;  %v3844_v27 = vmul.f32 %v6708_v39, %v6708_v39  ;;  %v3721_v61 = vsel %vm983_vm9, %v6706_v10, 0.0 }
 0x2d0   : > { %v3891_v31 = vadd.f32 %v3890_v59, %v3889_v6  ;;  %v3718_v16 = vadd.f32 %v3717_v60, %v3716_v1  ;;  %v3896_v44 = vsel %vm983_vm9, %v3846_v48, 0.0 }
 0x2d1   : > { %v3892_v26 = vsel %vm983_vm9, %v3844_v27, 0.0 }
 0x2d2   : > { %v3720_v42 = vadd.f32 %v3719_v52, %v3718_v16  ;;  %v3893_v53 = vadd.f32 %v3892_v26, %v3891_v31 }
 0x2d3   : > { %v6725_v2 = vpop.f32.mrb[20].mxu0 }
 0x2d4   : > { %7216 = vst [vmem:[#allocation11_spill] sm:$0xff] %v6725_v2  ;;  %v3895_v21 = vadd.f32 %v3894_v56, %v3893_v53  ;;  %v6727_v3 = vpop.f32.mrb[21].mxu0  ;;  %v3722_v58 = vadd.f32 %v3721_v61, %v3720_v42  ;;  %v3849_v20 = vmul.f32 %v6725_v2, %v6725_v2  ;;  %v3727_v5 = vsel %vm983_vm9, %v6725_v2, 0.0 }
 0x2d5   : > { %7217 = vst [vmem:[#allocation12_spill] sm:$0xff] %v6727_v3  ;;  %v3723_v28 = vsel %vm983_vm9, %v6727_v3, 0.0  ;;  %v3847_v7 = vmul.f32 %v6727_v3, %v6727_v3  ;;  %v6734_v38 = vpop.f32.mrb[22].mxu0 }
 0x2d6   : > { %7218 = vst [vmem:[#allocation2_spill] sm:$0xff] %v6734_v38  ;;  %v3724_v62 = vadd.f32 %v3723_v28, %v3722_v58  ;;  %v3897_v30 = vadd.f32 %v3896_v44, %v3895_v21  ;;  %v6736_v8 = vpop.f32.mrb[23].mxu0  ;;  %v3850_v50 = vmul.f32 %v6734_v38, %v6734_v38  ;;  %v3902_v33 = vsel %vm983_vm9, %v3849_v20, 0.0 }
 0x2d7   : > { %7219 = vst [vmem:[#allocation8_spill] sm:$0xff] %v6736_v8  ;;  %v3898_v63 = vsel %vm983_vm9, %v3847_v7, 0.0  ;;  %v3725_v37 = vsel %vm983_vm9, %v6736_v8, 0.0  ;;  %v3848_v43 = vmul.f32 %v6736_v8, %v6736_v8  ;;  %v3729_v46 = vsel %vm983_vm9, %v6734_v38, 0.0 }
 0x2d8   : > { %v3899_v36 = vadd.f32 %v3898_v63, %v3897_v30  ;;  %v3726_v18 = vadd.f32 %v3725_v37, %v3724_v62  ;;  %v3904_v11 = vsel %vm983_vm9, %v3850_v50, 0.0 }
 0x2d9   : > { %v3900_v41 = vsel %vm983_vm9, %v3848_v43, 0.0 }
 0x2da   : > { %v3728_v13 = vadd.f32 %v3727_v5, %v3726_v18  ;;  %v3901_v34 = vadd.f32 %v3900_v41, %v3899_v36 }
 0x2db   : > { %v6753_v57 = vpop.f32.mrb[24].mxu0 }
 0x2dc   : > { %7220 = vst [vmem:[#allocation7_spill] sm:$0xff] %v6753_v57  ;;  %v3903_v19 = vadd.f32 %v3902_v33, %v3901_v34  ;;  %v6755_v54 = vpop.f32.mrb[25].mxu0  ;;  %v3730_v9 = vadd.f32 %v3729_v46, %v3728_v13  ;;  %v3853_v31 = vmul.f32 %v6753_v57, %v6753_v57  ;;  %v3735_v53 = vsel %vm983_vm9, %v6753_v57, 0.0 }
 0x2dd   : > { %7221 = vst [vmem:[#allocation10_spill] sm:$0xff] %v6755_v54  ;;  %v3731_v1 = vsel %vm983_vm9, %v6755_v54, 0.0  ;;  %v3851_v6 = vmul.f32 %v6755_v54, %v6755_v54  ;;  %v6762_v22 = vpop.f32.mrb[26].mxu0 }
 0x2de   : > { %7222 = vst [vmem:[#allocation9_spill] sm:$0xff] %v6762_v22  ;;  %v3732_v59 = vadd.f32 %v3731_v1, %v3730_v9  ;;  %v3905_v60 = vadd.f32 %v3904_v11, %v3903_v19  ;;  %v6764_v27 = vpop.f32.mrb[27].mxu0  ;;  %v3854_v56 = vmul.f32 %v6762_v22, %v6762_v22  ;;  %v3910_v44 = vsel %vm983_vm9, %v3853_v31, 0.0 }
 0x2df   : > { %7223 = vst [vmem:[#allocation13_spill] sm:$0xff] %v6764_v27  ;;  %v3906_v16 = vsel %vm983_vm9, %v3851_v6, 0.0  ;;  %v3733_v52 = vsel %vm983_vm9, %v6764_v27, 0.0  ;;  %v3852_v48 = vmul.f32 %v6764_v27, %v6764_v27  ;;  %v3737_v28 = vsel %vm983_vm9, %v6762_v22, 0.0 }
 0x2e0   : > { %v3907_v26 = vadd.f32 %v3906_v16, %v3905_v60  ;;  %v3734_v42 = vadd.f32 %v3733_v52, %v3732_v59  ;;  %v3912_v63 = vsel %vm983_vm9, %v3854_v56, 0.0 }
 0x2e1   : > { %v3908_v61 = vsel %vm983_vm9, %v3852_v48, 0.0 }
 0x2e2   : > { %v3736_v21 = vadd.f32 %v3735_v53, %v3734_v42  ;;  %v3909_v58 = vadd.f32 %v3908_v61, %v3907_v26 }
 0x2e3   : > { %v6781_v7 = vpop.f32.mrb[28].mxu0 }
 0x2e4   : > { %7224 = vst [vmem:[#allocation14_spill] sm:$0xff] %v6781_v7  ;;  %v3911_v62 = vadd.f32 %v3910_v44, %v3909_v58  ;;  %v6783_v30 = vpop.f32.mrb[29].mxu0  ;;  %v3738_v20 = vadd.f32 %v3737_v28, %v3736_v21  ;;  %v3857_v41 = vmul.f32 %v6781_v7, %v6781_v7  ;;  %v3743_v9 = vsel %vm983_vm9, %v6781_v7, 0.0 }
 0x2e5   : > { %7225 = vst [vmem:[#allocation15_spill] sm:$0xff] %v6783_v30  ;;  %v3739_v37 = vsel %vm983_vm9, %v6783_v30, 0.0  ;;  %v3855_v43 = vmul.f32 %v6783_v30, %v6783_v30  ;;  %v6790_v36 = vpop.f32.mrb[30].mxu0 }
 0x2e6   : > { %7226 = vst [vmem:[#allocation16_spill] sm:$0xff] %v6790_v36  ;;  %v3740_v18 = vadd.f32 %v3739_v37, %v3738_v20  ;;  %v3913_v5 = vadd.f32 %v3912_v63, %v3911_v62  ;;  %v6792_v50 = vpop.f32.mrb[31].mxu0  ;;  %v3858_v11 = vmul.f32 %v6790_v36, %v6790_v36  ;;  %v3918_v60 = vsel %vm983_vm9, %v3857_v41, 0.0 }
 0x2e7   : > { %7227 = vst [vmem:[#allocation17_spill] sm:$0xff] %v6792_v50  ;;  %v3914_v13 = vsel %vm983_vm9, %v3855_v43, 0.0  ;;  %v3741_v34 = vsel %vm983_vm9, %v6792_v50, 0.0  ;;  %v3856_v33 = vmul.f32 %v6792_v50, %v6792_v50  ;;  %v3745_v31 = vsel %vm983_vm9, %v6790_v36, 0.0 }
 0x2e8   : > { %v3915_v46 = vadd.f32 %v3914_v13, %v3913_v5  ;;  %v3742_v19 = vadd.f32 %v3741_v34, %v3740_v18  ;;  %v3920_v42 = vsel %vm983_vm9, %v3858_v11, 0.0 }
 0x2e9   : > { %v3916_v1 = vsel %vm983_vm9, %v3856_v33, 0.0 }
 0x2ea   : > { %v3744_v6 = vadd.f32 %v3743_v9, %v3742_v19  ;;  %v3917_v59 = vadd.f32 %v3916_v1, %v3915_v46 }
 0x2eb   : > { %v4548_v16 = vpop.f32.mrb[32].mxu0 }
 0x2ec   : > { %v6809_v52 = vadd.f32 %v3745_v31, %v3744_v6  ;;  %v3919_v48 = vadd.f32 %v3918_v60, %v3917_v59  ;;  %v2520_v26 = vpop.f32.mrb[33].mxu0 }
 0x2ed   : > { %v4549_v53 = vpop.f32.mrb[34].mxu0 }
 0x2ee   : > { %7228 = vst [vmem:[#allocation18_spill] sm:$0xff] %v6809_v52  ;;  %v6812_v56 = vadd.f32 %v3920_v42, %v3919_v48  ;;  %v2523_v61 = vpop.f32.mrb[35].mxu0 }
 0x2f0   : > { %7229 = vst [vmem:[#allocation19_spill] sm:$0xff] %v6812_v56 }
 0x2f3   : > { %v4552_v21 = vpop.f32.mrb[36].mxu0 }
 0x2f4   : > { %v2536_v58 = vpop.f32.mrb[37].mxu0 }
 0x2f5   : > { %v6814_v44 = vpop.f32.mrb[38].mxu0 }
 0x2f6   : > { %v6816_v28 = vpop.f32.mrb[39].mxu0 }
 0x2fb   : > { %v6818_v62 = vpop.f32.mrb[40].mxu0 }
 0x2fc   : > { %v6820_v20 = vpop.f32.mrb[41].mxu0 }
 0x2fd   : > { %v6822_v63 = vpop.f32.mrb[42].mxu0 }
 0x2fe   : > { %v6824_v37 = vpop.f32.mrb[43].mxu0 }
 0x303   : > { %v6826_v43 = vpop.f32.mrb[44].mxu0 }
 0x304   : > { %v6828_v18 = vpop.f32.mrb[45].mxu0 }
 0x305   : > { %v6830_v5 = vpop.f32.mrb[46].mxu0 }
 0x306   : > { %v6832_v41 = vpop.f32.mrb[47].mxu0 }
 0x30b   : > { %v6834_v13 = vpop.f32.mrb[48].mxu0 }
 0x30c   : > { %v6836_v34 = vpop.f32.mrb[49].mxu0 }
 0x30d   : > { %v6838_v33 = vpop.f32.mrb[50].mxu0 }
 0x30e   : > { %v6840_v46 = vpop.f32.mrb[51].mxu0 }
 0x313   : > { %v6842_v19 = vpop.f32.mrb[52].mxu0 }
 0x314   : > { %v6844_v9 = vpop.f32.mrb[53].mxu0 }
 0x315   : > { %v6846_v11 = vpop.f32.mrb[54].mxu0 }
 0x316   : > { %v6848_v1 = vpop.f32.mrb[55].mxu0 }
 0x31a   : > { %v4692_v59 = vpop.f32.mrb[0].mxu1 }
 0x31b   : > { %v6850_v6 = vpop.f32.mrb[56].mxu0  ;;  %v4722_v31 = vadd.f32 %v4692_v59, %v4548_v16  ;;  %v3333_v48 = vpop.f32.mrb[1].mxu1 }
 0x31c   : > { %v6852_v60 = vpop.f32.mrb[57].mxu0  ;;  %v4723_v36 = vadd.f32 %v3333_v48, %v2520_v26  ;;  %v4693_v7 = vpop.f32.mrb[2].mxu1 }
 0x31d   : > { %v6854_v42 = vpop.f32.mrb[58].mxu0  ;;  %v4724_v56 = vadd.f32 %v4693_v7, %v4549_v53  ;;  %3528 = vrot.lane.b32.xlu0 %v4722_v31, %s4962_s9  ;;  %v3336_v50 = vpop.f32.mrb[3].mxu1  ;;  %v3930_v54 = vmul.f32 %v4722_v31, %v4722_v31  ;;  %v3756_v7 = vsel %vm983_vm9, %v4722_v31, 0.0 }
 0x31e   : > { %v6856_v52 = vpop.f32.mrb[59].mxu0  ;;  %v3928_v30 = vmul.f32 %v4723_v36, %v4723_v36  ;;  %v4725_v27 = vadd.f32 %v3336_v50, %v2523_v61  ;;  %v3753_v22 = vsel %vm983_vm9, %v4723_v36, 0.0 }
 0x31f   : > { %3530 = vrot.lane.b32.xlu1 %v4724_v56, %s4962_s9  ;;  %v3931_v57 = vmul.f32 %v4724_v56, %v4724_v56 }
 0x320   : > { %v3754_v16 = vsel %vm983_vm9, %v4725_v27, 0.0  ;;  %v3929_v59 = vmul.f32 %v4725_v27, %v4725_v27  ;;  %v3960_v53 = vsel %vm983_vm9, %v3928_v30, 0.0 }
 0x321   : > { %v3755_v8 = vadd.f32 %v3754_v16, %v3753_v22  ;;  %3524 = vrot.lane.b32.xlu0 %v4723_v36, %s4962_s9  ;;  %v3963_v36 = vsel %vm983_vm9, %v3930_v54, 0.0  ;;  %v3758_v16 = vsel %vm983_vm9, %v4724_v56, 0.0 }
 0x322   : > { %v3961_v50 = vsel %vm983_vm9, %v3929_v59, 0.0  ;;  %v4696_v61 = vpop.f32.mrb[4].mxu1  ;;  %v3965_v59 = vsel %vm983_vm9, %v3931_v57, 0.0 }
 0x323   : > { %v6863_v26 = vpop.f32.mrb[60].mxu0  ;;  %v3757_v3 = vadd.f32 %v3756_v7, %v3755_v8  ;;  %v3962_v38 = vadd.f32 %v3961_v50, %v3960_v53  ;;  %v4726_v2 = vadd.f32 %v4696_v61, %v4552_v21  ;;  %3526 = vrot.lane.b32.xlu1 %v4725_v27, %s4962_s9  ;;  %v3349_v39 = vpop.f32.mrb[5].mxu1 }
 0x324   : > { %v6868_v48 = vpop.f32.mrb[61].mxu0  ;;  %v4727_v31 = vadd.f32 %v3349_v39, %v2536_v58  ;;  %v4697_v51 = vpop.f32.mrb[6].mxu1 }
 0x325   : > { %v6871_v22 = vpop.f32.mrb[62].mxu0  ;;  %v3964_v10 = vadd.f32 %v3963_v36, %v3962_v38  ;;  %v3759_v49 = vadd.f32 %v3758_v16, %v3757_v3  ;;  %3536 = vrot.lane.b32.xlu0 %v4726_v2, %s4962_s9  ;;  %v3352_v8 = vpop.f32.mrb[7].mxu1  ;;  %v4728_v7 = vadd.f32 %v4697_v51, %v6814_v44  ;;  %v3934_v38 = vmul.f32 %v4726_v2, %v4726_v2 }
 0x326   : > { %v6875_v30 = vpop.f32.mrb[63].mxu0  ;;  %v3760_v27 = vsel %vm983_vm9, %v4727_v31, 0.0  ;;  %v3932_v21 = vmul.f32 %v4727_v31, %v4727_v31  ;;  %v4729_v54 = vadd.f32 %v3352_v8, %v6816_v28  ;;  %v3764_v61 = vsel %vm983_vm9, %v4726_v2, 0.0 }
 0x327   : > { %v3761_v53 = vadd.f32 %v3760_v27, %v3759_v49  ;;  %v3966_v56 = vadd.f32 %v3965_v59, %v3964_v10  ;;  %3538 = vrot.lane.b32.xlu1 %v4728_v7, %s4962_s9  ;;  %v3935_v51 = vmul.f32 %v4728_v7, %v4728_v7  ;;  %v3766_v16 = vsel %vm983_vm9, %v4728_v7, 0.0 }
 0x328   : > { %v3967_v39 = vsel %vm983_vm9, %v3932_v21, 0.0  ;;  %v3762_v58 = vsel %vm983_vm9, %v4729_v54, 0.0  ;;  %v3933_v50 = vmul.f32 %v4729_v54, %v4729_v54 }
 0x329   : > { %v3968_v3 = vadd.f32 %v3967_v39, %v3966_v56  ;;  %v3763_v57 = vadd.f32 %v3762_v58, %v3761_v53  ;;  %3532 = vrot.lane.b32.xlu0 %v4727_v31, %s4962_s9  ;;  %v3971_v31 = vsel %vm983_vm9, %v3934_v38, 0.0  ;;  %v3973_v58 = vsel %vm983_vm9, %v3935_v51, 0.0 }
 0x32a   : > { %v4700_v36 = vpop.f32.mrb[8].mxu1  ;;  %v3969_v49 = vsel %vm983_vm9, %v3933_v50, 0.0 }
 0x32b   : > { %v3765_v44 = vadd.f32 %v3764_v61, %v3763_v57  ;;  %v4730_v10 = vadd.f32 %v4700_v36, %v6818_v62  ;;  %v3365_v28 = vpop.f32.mrb[9].mxu1  ;;  %v3970_v59 = vadd.f32 %v3969_v49, %v3968_v3  ;;  %3534 = vrot.lane.b32.xlu1 %v4729_v54, %s4962_s9 }
 0x32c   : > { %v4731_v8 = vadd.f32 %v3365_v28, %v6820_v20  ;;  %v4701_v27 = vpop.f32.mrb[10].mxu1 }
 0x32d   : > { %v3767_v21 = vadd.f32 %v3766_v16, %v3765_v44  ;;  %v4732_v2 = vadd.f32 %v4701_v27, %v6822_v63  ;;  %3544 = vrot.lane.b32.xlu0 %v4730_v10, %s4962_s9  ;;  %v3368_v53 = vpop.f32.mrb[11].mxu1  ;;  %v3972_v56 = vadd.f32 %v3971_v31, %v3970_v59  ;;  %v3938_v63 = vmul.f32 %v4730_v10, %v4730_v10 }
 0x32e   : > { %v3768_v62 = vsel %vm983_vm9, %v4731_v8, 0.0  ;;  %v3936_v39 = vmul.f32 %v4731_v8, %v4731_v8  ;;  %v4733_v7 = vadd.f32 %v3368_v53, %v6824_v37  ;;  %v3772_v61 = vsel %vm983_vm9, %v4730_v10, 0.0 }
 0x32f   : > { %v3769_v54 = vadd.f32 %v3768_v62, %v3767_v21  ;;  %v3974_v3 = vadd.f32 %v3973_v58, %v3972_v56  ;;  %3546 = vrot.lane.b32.xlu1 %v4732_v2, %s4962_s9  ;;  %v3939_v51 = vmul.f32 %v4732_v2, %v4732_v2  ;;  %v3774_v59 = vsel %vm983_vm9, %v4732_v2, 0.0 }
 0x330   : > { %v3975_v20 = vsel %vm983_vm9, %v3936_v39, 0.0  ;;  %v3770_v38 = vsel %vm983_vm9, %v4733_v7, 0.0  ;;  %v3937_v57 = vmul.f32 %v4733_v7, %v4733_v7 }
 0x331   : > { %v3771_v50 = vadd.f32 %v3770_v38, %v3769_v54  ;;  %3540 = vrot.lane.b32.xlu0 %v4731_v8, %s4962_s9  ;;  %v3976_v36 = vadd.f32 %v3975_v20, %v3974_v3  ;;  %v3979_v8 = vsel %vm983_vm9, %v3938_v63, 0.0  ;;  %v3981_v58 = vsel %vm983_vm9, %v3939_v51, 0.0 }
 0x332   : > { %v3977_v37 = vsel %vm983_vm9, %v3937_v57, 0.0  ;;  %v4704_v44 = vpop.f32.mrb[12].mxu1 }
 0x333   : > { %v3773_v49 = vadd.f32 %v3772_v61, %v3771_v50  ;;  %v4734_v28 = vadd.f32 %v4704_v44, %v6826_v43  ;;  %v3381_v16 = vpop.f32.mrb[13].mxu1  ;;  %v3978_v27 = vadd.f32 %v3977_v37, %v3976_v36  ;;  %3542 = vrot.lane.b32.xlu1 %v4733_v7, %s4962_s9 }
 0x334   : > { %v4735_v31 = vadd.f32 %v3381_v16, %v6828_v18  ;;  %v4705_v21 = vpop.f32.mrb[14].mxu1 }
 0x335   : > { %v3775_v10 = vadd.f32 %v3774_v59, %v3773_v49  ;;  %v4736_v53 = vadd.f32 %v4705_v21, %v6830_v5  ;;  %3552 = vrot.lane.b32.xlu0 %v4734_v28, %s4962_s9  ;;  %v3384_v56 = vpop.f32.mrb[15].mxu1  ;;  %v3980_v62 = vadd.f32 %v3979_v8, %v3978_v27  ;;  %v3942_v5 = vmul.f32 %v4734_v28, %v4734_v28 }
 0x336   : > { %v3776_v43 = vsel %vm983_vm9, %v4735_v31, 0.0  ;;  %v3940_v39 = vmul.f32 %v4735_v31, %v4735_v31  ;;  %v4737_v2 = vadd.f32 %v3384_v56, %v6832_v41  ;;  %v3780_v57 = vsel %vm983_vm9, %v4734_v28, 0.0 }
 0x337   : > { %v3777_v7 = vadd.f32 %v3776_v43, %v3775_v10  ;;  %v3982_v54 = vadd.f32 %v3981_v58, %v3980_v62  ;;  %3554 = vrot.lane.b32.xlu1 %v4736_v53, %s4962_s9  ;;  %v3943_v61 = vmul.f32 %v4736_v53, %v4736_v53  ;;  %v3782_v51 = vsel %vm983_vm9, %v4736_v53, 0.0 }
 0x338   : > { %v3983_v18 = vsel %vm983_vm9, %v3940_v39, 0.0  ;;  %v3778_v3 = vsel %vm983_vm9, %v4737_v2, 0.0  ;;  %v3941_v20 = vmul.f32 %v4737_v2, %v4737_v2  ;;  %v3987_v27 = vsel %vm983_vm9, %v3942_v5, 0.0 }
 0x339   : > { %v3779_v38 = vadd.f32 %v3778_v3, %v3777_v7  ;;  %3548 = vrot.lane.b32.xlu0 %v4735_v31, %s4962_s9  ;;  %v3984_v63 = vadd.f32 %v3983_v18, %v3982_v54  ;;  %v3989_v56 = vsel %vm983_vm9, %v3943_v61, 0.0 }
 0x33a   : > { %v3985_v41 = vsel %vm983_vm9, %v3941_v20, 0.0  ;;  %v4708_v50 = vpop.f32.mrb[16].mxu1 }
 0x33b   : > { %v3781_v36 = vadd.f32 %v3780_v57, %v3779_v38  ;;  %v4738_v37 = vadd.f32 %v4708_v50, %v6834_v13  ;;  %v3397_v44 = vpop.f32.mrb[17].mxu1  ;;  %v3986_v49 = vadd.f32 %v3985_v41, %v3984_v63  ;;  %3550 = vrot.lane.b32.xlu1 %v4737_v2, %s4962_s9 }
 0x33c   : > { %v4739_v16 = vadd.f32 %v3397_v44, %v6836_v34  ;;  %v4709_v59 = vpop.f32.mrb[18].mxu1 }
 0x33d   : > { %v3783_v28 = vadd.f32 %v3782_v51, %v3781_v36  ;;  %v4740_v31 = vadd.f32 %v4709_v59, %v6838_v33  ;;  %3560 = vrot.lane.b32.xlu0 %v4738_v37, %s4962_s9  ;;  %v3400_v21 = vpop.f32.mrb[19].mxu1  ;;  %v3988_v8 = vadd.f32 %v3987_v27, %v3986_v49  ;;  %v3946_v33 = vmul.f32 %v4738_v37, %v4738_v37 }
 0x33e   : > { %v3784_v13 = vsel %vm983_vm9, %v4739_v16, 0.0  ;;  %v3944_v10 = vmul.f32 %v4739_v16, %v4739_v16  ;;  %v4741_v53 = vadd.f32 %v3400_v21, %v6840_v46  ;;  %v3788_v7 = vsel %vm983_vm9, %v4738_v37, 0.0 }
 0x33f   : > { %v3785_v62 = vadd.f32 %v3784_v13, %v3783_v28  ;;  %v3990_v43 = vadd.f32 %v3989_v56, %v3988_v8  ;;  %3562 = vrot.lane.b32.xlu1 %v4740_v31, %s4962_s9  ;;  %v3947_v3 = vmul.f32 %v4740_v31, %v4740_v31  ;;  %v3790_v57 = vsel %vm983_vm9, %v4740_v31, 0.0 }
 0x340   : > { %v3991_v34 = vsel %vm983_vm9, %v3944_v10, 0.0  ;;  %v3786_v39 = vsel %vm983_vm9, %v4741_v53, 0.0  ;;  %v3945_v2 = vmul.f32 %v4741_v53, %v4741_v53  ;;  %v3995_v61 = vsel %vm983_vm9, %v3946_v33, 0.0 }
 0x341   : > { %v3787_v58 = vadd.f32 %v3786_v39, %v3785_v62  ;;  %3556 = vrot.lane.b32.xlu0 %v4739_v16, %s4962_s9  ;;  %v3992_v54 = vadd.f32 %v3991_v34, %v3990_v43  ;;  %v3997_v59 = vsel %vm983_vm9, %v3947_v3, 0.0 }
 0x342   : > { %v3993_v46 = vsel %vm983_vm9, %v3945_v2, 0.0  ;;  %v4712_v18 = vpop.f32.mrb[20].mxu1 }
 0x343   : > { %v3789_v20 = vadd.f32 %v3788_v7, %v3787_v58  ;;  %v4742_v5 = vadd.f32 %v4712_v18, %v6842_v19  ;;  %v3413_v38 = vpop.f32.mrb[21].mxu1  ;;  %v3994_v63 = vadd.f32 %v3993_v46, %v3992_v54  ;;  %3558 = vrot.lane.b32.xlu1 %v4741_v53, %s4962_s9 }
 0x344   : > { %v4743_v41 = vadd.f32 %v3413_v38, %v6844_v9  ;;  %v4713_v50 = vpop.f32.mrb[22].mxu1 }
 0x345   : > { %v3791_v36 = vadd.f32 %v3790_v57, %v3789_v20  ;;  %v4744_v37 = vadd.f32 %v4713_v50, %v6846_v11  ;;  %3568 = vrot.lane.b32.xlu0 %v4742_v5, %s4962_s9  ;;  %v3416_v44 = vpop.f32.mrb[23].mxu1  ;;  %v3996_v51 = vadd.f32 %v3995_v61, %v3994_v63  ;;  %v3950_v11 = vmul.f32 %v4742_v5, %v4742_v5 }
 0x346   : > { %v3792_v19 = vsel %vm983_vm9, %v4743_v41, 0.0  ;;  %v3948_v49 = vmul.f32 %v4743_v41, %v4743_v41  ;;  %v4745_v16 = vadd.f32 %v3416_v44, %v6848_v1  ;;  %v3796_v13 = vsel %vm983_vm9, %v4742_v5, 0.0 }
 0x347   : > { %v3793_v27 = vadd.f32 %v3792_v19, %v3791_v36  ;;  %v3998_v28 = vadd.f32 %v3997_v59, %v3996_v51  ;;  %3570 = vrot.lane.b32.xlu1 %v4744_v37, %s4962_s9  ;;  %v3951_v56 = vmul.f32 %v4744_v37, %v4744_v37  ;;  %v3798_v39 = vsel %vm983_vm9, %v4744_v37, 0.0 }
 0x348   : > { %v3999_v9 = vsel %vm983_vm9, %v3948_v49, 0.0  ;;  %v3794_v31 = vsel %vm983_vm9, %v4745_v16, 0.0  ;;  %v3949_v21 = vmul.f32 %v4745_v16, %v4745_v16  ;;  %v4003_v7 = vsel %vm983_vm9, %v3950_v11, 0.0 }
 0x349   : > { %v3795_v8 = vadd.f32 %v3794_v31, %v3793_v27  ;;  %3564 = vrot.lane.b32.xlu0 %v4743_v41, %s4962_s9  ;;  %v4000_v10 = vadd.f32 %v3999_v9, %v3998_v28  ;;  %v4005_v38 = vsel %vm983_vm9, %v3951_v56, 0.0 }
 0x34a   : > { %v4001_v1 = vsel %vm983_vm9, %v3949_v21, 0.0  ;;  %v4716_v53 = vpop.f32.mrb[24].mxu1 }
 0x34b   : > { %v3797_v62 = vadd.f32 %v3796_v13, %v3795_v8  ;;  %v4746_v43 = vadd.f32 %v4716_v53, %v6850_v6  ;;  %v3429_v34 = vpop.f32.mrb[25].mxu1  ;;  %v4002_v2 = vadd.f32 %v4001_v1, %v4000_v10  ;;  %3566 = vrot.lane.b32.xlu1 %v4745_v16, %s4962_s9 }
 0x34c   : > { %v4747_v33 = vadd.f32 %v3429_v34, %v6852_v60  ;;  %v4717_v58 = vpop.f32.mrb[26].mxu1 }
 0x34d   : > { %v3799_v54 = vadd.f32 %v3798_v39, %v3797_v62  ;;  %v4748_v46 = vadd.f32 %v4717_v58, %v6854_v42  ;;  %3576 = vrot.lane.b32.xlu0 %v4746_v43, %s4962_s9  ;;  %v3432_v18 = vpop.f32.mrb[27].mxu1  ;;  %v4004_v3 = vadd.f32 %v4003_v7, %v4002_v2  ;;  %v3954_v42 = vmul.f32 %v4746_v43, %v4746_v43 }
 0x34e   : > { %v3800_v6 = vsel %vm983_vm9, %v4747_v33, 0.0  ;;  %v3952_v20 = vmul.f32 %v4747_v33, %v4747_v33  ;;  %v4749_v5 = vadd.f32 %v3432_v18, %v6856_v52  ;;  %v3804_v36 = vsel %vm983_vm9, %v4746_v43, 0.0 }
 0x34f   : > { %v3801_v57 = vadd.f32 %v3800_v6, %v3799_v54  ;;  %v4006_v63 = vadd.f32 %v4005_v38, %v4004_v3  ;;  %3578 = vrot.lane.b32.xlu1 %v4748_v46, %s4962_s9  ;;  %v3955_v51 = vmul.f32 %v4748_v46, %v4748_v46  ;;  %v3806_v59 = vsel %vm983_vm9, %v4748_v46, 0.0 }
 0x350   : > { %v4007_v60 = vsel %vm983_vm9, %v3952_v20, 0.0  ;;  %v3802_v41 = vsel %vm983_vm9, %v4749_v5, 0.0  ;;  %v3953_v50 = vmul.f32 %v4749_v5, %v4749_v5  ;;  %v4011_v31 = vsel %vm983_vm9, %v3954_v42, 0.0 }
 0x351   : > { %v3803_v61 = vadd.f32 %v3802_v41, %v3801_v57  ;;  %3572 = vrot.lane.b32.xlu0 %v4747_v33, %s4962_s9  ;;  %v4008_v37 = vadd.f32 %v4007_v60, %v4006_v63  ;;  %v4013_v53 = vsel %vm983_vm9, %v3955_v51, 0.0 }
 0x352   : > { %v4009_v52 = vsel %vm983_vm9, %v3953_v50, 0.0  ;;  %v4720_v44 = vpop.f32.mrb[28].mxu1 }
 0x353   : > { %v3805_v19 = vadd.f32 %v3804_v36, %v3803_v61  ;;  %v4750_v49 = vadd.f32 %v4720_v44, %v6863_v26  ;;  %v3445_v16 = vpop.f32.mrb[29].mxu1  ;;  %v4010_v27 = vadd.f32 %v4009_v52, %v4008_v37  ;;  %3574 = vrot.lane.b32.xlu1 %v4749_v5, %s4962_s9 }
 0x354   : > { %v4751_v28 = vadd.f32 %v3445_v16, %v6868_v48  ;;  %v4721_v9 = vpop.f32.mrb[30].mxu1 }
 0x355   : > { %v3807_v21 = vadd.f32 %v3806_v59, %v3805_v19  ;;  %v4752_v11 = vadd.f32 %v4721_v9, %v6871_v22  ;;  %v3448_v8 = vpop.f32.mrb[31].mxu1  ;;  %v4012_v13 = vadd.f32 %v4011_v31, %v4010_v27  ;;  %v3958_v22 = vmul.f32 %v4750_v49, %v4750_v49 }
 0x356   : > { %v3808_v10 = vsel %vm983_vm9, %v4751_v28, 0.0  ;;  %v3956_v1 = vmul.f32 %v4751_v28, %v4751_v28  ;;  %v4753_v26 = vadd.f32 %v3448_v8, %v6875_v30  ;;  %3580 = vrot.lane.b32.xlu0 %v4751_v28, %s4962_s9  ;;  %v3812_v2 = vsel %vm983_vm9, %v4750_v49, 0.0 }
 0x357   : > { %v3809_v56 = vadd.f32 %v3808_v10, %v3807_v21  ;;  %v4014_v62 = vadd.f32 %v4013_v53, %v4012_v13  ;;  %v3959_v58 = vmul.f32 %v4752_v11, %v4752_v11  ;;  %v3814_v54 = vsel %vm983_vm9, %v4752_v11, 0.0 }
 0x358   : > { %v4015_v48 = vsel %vm983_vm9, %v3956_v1, 0.0  ;;  %v3810_v43 = vsel %vm983_vm9, %v4753_v26, 0.0  ;;  %v3957_v34 = vmul.f32 %v4753_v26, %v4753_v26  ;;  %3582 = vrot.lane.b32.xlu1 %v4753_v26, %s4962_s9  ;;  %v4019_v18 = vsel %vm983_vm9, %v3958_v22, 0.0  ;;  %v7231_v22 = vld [vmem:[#allocation6_spill] sm:$0xff] }
 0x359   : > { %v3811_v39 = vadd.f32 %v3810_v43, %v3809_v56  ;;  %v4016_v33 = vadd.f32 %v4015_v48, %v4014_v62  ;;  %v4021_v20 = vsel %vm983_vm9, %v3959_v58, 0.0  ;;  %v7230_v43 = vld [vmem:[#allocation3_spill] sm:$0xff] }
 0x35a   : > { %v4017_v30 = vsel %vm983_vm9, %v3957_v34, 0.0 }
 0x35b   : > { %v3813_v7 = vadd.f32 %v3812_v2, %v3811_v39  ;;  %v4018_v46 = vadd.f32 %v4017_v30, %v4016_v33  ;;  %v7232_v2 = vld [vmem:[#allocation4_spill] sm:$0xff]  ;;  %v7233_v30 = vld [vmem:[#allocation5_spill] sm:$0xff] }
 0x35d   : > { %v3815_v3 = vadd.f32 %v3814_v54, %v3813_v7  ;;  %v4020_v6 = vadd.f32 %v4019_v18, %v4018_v46  ;;  %v7234_v54 = vld [vmem:[#allocation11_spill] sm:$0xff] }
 0x35f   : > { %v3816_v5 = vrot.slane %v3815_v3, 4  ;;  %v4022_v38 = vadd.f32 %v4021_v20, %v4020_v6 }
 0x361   : > { %v3817_v57 = vadd.f32 %v3816_v5, %v3815_v3  ;;  %v4023_v63 = vrot.slane %v4022_v38, 4  ;;  %v7235_v3 = vld [vmem:[#allocation2_spill] sm:$0xff]  ;;  %v7236_v5 = vld [vmem:[#allocation12_spill] sm:$0xff] }
 0x363   : > { %v3818_v60 = vrot.slane %v3817_v57, 2  ;;  %v4024_v41 = vadd.f32 %v4023_v63, %v4022_v38  ;;  %v7237_v63 = vld [vmem:[#allocation8_spill] sm:$0xff] }
 0x365   : > { %v3819_v50 = vadd.f32 %v3818_v60, %v3817_v57  ;;  %v4025_v42 = vrot.slane %v4024_v41, 2 }
 0x367   : > { %v3820_v61 = vrot.slane %v3819_v50, 1  ;;  %v4026_v36 = vadd.f32 %v4025_v42, %v4024_v41 }
 0x369   : > { %v3821_v37 = vadd.f32 %v3820_v61, %v3819_v50  ;;  %v4027_v52 = vrot.slane %v4026_v36, 1  ;;  %v7238_v50 = vld [vmem:[#allocation7_spill] sm:$0xff] }
 0x36b   : > { %3823 = vrot.lane.b32.xlu0 %v3821_v37, %s4962_s9  ;;  %v4028_v44 = vadd.f32 %v4027_v52, %v4026_v36  ;;  %v7239_v36 = vld [vmem:[#allocation9_spill] sm:$0xff] }
 0x36d   : > { %4030 = vrot.lane.b32.xlu1 %v4028_v44, %s4962_s9  ;;  %v7240_v44 = vld [vmem:[#allocation10_spill] sm:$0xff] }
 0x36f   : > { %3584 = vrot.lane.b32.xlu0 %v4750_v49, %s4962_s9 }
 0x371   : > { %3586 = vrot.lane.b32.xlu1 %v4752_v11, %s4962_s9 }
 0x38f   : > { %v3529_v51 = vpop.permute.xlu0 %3528 }
 0x390   : > { %v3622_v19 = vsel %vm983_vm9, %v6586_v17, %v3529_v51 }
 0x391   : > { %3654 = vst.msk [vmem:[%s6995_s27 + $0x10] sm:$0xff] %vm2359_vm11, %v3622_v19  ;;  %v3531_v49 = vpop.permute.xlu1 %3530 }
 0x392   : > { %v3623_v16 = vsel %vm983_vm9, %v6592_v12, %v3531_v49  ;;  %v7241_v49 = vld [vmem:[#allocation13_spill] sm:$0xff] }
 0x393   : > { %3655 = vst.msk [vmem:[%s6995_s27 + $0x18] sm:$0xff] %vm2359_vm11, %v3623_v16  ;;  %v3525_v59 = vpop.permute.xlu0 %3524 }
 0x394   : > { %v3620_v27 = vsel %vm983_vm9, %v6588_v35, %v3525_v59 }
 0x395   : > { %3652 = vst.msk [vmem:[%s6995_s27] sm:$0xff] %vm2359_vm11, %v3620_v27  ;;  %v3527_v28 = vpop.permute.xlu1 %3526  ;;  %v7242_v27 = vld [vmem:[#allocation15_spill] sm:$0xff] }
 0x396   : > { %v3621_v17 = vsel %vm983_vm9, %v6594_v45, %v3527_v28 }
 0x397   : > { %3653 = vst.msk [vmem:[%s6995_s27 + $0x8] sm:$0xff] %vm2359_vm11, %v3621_v17  ;;  %v3537_v9 = vpop.permute.xlu0 %3536 }
 0x398   : > { %v3626_v12 = vsel %vm983_vm9, %v6613_v55, %v3537_v9  ;;  %v7243_v9 = vld [vmem:[#allocation17_spill] sm:$0xff] }
 0x399   : > { %3658 = vst.msk [vmem:[%s6995_s27 + $0x30] sm:$0xff] %vm2359_vm11, %v3626_v12  ;;  %v3539_v31 = vpop.permute.xlu1 %3538 }
 0x39a   : > { %v3627_v35 = vsel %vm983_vm9, %v6622_v15, %v3539_v31  ;;  %v7244_v31 = vld [vmem:[#allocation19_spill] sm:$0xff] }
 0x39b   : > { %v3533_v21 = vpop.permute.xlu0 %3532  ;;  %3659 = vst.msk [vmem:[%s6995_s27 + $0x38] sm:$0xff] %vm2359_vm11, %v3627_v35  ;;  %v3922_v35 = vrot.slane %v7244_v31, 4 }
 0x39c   : > { %v3624_v45 = vsel %vm983_vm9, %v6615_v23, %v3533_v21  ;;  %v7245_v21 = vld [vmem:[#allocation18_spill] sm:$0xff] }
 0x39d   : > { %3656 = vst.msk [vmem:[%s6995_s27 + $0x20] sm:$0xff] %vm2359_vm11, %v3624_v45  ;;  %v3535_v11 = vpop.permute.xlu1 %3534  ;;  %v3747_v45 = vrot.slane %v7245_v21, 4 }
 0x39e   : > { %v3625_v55 = vsel %vm983_vm9, %v6624_v32, %v3535_v11  ;;  %v3923_v11 = vadd.f32 %v3922_v35, %v7244_v31 }
 0x39f   : > { %v3545_v8 = vpop.permute.xlu0 %3544  ;;  %3657 = vst.msk [vmem:[%s6995_s27 + $0x28] sm:$0xff] %vm2359_vm11, %v3625_v55  ;;  %v3748_v55 = vadd.f32 %v3747_v45, %v7245_v21 }
 0x3a0   : > { %v3630_v15 = vsel %vm983_vm9, %v6641_v47, %v3545_v8  ;;  %v3924_v8 = vrot.slane %v3923_v11, 2 }
 0x3a1   : > { %3662 = vst.msk [vmem:[%s6995_s27 + $0x50] sm:$0xff] %vm2359_vm11, %v3630_v15  ;;  %v3547_v13 = vpop.permute.xlu1 %3546  ;;  %v3749_v15 = vrot.slane %v3748_v55, 2 }
 0x3a2   : > { %v3631_v23 = vsel %vm983_vm9, %v6650_v29, %v3547_v13  ;;  %v3925_v13 = vadd.f32 %v3924_v8, %v3923_v11 }
 0x3a3   : > { %v3541_v10 = vpop.permute.xlu0 %3540  ;;  %3663 = vst.msk [vmem:[%s6995_s27 + $0x58] sm:$0xff] %vm2359_vm11, %v3631_v23  ;;  %v3750_v23 = vadd.f32 %v3749_v15, %v3748_v55 }
 0x3a4   : > { %v3628_v32 = vsel %vm983_vm9, %v6643_v14, %v3541_v10  ;;  %v3926_v10 = vrot.slane %v3925_v13, 1 }
 0x3a5   : > { %3660 = vst.msk [vmem:[%s6995_s27 + $0x40] sm:$0xff] %vm2359_vm11, %v3628_v32  ;;  %v3543_v1 = vpop.permute.xlu1 %3542  ;;  %v3751_v32 = vrot.slane %v3750_v23, 1 }
 0x3a6   : > { %v3629_v47 = vsel %vm983_vm9, %v6652_v24, %v3543_v1 }
 0x3a7   : > { %v3553_v26 = vpop.permute.xlu0 %3552  ;;  %3661 = vst.msk [vmem:[%s6995_s27 + $0x48] sm:$0xff] %vm2359_vm11, %v3629_v47  ;;  %v3927_v47 = vadd.f32 %v3926_v10, %v3925_v13 }
 0x3a8   : > { %v3634_v29 = vsel %vm983_vm9, %v6669_v0, %v3553_v26 }
 0x3a9   : > { %3666 = vst.msk [vmem:[%s6995_s27 + $0x70] sm:$0xff] %vm2359_vm11, %v3634_v29  ;;  %v3555_v53 = vpop.permute.xlu1 %3554  ;;  %v3752_v29 = vadd.f32 %v3751_v32, %v3750_v23 }
 0x3aa   : > { %v3635_v14 = vsel %vm983_vm9, %v6678_v40, %v3555_v53 }
 0x3ab   : > { %v3549_v56 = vpop.permute.xlu0 %3548  ;;  %3667 = vst.msk [vmem:[%s6995_s27 + $0x78] sm:$0xff] %vm2359_vm11, %v3635_v14 }
 0x3ac   : > { %v3632_v24 = vsel %vm983_vm9, %v6671_v4, %v3549_v56 }
 0x3ad   : > { %3664 = vst.msk [vmem:[%s6995_s27 + $0x60] sm:$0xff] %vm2359_vm11, %v3632_v24  ;;  %v3551_v62 = vpop.permute.xlu1 %3550  ;;  %v7246_v24 = vld [vmem:[#allocation14_spill] sm:$0xff] }
 0x3ae   : > { %v3633_v0 = vsel %vm983_vm9, %v6680_v25, %v3551_v62 }
 0x3af   : > { %v3561_v48 = vpop.permute.xlu0 %3560  ;;  %3665 = vst.msk [vmem:[%s6995_s27 + $0x68] sm:$0xff] %vm2359_vm11, %v3633_v0 }
 0x3b0   : > { %v3638_v40 = vsel %vm983_vm9, %v7230_v43, %v3561_v48 }
 0x3b1   : > { %3670 = vst.msk [vmem:[%s6995_s27 + $0x90] sm:$0xff] %vm2359_vm11, %v3638_v40  ;;  %v3563_v34 = vpop.permute.xlu1 %3562  ;;  %v7247_v40 = vld [vmem:[#allocation16_spill] sm:$0xff] }
 0x3b2   : > { %v3639_v4 = vsel %vm983_vm9, %v7231_v22, %v3563_v34 }
 0x3b3   : > { %v3557_v39 = vpop.permute.xlu0 %3556  ;;  %3671 = vst.msk [vmem:[%s6995_s27 + $0x98] sm:$0xff] %vm2359_vm11, %v3639_v4 }
 0x3b4   : > { %v3636_v25 = vsel %vm983_vm9, %v7232_v2, %v3557_v39 }
 0x3b5   : > { %3668 = vst.msk [vmem:[%s6995_s27 + $0x80] sm:$0xff] %vm2359_vm11, %v3636_v25  ;;  %v3559_v33 = vpop.permute.xlu1 %3558 }
 0x3b6   : > { %v3637_v58 = vsel %vm983_vm9, %v7233_v30, %v3559_v33 }
 0x3b7   : > { %v3569_v7 = vpop.permute.xlu0 %3568  ;;  %3669 = vst.msk [vmem:[%s6995_s27 + $0x88] sm:$0xff] %vm2359_vm11, %v3637_v58 }
 0x3b8   : > { %v3642_v46 = vsel %vm983_vm9, %v7234_v54, %v3569_v7 }
 0x3b9   : > { %3674 = vst.msk [vmem:[%s6995_s27 + $0xb0] sm:$0xff] %vm2359_vm11, %v3642_v46  ;;  %v3571_v18 = vpop.permute.xlu1 %3570 }
 0x3ba   : > { %v3643_v6 = vsel %vm983_vm9, %v7235_v3, %v3571_v18 }
 0x3bb   : > { %v3565_v20 = vpop.permute.xlu0 %3564  ;;  %3675 = vst.msk [vmem:[%s6995_s27 + $0xb8] sm:$0xff] %vm2359_vm11, %v3643_v6 }
 0x3bc   : > { %v3640_v38 = vsel %vm983_vm9, %v7236_v5, %v3565_v20 }
 0x3bd   : > { %3672 = vst.msk [vmem:[%s6995_s27 + $0xa0] sm:$0xff] %vm2359_vm11, %v3640_v38  ;;  %v3567_v57 = vpop.permute.xlu1 %3566 }
 0x3be   : > { %v3641_v60 = vsel %vm983_vm9, %v7237_v63, %v3567_v57 }
 0x3bf   : > { %v3577_v41 = vpop.permute.xlu0 %3576  ;;  %3673 = vst.msk [vmem:[%s6995_s27 + $0xa8] sm:$0xff] %vm2359_vm11, %v3641_v60 }
 0x3c0   : > { %v3646_v42 = vsel %vm983_vm9, %v7238_v50, %v3577_v41 }
 0x3c1   : > { %3678 = vst.msk [vmem:[%s6995_s27 + $0xd0] sm:$0xff] %vm2359_vm11, %v3646_v42  ;;  %v3579_v61 = vpop.permute.xlu1 %3578 }
 0x3c2   : > { %v3647_v37 = vsel %vm983_vm9, %v7239_v36, %v3579_v61 }
 0x3c3   : > { %v3573_v52 = vpop.permute.xlu0 %3572  ;;  %3679 = vst.msk [vmem:[%s6995_s27 + $0xd8] sm:$0xff] %vm2359_vm11, %v3647_v37 }
 0x3c4   : > { %v3644_v51 = vsel %vm983_vm9, %v7240_v44, %v3573_v52 }
 0x3c5   : > { %3676 = vst.msk [vmem:[%s6995_s27 + $0xc0] sm:$0xff] %vm2359_vm11, %v3644_v51  ;;  %v3575_v19 = vpop.permute.xlu1 %3574 }
 0x3c6   : > { %v3645_v16 = vsel %vm983_vm9, %v7241_v49, %v3575_v19 }
 0x3c7   : > { %3677 = vst.msk [vmem:[%s6995_s27 + $0xc8] sm:$0xff] %vm2359_vm11, %v3645_v16 }
 0x3c8   : > { %v3581_v59 = vpop.permute.xlu0 %3580 }
 0x3c9   : > { %v3648_v28 = vsel %vm983_vm9, %v7242_v27, %v3581_v59 }
 0x3ca   : > { %3680 = vst.msk [vmem:[%s6995_s27 + $0xe0] sm:$0xff] %vm2359_vm11, %v3648_v28  ;;  %v3583_v17 = vpop.permute.xlu1 %3582 }
 0x3cb   : > { %v3649_v12 = vsel %vm983_vm9, %v7243_v9, %v3583_v17 }
 0x3cc   : > { %3681 = vst.msk [vmem:[%s6995_s27 + $0xe8] sm:$0xff] %vm2359_vm11, %v3649_v12 }
 0x3dd   : > { %v3824_v1 = vpop.permute.xlu0 %3823 }
 0x3de   : > { %v3826_v0 = vsel %vm983_vm9, %v3752_v29, %v3824_v1 }
 0x3df   : > { %v4031_v26 = vpop.permute.xlu1 %4030 }
 0x3e0   : > { %v4033_v53 = vsel %vm983_vm9, %v3927_v47, %v4031_v26 }
 0x3e1   : > { %v3585_v14 = vpop.permute.xlu0 %3584  ;;  %v4035_v56 = vrot.slane %v4033_v53, 7 }
 0x3e2   : > { %v3650_v62 = vsel %vm983_vm9, %v7246_v24, %v3585_v14 }
 0x3e3   : > { %3682 = vst.msk [vmem:[%s6995_s27 + $0xf0] sm:$0xff] %vm2359_vm11, %v3650_v62  ;;  %v4037_v48 = vsel %vm575_vm0, %v3826_v0, %v4035_v56  ;;  %v3587_v43 = vpop.permute.xlu1 %3586 }
 0x3e4   : > { %4039 = vst.msk [vmem:[%s262_s29] sm:$0x3] %vm4038_vm13, %v4037_v48  ;;  %v3651_v34 = vsel %vm983_vm9, %v7247_v40, %v3587_v43 }
 0x3e5   : > { %3683 = vst.msk [vmem:[%s6995_s27 + $0xf8] sm:$0xff] %vm2359_vm11, %v3651_v34 }
 0x3e6 PF: > { %s17_s21 = sadd.s32 1, %s4957_s21  }
 0x3e7   : > { %p14_p4 = scmp.ge.s32.totalorder %s17_s21, 4  }
 0x3e9   :  { %16 = sbr.rel (!%p14_p4) target bundleno = 1 (0x1), region = 88 }

</bundles_post_ra>
